<compile_context>
chip_gen: v7x
topology: tpu7x:2x2x1
jax: 0.10.0
libtpu: 0.0.40
codegen_flags: <defaults>
</compile_context>

<pallas_src>
import jax
import jax.numpy as jnp
from jax.experimental import pallas as pl
from jax.experimental.pallas import tpu as pltpu

BN_EPS = 1e-5


# ----------------------------- Pallas kernel --------------------------------------

def up_conv_kernel(x_ref, w_ref, b_ref, o_ref, pad_ref, patch_ref):
    """One row-strip of fused nearest-2x upsample + 3x3 conv (+folded BN) + ReLU.

    x_ref:     (1, H, W, Cin)      bf16  whole input image of this batch element
    w_ref:     (9*Cin, 4*Cout)     bf16  3x3 taps with BOTH upsample phases folded in
    b_ref:     (1, 4*Cout)         f32   folded bias (same bias for all 4 phases)
    o_ref:     (1, RI*W, 4*Cout)   bf16  lanes = (row_phase, col_phase, Cout)
    pad_ref:   (RI+2, W+2, Cin)    bf16  scratch: strip + 1-px halo (input resolution)
    patch_ref: (RI*W, 9*Cin)       bf16  scratch: im2col patches, K order (dy, dx, cin)
    """
    s = pl.program_id(1)                       # row-strip index
    n_strips = pl.num_programs(1)
    RI = pad_ref.shape[0] - 2                  # input rows per strip
    W = x_ref.shape[2]
    Cin = x_ref.shape[3]
    q0 = pl.multiple_of(s * RI, RI)            # first input row of this strip

    # 1-px zero halo columns: nothing else ever writes them, so zero just these
    # (tiny) slabs instead of the whole staging buffer.
    zcol = jnp.zeros((RI + 2, 1, Cin), pad_ref.dtype)
    pad_ref[:, 0:1, :] = zcol
    pad_ref[:, W + 1:W + 2, :] = zcol

    # Strip interior: the RI input rows, unchanged resolution (row phases live in the
    # weights now, so no row duplication / broadcast).
    pad_ref[1:RI + 1, 1:W + 1, :] = x_ref[0, pl.ds(q0, RI), :, :]

    zrow = jnp.zeros((1, W, Cin), pad_ref.dtype)

    @pl.when(s > 0)                            # top halo row = input row q0-1
    def _():
        pad_ref[0:1, 1:W + 1, :] = x_ref[0, pl.ds(q0 - 1, 1), :, :]

    @pl.when(s == 0)                           # image border -> zero
    def _():
        pad_ref[0:1, 1:W + 1, :] = zrow

    @pl.when(s < n_strips - 1)                 # bottom halo row = input row q0+RI
    def _():
        pad_ref[RI + 1:RI + 2, 1:W + 1, :] = x_ref[0, pl.ds(q0 + RI, 1), :, :]

    @pl.when(s == n_strips - 1)                # image border -> zero
    def _():
        pad_ref[RI + 1:RI + 2, 1:W + 1, :] = zrow

    # im2col: write the nine taps straight into the lane-dense bf16 patch scratch
    # (no concatenate temporaries).  Tap t = dy*3+dx occupies lanes [t*Cin, (t+1)*Cin).
    for t, (dy, dx) in enumerate([(dy, dx) for dy in range(3) for dx in range(3)]):
        patch_ref[:, t * Cin:(t + 1) * Cin] = (
            pad_ref[dy:dy + RI, dx:dx + W, :].reshape(RI * W, Cin))

    # One MXU matmul: M = RI*W, K = 9*Cin, N = 4*Cout; f32 accumulation.
    acc = jnp.dot(patch_ref[...], w_ref[...], preferred_element_type=jnp.float32)
    acc = jnp.maximum(acc + b_ref[...], 0.0)   # folded-BN bias + ReLU in f32
    o_ref[0] = acc.astype(o_ref.dtype)         # full-width 128-lane bf16 store


# ----------------------------- parameter folding ----------------------------------

def fold_bn(w, b, gamma, beta, mean, var, eps=BN_EPS):
    """Fold eval-mode BatchNorm2d into conv weight (Cout,Cin,3,3) and bias (Cout,)."""
    s = gamma / jnp.sqrt(var + eps)
    return w * s[:, None, None, None], (b - mean) * s + beta


def build_up_conv_weights(w, b):
    """Fold BOTH nearest-2x upsample phases into the 3x3 conv weights.

    Output pixel (2r+pr, 2c+pc) of conv(upsample(x)) only reads input rows
    {r-1, r, r+1} and cols {c-1, c, c+1}:
        row phase 0: [w_ky0, w_ky1+w_ky2, 0]    row phase 1: [0, w_ky0+w_ky1, w_ky2]
        col phase 0: [w_kx0, w_kx1+w_kx2, 0]    col phase 1: [0, w_kx0+w_kx1, w_kx2]
    Returns w_eff (9*Cin, 4*Cout) bf16 with K order (dy, dx, cin) and N order
    (row_phase, col_phase, cout), plus the bias tiled over the 4 phases.
    """
    Cin, Cout = w.shape[1], w.shape[0]
    wt = jnp.transpose(w, (2, 3, 1, 0))                            # (ky, kx, Cin, Cout)
    zc = jnp.zeros_like(wt[:, 0])                                  # (ky, Cin, Cout)
    c0 = jnp.stack([wt[:, 0], wt[:, 1] + wt[:, 2], zc], axis=1)    # (ky, dx, Cin, Cout)
    c1 = jnp.stack([zc, wt[:, 0] + wt[:, 1], wt[:, 2]], axis=1)
    wc = jnp.stack([c0, c1], axis=0)                               # (pc, ky, dx, Cin, Cout)
    zr = jnp.zeros_like(wc[:, 0])                                  # (pc, dx, Cin, Cout)
    r0 = jnp.stack([wc[:, 0], wc[:, 1] + wc[:, 2], zr], axis=1)    # (pc, dy, dx, Cin, Cout)
    r1 = jnp.stack([zr, wc[:, 0] + wc[:, 1], wc[:, 2]], axis=1)
    wa = jnp.stack([r0, r1], axis=0)                               # (pr, pc, dy, dx, Cin, Cout)
    w_eff = jnp.transpose(wa, (2, 3, 4, 0, 1, 5)).reshape(9 * Cin, 4 * Cout)
    bias = jnp.tile(b, 4).reshape(1, 4 * Cout).astype(jnp.float32)
    return w_eff.astype(jnp.bfloat16), bias


# ----------------------------- wrapper ---------------------------------------------

def _pick_rows_per_strip(H, W, max_m=1024):
    """Input rows per strip.  Single strip if the whole image fits the M cap (removes
    per-grid-step overhead for small images); else the largest divisor of H keeping
    M = RI*W a multiple of 8 and <= max_m (>= 256 preferred for the 256x256 MXU)."""
    if H * W <= max_m:
        return H
    for ri in range(H - 1, 0, -1):
        if H % ri == 0 and ri * W <= max_m and (ri * W) % 8 == 0:
            return ri
    return H


def up_conv_forward(x_nchw, params):
    """up_conv forward (eval-mode BN): NCHW f32 in, NCHW f32 out."""
    wf, bf = fold_bn(params['w'], params['b'], params['gamma'], params['beta'],
                     params['mean'], params['var'])
    w_eff, bias = build_up_conv_weights(wf, bf)

    B, Cin, H, W = x_nchw.shape
    Cout = params['w'].shape[0]
    RI = _pick_rows_per_strip(H, W)
    n_strips = H // RI

    # NHWC so channels sit on TPU lanes; bf16 activations for the MXU.
    x = jnp.transpose(x_nchw, (0, 2, 3, 1)).astype(jnp.bfloat16)

    out = pl.pallas_call(
        up_conv_kernel,
        out_shape=jax.ShapeDtypeStruct((B, H * W, 4 * Cout), jnp.bfloat16),
        grid=(B, n_strips),
        in_specs=[
            pl.BlockSpec((1, H, W, Cin), lambda b, s: (b, 0, 0, 0)),   # whole image / batch
            pl.BlockSpec((9 * Cin, 4 * Cout), lambda b, s: (0, 0)),
            pl.BlockSpec((1, 4 * Cout), lambda b, s: (0, 0)),
        ],
        out_specs=pl.BlockSpec((1, RI * W, 4 * Cout), lambda b, s: (b, s, 0)),
        scratch_shapes=[
            pltpu.VMEM((RI + 2, W + 2, Cin), jnp.bfloat16),            # halo staging
            pltpu.VMEM((RI * W, 9 * Cin), jnp.bfloat16),               # im2col patches
        ],
        compiler_params=pltpu.CompilerParams(
            dimension_semantics=("parallel", "parallel")),
    )(x, w_eff, bias)

    # (B, H*W, 4*Cout) -> (B, H, W, pr, pc, Cout) is a free row-major reshape; one
    # transpose then both de-interleaves the upsample phases AND produces NCHW.
    out = out.reshape(B, H, W, 2, 2, Cout)
    out = jnp.transpose(out, (0, 5, 1, 3, 2, 4))           # (B, Cout, H, pr, W, pc)
    return out.reshape(B, Cout, 2 * H, 2 * W).astype(jnp.float32)


# ----------------------------- pure-JAX reference ----------------------------------

def up_conv_reference(x_nchw, params):
    """Eval-mode reference with the same bf16 operand rounding as the kernel."""
    wf, bf = fold_bn(params['w'], params['b'], params['gamma'], params['beta'],
                     params['mean'], params['var'])
    x = jnp.transpose(x_nchw, (0, 2, 3, 1)).astype(jnp.bfloat16).astype(jnp.float32)
    x = jnp.repeat(jnp.repeat(x, 2, axis=1), 2, axis=2)        # nearest 2x upsample
    w = jnp.transpose(wf, (2, 3, 1, 0)).astype(jnp.bfloat16).astype(jnp.float32)  # HWIO
    y = jax.lax.conv_general_dilated(
        x, w, window_strides=(1, 1), padding='SAME',
        dimension_numbers=('NHWC', 'HWIO', 'NHWC'),
        precision=jax.lax.Precision.HIGHEST)
    y = jnp.maximum(y + bf, 0.0)
    return jnp.transpose(y, (0, 3, 1, 2))


# ----------------------------- main -------------------------------------------------

if __name__ == "__main__":
    key = jax.random.PRNGKey(0)
    kw, kb, kg, kbeta, km, kv, kx = jax.random.split(key, 7)
    B, CIN, COUT, H, W = 2, 32, 32, 16, 16

    params = {
        'w': jax.random.normal(kw, (COUT, CIN, 3, 3), jnp.float32) / ((9 * CIN) ** 0.5),
        'b': 0.01 * jax.random.normal(kb, (COUT,), jnp.float32),
        'gamma': 1.0 + 0.1 * jax.random.normal(kg, (COUT,), jnp.float32),
        'beta': 0.1 * jax.random.normal(kbeta, (COUT,), jnp.float32),
        'mean': 0.1 * jax.random.normal(km, (COUT,), jnp.float32),
        'var': 1.0 + 0.1 * jnp.abs(jax.random.normal(kv, (COUT,), jnp.float32)),
    }
    x = jax.random.normal(kx, (B, CIN, H, W), jnp.float32)

    out = jax.block_until_ready(jax.jit(up_conv_forward)(x, params))
    assert out.shape == (B, COUT, 2 * H, 2 * W), out.shape
    assert bool(jnp.all(jnp.isfinite(out)))

    ref = jax.block_until_ready(jax.jit(up_conv_reference)(x, params))
    err = jnp.abs(out - ref)
    tol = 5e-2 + 5e-2 * jnp.abs(ref)                      # atol + rtol (bf16 rounding)
    assert bool(jnp.all(err <= tol)), f"max abs err {float(jnp.max(err))}"
    print("KERNEL_OK")
</pallas_src>

<mosaic_0001>
module attributes {stable_mosaic.version = 11 : i64} {
  func.func @up_conv_kernel(%arg0: i32, %arg1: i32, %arg2: memref<1x16x16x32xbf16, #tpu.memory_space<vmem>>, %arg3: memref<288x128xbf16, #tpu.memory_space<vmem>>, %arg4: memref<1x128xf32, #tpu.memory_space<vmem>>, %arg5: memref<1x256x128xbf16, #tpu.memory_space<vmem>>, %arg6: memref<18x18x32xbf16, #tpu.memory_space<vmem>>, %arg7: memref<256x288xbf16, #tpu.memory_space<vmem>>) attributes {dimension_semantics = [#tpu.dimension_semantics<parallel>, #tpu.dimension_semantics<parallel>], iteration_bounds = array<i64: 2, 1>, scalar_prefetch = 0 : i64, scratch_operands = 2 : i64, tpu.core_type = #tpu.core_type<tc>, window_params = [{transform_indices = @transform_0, window_bounds = array<i64: 1, 16, 16, 32>}, {pipeline_mode = #tpu.pipeline_mode<synchronous>, transform_indices = @transform_1, window_bounds = array<i64: 288, 128>}, {pipeline_mode = #tpu.pipeline_mode<synchronous>, transform_indices = @transform_2, window_bounds = array<i64: 1, 128>}, {transform_indices = @transform_3, window_bounds = array<i64: 1, 256, 128>}]} {
    %c16_i32 = arith.constant 16 : i32
    %0 = arith.muli %arg1, %c16_i32 : i32
    %1 = tpu.assume_multiple %0, 16 : i32
    %cst = arith.constant 0.000000e+00 : bf16
    %2 = vector.broadcast %cst : bf16 to vector<18x1x32xbf16>
    %c0 = arith.constant 0 : index
    %c0_0 = arith.constant 0 : index
    %c0_1 = arith.constant 0 : index
    %3 = vector.load %arg6[%c0, %c0_0, %c0_1] : memref<18x18x32xbf16, #tpu.memory_space<vmem>>, vector<18x1x32xbf16>
    tpu.vector_store %arg6[%c0, %c0_0, %c0_1], %2 {strides = array<i32>} : memref<18x18x32xbf16, #tpu.memory_space<vmem>>, vector<18x1x32xbf16>,
    %c0_2 = arith.constant 0 : index
    %c17 = arith.constant 17 : index
    %c0_3 = arith.constant 0 : index
    %4 = vector.load %arg6[%c0_2, %c17, %c0_3] : memref<18x18x32xbf16, #tpu.memory_space<vmem>>, vector<18x1x32xbf16>
    tpu.vector_store %arg6[%c0_2, %c17, %c0_3], %2 {strides = array<i32>} : memref<18x18x32xbf16, #tpu.memory_space<vmem>>, vector<18x1x32xbf16>,
    %c0_4 = arith.constant 0 : index
    %5 = arith.index_cast %1 : i32 to index
    %c0_5 = arith.constant 0 : index
    %c0_6 = arith.constant 0 : index
    %6 = vector.load %arg2[%c0_4, %5, %c0_5, %c0_6] : memref<1x16x16x32xbf16, #tpu.memory_space<vmem>>, vector<1x16x16x32xbf16>
    %7 = vector.shape_cast %6 : vector<1x16x16x32xbf16> to vector<16x16x32xbf16>
    %c1 = arith.constant 1 : index
    %c1_7 = arith.constant 1 : index
    %c0_8 = arith.constant 0 : index
    %8 = vector.load %arg6[%c1, %c1_7, %c0_8] : memref<18x18x32xbf16, #tpu.memory_space<vmem>>, vector<16x16x32xbf16>
    tpu.vector_store %arg6[%c1, %c1_7, %c0_8], %7 {strides = array<i32>} : memref<18x18x32xbf16, #tpu.memory_space<vmem>>, vector<16x16x32xbf16>,
    %cst_9 = arith.constant 0.000000e+00 : bf16
    %9 = vector.broadcast %cst_9 : bf16 to vector<1x16x32xbf16>
    %c0_i32 = arith.constant 0 : i32
    %10 = arith.cmpi sgt, %arg1, %c0_i32 : i32
    %11 = arith.extui %10 : i1 to i32
    %c0_i32_10 = arith.constant 0 : i32
    %12 = arith.cmpi ne, %11, %c0_i32_10 : i32
    scf.if %12 {
      %c1_i32 = arith.constant 1 : i32
      %61 = arith.subi %1, %c1_i32 : i32
      %c0_64 = arith.constant 0 : index
      %62 = arith.index_cast %61 : i32 to index
      %c0_65 = arith.constant 0 : index
      %c0_66 = arith.constant 0 : index
      %63 = vector.load %arg2[%c0_64, %62, %c0_65, %c0_66] : memref<1x16x16x32xbf16, #tpu.memory_space<vmem>>, vector<1x1x16x32xbf16>
      %64 = vector.shape_cast %63 : vector<1x1x16x32xbf16> to vector<1x16x32xbf16>
      %c0_67 = arith.constant 0 : index
      %c1_68 = arith.constant 1 : index
      %c0_69 = arith.constant 0 : index
      %65 = vector.load %arg6[%c0_67, %c1_68, %c0_69] : memref<18x18x32xbf16, #tpu.memory_space<vmem>>, vector<1x16x32xbf16>
      tpu.vector_store %arg6[%c0_67, %c1_68, %c0_69], %64 {strides = array<i32>} : memref<18x18x32xbf16, #tpu.memory_space<vmem>>, vector<1x16x32xbf16>,
    } else {
    }
    %c0_i32_11 = arith.constant 0 : i32
    %13 = arith.cmpi eq, %arg1, %c0_i32_11 : i32
    %14 = arith.extui %13 : i1 to i32
    %c0_i32_12 = arith.constant 0 : i32
    %15 = arith.cmpi ne, %14, %c0_i32_12 : i32
    scf.if %15 {
      %c0_64 = arith.constant 0 : index
      %c1_65 = arith.constant 1 : index
      %c0_66 = arith.constant 0 : index
      %61 = vector.load %arg6[%c0_64, %c1_65, %c0_66] : memref<18x18x32xbf16, #tpu.memory_space<vmem>>, vector<1x16x32xbf16>
      tpu.vector_store %arg6[%c0_64, %c1_65, %c0_66], %9 {strides = array<i32>} : memref<18x18x32xbf16, #tpu.memory_space<vmem>>, vector<1x16x32xbf16>,
    } else {
    }
    %c0_i32_13 = arith.constant 0 : i32
    %16 = arith.cmpi slt, %arg1, %c0_i32_13 : i32
    %17 = arith.extui %16 : i1 to i32
    %c0_i32_14 = arith.constant 0 : i32
    %18 = arith.cmpi ne, %17, %c0_i32_14 : i32
    scf.if %18 {
      %c16_i32_64 = arith.constant 16 : i32
      %61 = arith.addi %1, %c16_i32_64 : i32
      %c0_65 = arith.constant 0 : index
      %62 = arith.index_cast %61 : i32 to index
      %c0_66 = arith.constant 0 : index
      %c0_67 = arith.constant 0 : index
      %63 = vector.load %arg2[%c0_65, %62, %c0_66, %c0_67] : memref<1x16x16x32xbf16, #tpu.memory_space<vmem>>, vector<1x1x16x32xbf16>
      %64 = vector.shape_cast %63 : vector<1x1x16x32xbf16> to vector<1x16x32xbf16>
      %c17_68 = arith.constant 17 : index
      %c1_69 = arith.constant 1 : index
      %c0_70 = arith.constant 0 : index
      %65 = vector.load %arg6[%c17_68, %c1_69, %c0_70] : memref<18x18x32xbf16, #tpu.memory_space<vmem>>, vector<1x16x32xbf16>
      tpu.vector_store %arg6[%c17_68, %c1_69, %c0_70], %64 {strides = array<i32>} : memref<18x18x32xbf16, #tpu.memory_space<vmem>>, vector<1x16x32xbf16>,
    } else {
    }
    %c0_i32_15 = arith.constant 0 : i32
    %19 = arith.cmpi eq, %arg1, %c0_i32_15 : i32
    %20 = arith.extui %19 : i1 to i32
    %c0_i32_16 = arith.constant 0 : i32
    %21 = arith.cmpi ne, %20, %c0_i32_16 : i32
    scf.if %21 {
      %c17_64 = arith.constant 17 : index
      %c1_65 = arith.constant 1 : index
      %c0_66 = arith.constant 0 : index
      %61 = vector.load %arg6[%c17_64, %c1_65, %c0_66] : memref<18x18x32xbf16, #tpu.memory_space<vmem>>, vector<1x16x32xbf16>
      tpu.vector_store %arg6[%c17_64, %c1_65, %c0_66], %9 {strides = array<i32>} : memref<18x18x32xbf16, #tpu.memory_space<vmem>>, vector<1x16x32xbf16>,
    } else {
    }
    %c0_17 = arith.constant 0 : index
    %c0_18 = arith.constant 0 : index
    %c0_19 = arith.constant 0 : index
    %22 = vector.load %arg6[%c0_17, %c0_18, %c0_19] : memref<18x18x32xbf16, #tpu.memory_space<vmem>>, vector<16x16x32xbf16>
    %23 = vector.shape_cast %22 : vector<16x16x32xbf16> to vector<256x32xbf16>
    %c0_20 = arith.constant 0 : index
    %c0_21 = arith.constant 0 : index
    %24 = vector.load %arg7[%c0_20, %c0_21] : memref<256x288xbf16, #tpu.memory_space<vmem>>, vector<256x32xbf16>
    tpu.vector_store %arg7[%c0_20, %c0_21], %23 {strides = array<i32>} : memref<256x288xbf16, #tpu.memory_space<vmem>>, vector<256x32xbf16>,
    %c0_22 = arith.constant 0 : index
    %c1_23 = arith.constant 1 : index
    %c0_24 = arith.constant 0 : index
    %25 = vector.load %arg6[%c0_22, %c1_23, %c0_24] : memref<18x18x32xbf16, #tpu.memory_space<vmem>>, vector<16x16x32xbf16>
    %26 = vector.shape_cast %25 : vector<16x16x32xbf16> to vector<256x32xbf16>
    %c0_25 = arith.constant 0 : index
    %c32 = arith.constant 32 : index
    %27 = vector.load %arg7[%c0_25, %c32] : memref<256x288xbf16, #tpu.memory_space<vmem>>, vector<256x32xbf16>
    tpu.vector_store %arg7[%c0_25, %c32], %26 {strides = array<i32>} : memref<256x288xbf16, #tpu.memory_space<vmem>>, vector<256x32xbf16>,
    %c0_26 = arith.constant 0 : index
    %c2 = arith.constant 2 : index
    %c0_27 = arith.constant 0 : index
    %28 = vector.load %arg6[%c0_26, %c2, %c0_27] : memref<18x18x32xbf16, #tpu.memory_space<vmem>>, vector<16x16x32xbf16>
    %29 = vector.shape_cast %28 : vector<16x16x32xbf16> to vector<256x32xbf16>
    %c0_28 = arith.constant 0 : index
    %c64 = arith.constant 64 : index
    %30 = vector.load %arg7[%c0_28, %c64] : memref<256x288xbf16, #tpu.memory_space<vmem>>, vector<256x32xbf16>
    tpu.vector_store %arg7[%c0_28, %c64], %29 {strides = array<i32>} : memref<256x288xbf16, #tpu.memory_space<vmem>>, vector<256x32xbf16>,
    %c1_29 = arith.constant 1 : index
    %c0_30 = arith.constant 0 : index
    %c0_31 = arith.constant 0 : index
    %31 = vector.load %arg6[%c1_29, %c0_30, %c0_31] : memref<18x18x32xbf16, #tpu.memory_space<vmem>>, vector<16x16x32xbf16>
    %32 = vector.shape_cast %31 : vector<16x16x32xbf16> to vector<256x32xbf16>
    %c0_32 = arith.constant 0 : index
    %c96 = arith.constant 96 : index
    %33 = vector.load %arg7[%c0_32, %c96] : memref<256x288xbf16, #tpu.memory_space<vmem>>, vector<256x32xbf16>
    tpu.vector_store %arg7[%c0_32, %c96], %32 {strides = array<i32>} : memref<256x288xbf16, #tpu.memory_space<vmem>>, vector<256x32xbf16>,
    %c1_33 = arith.constant 1 : index
    %c1_34 = arith.constant 1 : index
    %c0_35 = arith.constant 0 : index
    %34 = vector.load %arg6[%c1_33, %c1_34, %c0_35] : memref<18x18x32xbf16, #tpu.memory_space<vmem>>, vector<16x16x32xbf16>
    %35 = vector.shape_cast %34 : vector<16x16x32xbf16> to vector<256x32xbf16>
    %c0_36 = arith.constant 0 : index
    %c128 = arith.constant 128 : index
    %36 = vector.load %arg7[%c0_36, %c128] : memref<256x288xbf16, #tpu.memory_space<vmem>>, vector<256x32xbf16>
    tpu.vector_store %arg7[%c0_36, %c128], %35 {strides = array<i32>} : memref<256x288xbf16, #tpu.memory_space<vmem>>, vector<256x32xbf16>,
    %c1_37 = arith.constant 1 : index
    %c2_38 = arith.constant 2 : index
    %c0_39 = arith.constant 0 : index
    %37 = vector.load %arg6[%c1_37, %c2_38, %c0_39] : memref<18x18x32xbf16, #tpu.memory_space<vmem>>, vector<16x16x32xbf16>
    %38 = vector.shape_cast %37 : vector<16x16x32xbf16> to vector<256x32xbf16>
    %c0_40 = arith.constant 0 : index
    %c160 = arith.constant 160 : index
    %39 = vector.load %arg7[%c0_40, %c160] : memref<256x288xbf16, #tpu.memory_space<vmem>>, vector<256x32xbf16>
    tpu.vector_store %arg7[%c0_40, %c160], %38 {strides = array<i32>} : memref<256x288xbf16, #tpu.memory_space<vmem>>, vector<256x32xbf16>,
    %c2_41 = arith.constant 2 : index
    %c0_42 = arith.constant 0 : index
    %c0_43 = arith.constant 0 : index
    %40 = vector.load %arg6[%c2_41, %c0_42, %c0_43] : memref<18x18x32xbf16, #tpu.memory_space<vmem>>, vector<16x16x32xbf16>
    %41 = vector.shape_cast %40 : vector<16x16x32xbf16> to vector<256x32xbf16>
    %c0_44 = arith.constant 0 : index
    %c192 = arith.constant 192 : index
    %42 = vector.load %arg7[%c0_44, %c192] : memref<256x288xbf16, #tpu.memory_space<vmem>>, vector<256x32xbf16>
    tpu.vector_store %arg7[%c0_44, %c192], %41 {strides = array<i32>} : memref<256x288xbf16, #tpu.memory_space<vmem>>, vector<256x32xbf16>,
    %c2_45 = arith.constant 2 : index
    %c1_46 = arith.constant 1 : index
    %c0_47 = arith.constant 0 : index
    %43 = vector.load %arg6[%c2_45, %c1_46, %c0_47] : memref<18x18x32xbf16, #tpu.memory_space<vmem>>, vector<16x16x32xbf16>
    %44 = vector.shape_cast %43 : vector<16x16x32xbf16> to vector<256x32xbf16>
    %c0_48 = arith.constant 0 : index
    %c224 = arith.constant 224 : index
    %45 = vector.load %arg7[%c0_48, %c224] : memref<256x288xbf16, #tpu.memory_space<vmem>>, vector<256x32xbf16>
    tpu.vector_store %arg7[%c0_48, %c224], %44 {strides = array<i32>} : memref<256x288xbf16, #tpu.memory_space<vmem>>, vector<256x32xbf16>,
    %c2_49 = arith.constant 2 : index
    %c2_50 = arith.constant 2 : index
    %c0_51 = arith.constant 0 : index
    %46 = vector.load %arg6[%c2_49, %c2_50, %c0_51] : memref<18x18x32xbf16, #tpu.memory_space<vmem>>, vector<16x16x32xbf16>
    %47 = vector.shape_cast %46 : vector<16x16x32xbf16> to vector<256x32xbf16>
    %c0_52 = arith.constant 0 : index
    %c256 = arith.constant 256 : index
    %48 = vector.load %arg7[%c0_52, %c256] : memref<256x288xbf16, #tpu.memory_space<vmem>>, vector<256x32xbf16>
    tpu.vector_store %arg7[%c0_52, %c256], %47 {strides = array<i32>} : memref<256x288xbf16, #tpu.memory_space<vmem>>, vector<256x32xbf16>,
    %c0_53 = arith.constant 0 : index
    %c0_54 = arith.constant 0 : index
    %49 = vector.load %arg7[%c0_53, %c0_54] : memref<256x288xbf16, #tpu.memory_space<vmem>>, vector<256x288xbf16>
    %c0_55 = arith.constant 0 : index
    %c0_56 = arith.constant 0 : index
    %50 = vector.load %arg3[%c0_55, %c0_56] : memref<288x128xbf16, #tpu.memory_space<vmem>>, vector<288x128xbf16>
    %cst_57 = arith.constant dense<0.000000e+00> : vector<256x128xf32>
    %51 = tpu.matmul %49, %50, %cst_57 {dimension_numbers = #tpu.dot_dimension_numbers<[1], [0], [0], [1], [0, 0, 1, 1], [], []>} : vector<256x288xbf16>, vector<288x128xbf16>, vector<256x128xf32> -> vector<256x128xf32>
    %c0_58 = arith.constant 0 : index
    %c0_59 = arith.constant 0 : index
    %52 = vector.load %arg4[%c0_58, %c0_59] : memref<1x128xf32, #tpu.memory_space<vmem>>, vector<1x128xf32>
    %53 = vector.broadcast %52 : vector<1x128xf32> to vector<256x128xf32>
    %54 = arith.addf %51, %53 : vector<256x128xf32>
    %cst_60 = arith.constant 0.000000e+00 : f32
    %55 = vector.broadcast %cst_60 : f32 to vector<256x128xf32>
    %56 = arith.maximumf %54, %55 : vector<256x128xf32>
    %57 = arith.truncf %56 : vector<256x128xf32> to vector<256x128xbf16>
    %c0_61 = arith.constant 0 : index
    %c0_62 = arith.constant 0 : index
    %c0_63 = arith.constant 0 : index
    %58 = vector.load %arg5[%c0_61, %c0_62, %c0_63] : memref<1x256x128xbf16, #tpu.memory_space<vmem>>, vector<1x256x128xbf16>
    %59 = vector.shape_cast %58 : vector<1x256x128xbf16> to vector<256x128xbf16>
    %60 = vector.shape_cast %57 : vector<256x128xbf16> to vector<1x256x128xbf16>
    tpu.vector_store %arg5[%c0_61, %c0_62, %c0_63], %60 {strides = array<i32>} : memref<1x256x128xbf16, #tpu.memory_space<vmem>>, vector<1x256x128xbf16>,
    return
  }
  func.func @transform_0(%arg0: i32, %arg1: i32) -> (i32, i32, i32, i32) {
    %c0_i32 = arith.constant 0 : i32
    %c0_i32_0 = arith.constant 0 : i32
    %c0_i32_1 = arith.constant 0 : i32
    %c0_i32_2 = arith.constant 0 : i32
    return %arg0, %c0_i32, %c0_i32_0, %c0_i32_1 : i32, i32, i32, i32
  }
  func.func @transform_1(%arg0: i32, %arg1: i32) -> (i32, i32) {
    %c0_i32 = arith.constant 0 : i32
    %c0_i32_0 = arith.constant 0 : i32
    %c0_i32_1 = arith.constant 0 : i32
    return %c0_i32, %c0_i32_0 : i32, i32
  }
  func.func @transform_2(%arg0: i32, %arg1: i32) -> (i32, i32) {
    %c0_i32 = arith.constant 0 : i32
    %c0_i32_0 = arith.constant 0 : i32
    %c0_i32_1 = arith.constant 0 : i32
    return %c0_i32, %c0_i32_0 : i32, i32
  }
  func.func @transform_3(%arg0: i32, %arg1: i32) -> (i32, i32, i32) {
    %c0_i32 = arith.constant 0 : i32
    %c0_i32_0 = arith.constant 0 : i32
    return %arg0, %arg1, %c0_i32 : i32, i32, i32
  }
}

</mosaic_0001>

<bundles_post_ra>
// kernel: tile.8
= control target key start
LH: loop header
LB: loop body
LE: loop exit
PB: predicated region body
PF: predicated region fallthrough
CT: control target
= control target key end

     0   :  { %s22_s0 = inlined_call_operand.vmem [shape: f32[32], index: 0, kind: input, shape index: {}]   ;;  %s23_s1 = inlined_call_operand.vmem [shape: f32[4,32], index: 1, kind: output, shape index: {}]  }
   0x1   :  { %v4_v0 = vld [vmem:[%s22_s0] ss:$0 sm:$0xff] }
   0x2   :  { %5 = vst [vmem:[%s23_s1] sm:$0xf] %v4_v0 }

// kernel: tile.9
= control target key start
LH: loop header
LB: loop body
LE: loop exit
PB: predicated region body
PF: predicated region fallthrough
CT: control target
= control target key end

     0   :  { %vm7_vm0 = vcmask 261120   ;;  %s37_s8 = smov 32   ;;  %s38_s9 = smov 64   ;;  %vm13_vm1 = vcmask 1048320   ;;  %vm19_vm2 = vcmask 785920   ;;  %vm25_vm3 = vcmask 523520   ;;  %s55_s0 = inlined_call_operand.vmem [shape: f32[4,32], index: 0, kind: input, shape index: {}]   ;;  %s56_s1 = inlined_call_operand.vmem [shape: f32[1,128], index: 1, kind: output, shape index: {}]  }
   0x1   :  { %v4_v0 = vld [vmem:[%s55_s0] sm:$0xf]  ;;  %s36_s0 = smov 96  }
   0x2   :  { %5 = vst [vmem:[#allocation1] sm:$0xf] %v4_v0 }
   0x9   :  { %v10_v1 = vld [vmem:[#allocation1 + $0x3] sm:$0x1]   ;;  %v22_v2 = vld [vmem:[#allocation1 + $0x1] sm:$0x1]   ;;  %v6_v3 = vld [vmem:[#allocation1] sm:$0x1]  }
   0xa   :  { %11 = vrot.lane.b32.xlu0 %v10_v1, %s36_s0  ;;  %23 = vrot.lane.b32.xlu1 %v22_v2, %s37_s8  ;;  %v16_v4 = vld [vmem:[#allocation1 + $0x2] sm:$0x1]   ;;  %8 = vst.msk [vmem:[#allocation0] sm:$0x1] %vm7_vm0, %v6_v3  }
   0xe   :  { %17 = vrot.lane.b32.xlu0 %v16_v4, %s38_s9 }
  0x7c   :  { %v12_v5 = vpop.permute.xlu0 %11   ;;  %v24_v6 = vpop.permute.xlu1 %23  }
  0x7d   :  { %14 = vst.msk [vmem:[#allocation0] sm:$0x1] %vm13_vm1, %v12_v5  }
  0x80   :  { %v18_v7 = vpop.permute.xlu0 %17  }
  0x81   :  { %20 = vst.msk [vmem:[#allocation0] sm:$0x1] %vm19_vm2, %v18_v7  }
  0x82   :  { %26 = vst.msk [vmem:[#allocation0] sm:$0x1] %vm25_vm3, %v24_v6  }
  0x89   :  { %v30_v8 = vld [vmem:[#allocation0] sm:$0x1] }
  0x8a   :  { %32 = vst [vmem:[%s56_s1] sm:$0x1] %v30_v8 }

// kernel: up_conv_forward.1
= control target key start
LH: loop header
LB: loop body
LE: loop exit
PB: predicated region body
PF: predicated region fallthrough
CT: control target
= control target key end

     0   :  { %s5491_s12 = smov 0   ;;  %s5493_s13 = smov 0   ;;  %s7049_s0 = inlined_call_operand.vmem [shape: bf16[2,16,16,32], index: 0, kind: input, shape index: {}]   ;;  %s7050_s1 = inlined_call_operand.vmem [shape: bf16[288,128], index: 1, kind: input, shape index: {}]   ;;  %s7051_s2 = inlined_call_operand.vmem [shape: f32[1,128], index: 2, kind: input, shape index: {}]   ;;  %s7052_s3 = inlined_call_operand.vmem [shape: bf16[2,256,128], index: 3, kind: output, shape index: {}]  }
   0x1   :  { %s5495_s14 = smov 0  }
   0x2 LB: > { %s25_s15 = sadd.s32 1, %s5461_s13  ;;  %p4768_p0 = scmp.ge.s32.totalorder %s5465_s14, 1  ;;  %s5465_s14 = sphi %s5495_s14, %s13_s14   ;;  %s5461_s13 = sphi %s5493_s13, %s7066_s13   ;;  %s5457_s12 = sphi %s5491_s12, %s7065_s12  }
   0x3   : > { %p27_p1 = scmp.ge.s32.totalorder %s25_s15, 2  ;;  %p151_p2 = scmp.lt.s32.totalorder %s5465_s14, 3 }
   0x5   : > { %s7068_s15 = smov (%p27_p1, %s25_s15), 0  ;;  %p152_p3 = pnand %p4768_p0, %p151_p2 }
   0x6   : > { %p179_p4 = scmp.lt.s32.totalorder (!%p152_p3), %s5457_s12, 1  ;;  %vm196_vm0 = vcmask (!%p152_p3), 253952   ;;  %vm197_vm1 = vsmask.f32 (!%p152_p3), 256  ;;  %v241_v0 = vld [vmem:[#allocation2 + $0xa8] sm:$0x1] (!%p152_p3) }
   0x7   : > { %155 = sbr.rel (%p152_p3) target bundleno = 677 (0x2a5), region = 32  ;;  %vm5510_vm2 = vmand (!%p152_p3), %vm196_vm0, %vm197_vm1  ;;  %vm253_vm3 = vsmask.f32 (!%p152_p3), 7938  ;;  %v205_v4 = vld [vmem:[#allocation2 + $0x18] sm:$0x1] (!%p152_p3)  ;;  %vm667_vm6 = vcmask (!%p152_p3), 257024  }
   0x8   : > { %v242_v2 = vsel (!%p152_p3), %vm5510_vm2, 0, %v241_v0  ;;  %vm5519_vm4 = vmand (!%p152_p3), %vm196_vm0, %vm253_vm3  ;;  %v208_v5 = vld [vmem:[#allocation2 + $0x24] sm:$0x1] (!%p152_p3)  ;;  %v206_v6 = vsel (!%p152_p3), %vm5510_vm2, 0, %v205_v4  ;;  %v202_v8 = vld [vmem:[#allocation2 + $0xc] sm:$0x1] (!%p152_p3) }
   0x9   : > { %243 = vst [vmem:[#allocation2 + $0xa8] sm:$0x1] (!%p152_p3), %v242_v2  ;;  %v209_v7 = vsel (!%p152_p3), %vm5510_vm2, 0, %v208_v5  ;;  %207 = vst [vmem:[#allocation2 + $0x18] sm:$0x1] (!%p152_p3), %v206_v6  ;;  %v203_v9 = vsel (!%p152_p3), %vm5510_vm2, 0, %v202_v8 }
   0xa   : > { %210 = vst [vmem:[#allocation2 + $0x24] sm:$0x1] (!%p152_p3), %v209_v7  ;;  %v258_v10 = vld [vmem:[#allocation2 + $0x14] sm:$0x1] (!%p152_p3)  ;;  %vm344_vm5 = vsmask.f32 (!%p152_p3), 4368  ;;  %vm5557_vm8 = vmand (!%p152_p3), %vm667_vm6, %vm253_vm3 }
   0xb   : > { %204 = vst [vmem:[#allocation2 + $0xc] sm:$0x1] (!%p152_p3), %v203_v9  ;;  %v259_v11 = vsel (!%p152_p3), %vm5519_vm4, 0, %v258_v10  ;;  %v5467_v15 = vmov (!%p152_p3), 0   ;;  %vm5548_vm7 = vmor (!%p152_p3), %vm197_vm1, %vm344_vm5  ;;  %v238_v51 = vld [vmem:[#allocation2 + $0x9c] sm:$0x1] (!%p152_p3) }
   0xc   : > { %260 = vst [vmem:[#allocation2 + $0x14] sm:$0x1] (!%p152_p3), %v259_v11  ;;  %826 = vst.msk [vmem:[#allocation2 + $0x4] sm:$0xf] (!%p152_p3), %vm667_vm6, %v5467_v15  ;;  %v294_v62 = vld [vmem:[#allocation2 + $0xa4] sm:$0x1] (!%p152_p3) }
   0xd   : > { %875 = vst.msk [vmem:[#allocation2 + $0xd0] sm:$0xf] (!%p152_p3), %vm667_vm6, %v5467_v15  ;;  %v239_v4 = vsel (!%p152_p3), %vm5510_vm2, 0, %v238_v51  ;;  %v261_v5 = vld [vmem:[#allocation2 + $0x20] sm:$0x1] (!%p152_p3)  ;;  %vm1668_vm9 = vcmask (!%p152_p3), 1042432  }
   0xe   : > { %s7070_s12 = smov (!%p179_p4, %s5457_s12), 1  ;;  %240 = vst [vmem:[#allocation2 + $0x9c] sm:$0x1] %v239_v4  ;;  %vm1669_vm10 = vcmask 1046532   ;;  %s5468_s20 = smov 64   ;;  %vm1007_vm15 = vcmask 261120  }
   0xf   : > { %s5038_s16 = sshll.u32 %s7070_s12, 7  ;;  %vm5626_vm11 = vmor %vm1668_vm9, %vm1669_vm10  ;;  %v291_v4 = vld [vmem:[#allocation2 + $0x98] sm:$0x1]  ;;  %s5469_s21 = smov 96   ;;  %vm1072_vm12 = vsmask.f32 3328 }
  0x10   : > { %s5535_s19 = scalar_lea.vmem %s7049_s0, %s5038_s16  ;;  %v761_v32 = vld [vmem:[#allocation2 + $0xa8] sm:$0xf]  ;;  %v677_v40 = vld [vmem:[#allocation2 + $0x18] sm:$0xf]  ;;  %vm1073_vm13 = vsmask.f32 7440  ;;  %s6968_s23 = scalar_lea.vmem %s7052_s3, %s5038_s16 }
  0x11   : > { %v338_v12 = vld [vmem:[%s5535_s19 + $0x68] sm:$0xf]  ;;  %v339_v13 = vld [vmem:[%s5535_s19 + $0x6c] sm:$0xf]  ;;  %v316_v25 = vld [vmem:[%s5535_s19 + $0x10] sm:$0xf] }
  0x12   : > { %v314_v14 = vld [vmem:[%s5535_s19 + $0x8] sm:$0xf]  ;;  %v568_v16 = vshrl.u32 %v338_v12, 16  ;;  %v571_v17 = vshll.u32 %v338_v12, 16  ;;  %v576_v18 = vshrl.u32 %v339_v13, 16  ;;  %v579_v19 = vshll.u32 %v339_v13, 16  ;;  %vm5682_vm14 = vmor %vm1072_vm12, %vm1073_vm13 }
  0x13   : > { %v315_v20 = vld [vmem:[%s5535_s19 + $0xc] sm:$0xf]  ;;  %v364_v21 = vshrl.u32 %v314_v14, 16  ;;  %v367_v22 = vshll.u32 %v314_v14, 16  ;;  %v317_v29 = vld [vmem:[%s5535_s19 + $0x14] sm:$0xf] }
  0x14   : > { %v372_v23 = vshrl.u32 %v315_v20, 16  ;;  %v375_v24 = vshll.u32 %v315_v20, 16  ;;  %v570_v27 = vrot.slane %v568_v16, 7  ;;  %v5552_v28 = vrot.slane %v576_v18, 7  ;;  %v312_v45 = vld [vmem:[%s5535_s19] sm:$0xf] }
  0x15   : > { %v381_v30 = vshrl.u32 %v316_v25, 16  ;;  %v366_v33 = vrot.slane %v364_v21, 7  ;;  %v384_v35 = vshll.u32 %v316_v25, 16  ;;  %v389_v36 = vshrl.u32 %v317_v29, 16  ;;  %v313_v50 = vld [vmem:[%s5535_s19 + $0x4] sm:$0xf] }
  0x16   : > { %v5561_v34 = vrot.slane %v372_v23, 7  ;;  %v573_v37 = vor.u32 %v571_v17, %v570_v27  ;;  %v574_v38 = vrot.slane %v570_v27, 4  ;;  %v581_v39 = vor.u32 %v579_v19, %v5552_v28  ;;  %v684_v54 = vld [vmem:[#allocation2 + $0x24] sm:$0xf]  ;;  %v336_v57 = vld [vmem:[%s5535_s19 + $0x60] sm:$0xf] }
  0x17   : > { %v392_v41 = vshll.u32 %v317_v29, 16  ;;  %v369_v42 = vor.u32 %v367_v22, %v366_v33  ;;  %v370_v43 = vrot.slane %v366_v33, 4  ;;  %v383_v48 = vrot.slane %v381_v30, 7  ;;  %v337_v61 = vld [vmem:[%s5535_s19 + $0x64] sm:$0xf]  ;;  %s5470_s22 = smov 32  }
  0x18   : > { %v377_v44 = vor.u32 %v375_v24, %v5561_v34  ;;  %v582_v46 = vsel %vm5548_vm7, %v574_v38, %v581_v39  ;;  %v762_v47 = vsel %vm5557_vm8, %v573_v37, %v761_v32  ;;  %v5570_v49 = vrot.slane %v389_v36, 7  ;;  %v669_v8 = vld [vmem:[#allocation2 + $0xc] sm:$0xf]  ;;  %v674_v15 = vld [vmem:[#allocation2 + $0x14] sm:$0x1] }
  0x19   : > { %763 = vst [vmem:[#allocation2 + $0xa8] sm:$0xf] %v762_v47  ;;  %764 = vst.msk [vmem:[#allocation2 + $0xac] sm:$0xf] %vm667_vm6, %v582_v46  ;;  %v678_v53 = vsel %vm5557_vm8, %v369_v42, %v677_v40  ;;  %v347_v55 = vshrl.u32 %v312_v45, 16  ;;  %v350_v56 = vshll.u32 %v312_v45, 16  ;;  %v386_v58 = vor.u32 %v384_v35, %v383_v48 }
  0x1a   : > { %v378_v52 = vsel %vm5548_vm7, %v370_v43, %v377_v44  ;;  %679 = vst [vmem:[#allocation2 + $0x18] sm:$0xf] %v678_v53  ;;  %v387_v59 = vrot.slane %v383_v48, 4  ;;  %v394_v60 = vor.u32 %v392_v41, %v5570_v49  ;;  %v355_v0 = vshrl.u32 %v313_v50, 16  ;;  %v199_v24 = vld [vmem:[#allocation2] sm:$0x1] }
  0x1b   : > { %680 = vst.msk [vmem:[#allocation2 + $0x1c] sm:$0xf] %vm667_vm6, %v378_v52  ;;  %v349_v63 = vrot.slane %v347_v55, 7  ;;  %v358_v2 = vshll.u32 %v313_v50, 16  ;;  %v685_v7 = vsel %vm5557_vm8, %v386_v58, %v684_v54  ;;  %v551_v9 = vshrl.u32 %v336_v57, 16 }
  0x1c   : > { %v395_v6 = vsel %vm5548_vm7, %v387_v59, %v394_v60  ;;  %v554_v10 = vshll.u32 %v336_v57, 16  ;;  %686 = vst [vmem:[#allocation2 + $0x24] sm:$0xf] %v685_v7  ;;  %v357_v13 = vrot.slane %v355_v0, 7  ;;  %v559_v14 = vshrl.u32 %v337_v61, 16 }
  0x1d   : > { %687 = vst.msk [vmem:[#allocation2 + $0x28] sm:$0xf] %vm667_vm6, %v395_v6  ;;  %v352_v11 = vor.u32 %v350_v56, %v349_v63  ;;  %v353_v12 = vrot.slane %v349_v63, 4  ;;  %v553_v16 = vrot.slane %v551_v9, 7  ;;  %v562_v17 = vshll.u32 %v337_v61, 16 }
  0x1e   : > { %v295_v18 = vsel %vm5519_vm4, 0, %v294_v62  ;;  %v262_v19 = vsel %vm5519_vm4, 0, %v261_v5  ;;  %v360_v20 = vor.u32 %v358_v2, %v357_v13  ;;  %v362_v21 = vrot.slane %v357_v13, 4  ;;  %v255_v30 = vld [vmem:[#allocation2 + $0x8] sm:$0x1] }
  0x1f   : > { %v670_v22 = vsel %vm5557_vm8, %v352_v11, %v669_v8  ;;  %v561_v23 = vrot.slane %v559_v14, 7  ;;  %296 = vst [vmem:[#allocation2 + $0xa4] sm:$0x1] %v295_v18  ;;  %263 = vst [vmem:[#allocation2 + $0x20] sm:$0x1] %v262_v19  ;;  %v556_v27 = vor.u32 %v554_v10, %v553_v16  ;;  %v557_v29 = vrot.slane %v553_v16, 4 }
  0x20   : > { %v5377_v25 = vld [vmem:[#allocation2 + $0xa8] sm:$0xff]   ;;  %671 = vst [vmem:[#allocation2 + $0xc] sm:$0xf] %v670_v22  ;;  %v5595_v32 = vld [vmem:[#allocation2 + $0x4] sm:$0xf]  ;;  %v379_v33 = vrot.slane %v5561_v34, 4  ;;  %v361_v36 = vsel %vm5548_vm7, %v353_v12, %v360_v20  ;;  %v675_v37 = vsel %vm5510_vm2, %v362_v21, %v674_v15 }
  0x21   : > { %v564_v38 = vor.u32 %v562_v17, %v561_v23  ;;  %3042 = vrot.lane.b32.xlu0 %v5377_v25, %s5468_s20  ;;  %673 = vst.msk [vmem:[#allocation2 + $0x10] sm:$0xf] %vm667_vm6, %v361_v36  ;;  %676 = vst [vmem:[#allocation2 + $0x14] sm:$0x1] %v675_v37  ;;  %v566_v39 = vrot.slane %v561_v23, 4  ;;  %v200_v40 = vsel %vm5510_vm2, 0, %v199_v24 }
  0x22   : > { %v5378_v35 = vld [vmem:[#allocation2 + $0x18] sm:$0xff]   ;;  %201 = vst [vmem:[#allocation2] sm:$0x1] %v200_v40  ;;  %v583_v44 = vrot.slane %v5552_v28, 4  ;;  %v396_v47 = vrot.slane %v5570_v49, 4  ;;  %v256_v50 = vsel %vm5519_vm4, 0, %v255_v30 }
  0x23   : > { %3018 = vrot.lane.b32.xlu1 %v5378_v35, %s5468_s20  ;;  %v565_v34 = vsel %vm5548_vm7, %v557_v29, %v564_v38  ;;  %v754_v41 = vld [vmem:[#allocation2 + $0x9c] sm:$0xf]  ;;  %v2588_v42 = vld [vmem:[#allocation2 + $0x18] sm:$0xe]  ;;  %v1673_v51 = vrot.slane %v5595_v32, 5  ;;  %vm1555_vm0 = vcmask 523520  }
  0x24   : > { %v2589_v43 = vld [vmem:[#allocation2 + $0x1c] sm:$0xf]  ;;  %v5379_v45 = vld [vmem:[#allocation2 + $0x24] sm:$0xff]   ;;  %v755_v46 = vsel %vm5557_vm8, %v556_v27, %v754_v41  ;;  %757 = vst.msk [vmem:[#allocation2 + $0xa0] sm:$0xf] %vm667_vm6, %v565_v34  ;;  %v4874_v59 = vrot.slane %v2588_v42, 9 }
  0x25   : > { %756 = vst [vmem:[#allocation2 + $0x9c] sm:$0xf] %v755_v46  ;;  %v2690_v48 = vrot.slane %v2589_v43, 5  ;;  %v1025_v52 = vld [vmem:[#allocation2 + $0x4] sm:$0xf]  ;;  %3020 = vrot.lane.b32.xlu0 %v5379_v45, %s5468_s20  ;;  %v5632_v63 = vrot.slane %v1673_v51, 4 }
  0x26   : > { %v758_v53 = vld [vmem:[#allocation2 + $0xa4] sm:$0x1]  ;;  %v681_v54 = vld [vmem:[#allocation2 + $0x20] sm:$0x1]  ;;  %257 = vst [vmem:[#allocation2 + $0x8] sm:$0x1] %v256_v50 }
  0x27   : > { %v235_v55 = vld [vmem:[#allocation2 + $0x90] sm:$0x1]  ;;  %v2585_v56 = vld [vmem:[#allocation2 + $0xc] sm:$0xe]  ;;  %v759_v57 = vsel %vm5510_vm2, %v566_v39, %v758_v53  ;;  %v682_v58 = vsel %vm5510_vm2, %v379_v33, %v681_v54  ;;  %v5622_v60 = vrot.slane %v2690_v48, 4  ;;  %v1085_v0 = vshll.u32 %v1025_v52, 16 }
  0x28   : > { %v4873_v62 = vrot.slane %v2585_v56, 9  ;;  %760 = vst [vmem:[#allocation2 + $0xa4] sm:$0x1] %v759_v57  ;;  %683 = vst [vmem:[#allocation2 + $0x20] sm:$0x1] %v682_v58  ;;  %v1089_v2 = vshrl.u32 %v1025_v52, 16  ;;  %v5647_v21 = vsel %vm5626_vm11, %v4874_v59, %v2690_v48 }
  0x29   : > { %v5380_v5 = vld [vmem:[#allocation2 + $0xc] sm:$0xff]   ;;  %v236_v7 = vsel %vm5510_vm2, 0, %v235_v55  ;;  %v334_v8 = vld [vmem:[%s5535_s19 + $0x58] sm:$0xf]  ;;  %v2587_v9 = vld [vmem:[#allocation2 + $0x14] sm:$0x1] }
  0x2a   : > { %v2586_v6 = vld [vmem:[#allocation2 + $0x10] sm:$0xf]  ;;  %v823_v11 = vld [vmem:[#allocation2] sm:$0xf]  ;;  %v5637_v12 = vrot.slane %v1085_v0, 5  ;;  %2008 = vrot.lane.b32.xlu1 %v5380_v5, %s5469_s21  ;;  %v2686_v13 = vrot.slane %v2587_v9, 5 }
  0x2b   : > { %v2683_v10 = vrot.slane %v2586_v6, 5  ;;  %237 = vst [vmem:[#allocation2 + $0x90] sm:$0x1] %v236_v7  ;;  %v2622_v14 = vld [vmem:[#allocation2 + $0xa0] sm:$0xf]  ;;  %v824_v15 = vsel %vm5557_vm8, 0, %v823_v11 }
  0x2c   : > { %v335_v16 = vld [vmem:[%s5535_s19 + $0x5c] sm:$0xf]  ;;  %825 = vst [vmem:[#allocation2] sm:$0xf] %v824_v15  ;;  %v2767_v23 = vrot.slane %v2622_v14, 5  ;;  %v1091_v25 = vrot.slane %v1089_v2, 4 }
  0x2d   : > { %v2684_v17 = vsel %vm5626_vm11, %v4873_v62, %v2683_v10  ;;  %v2685_v18 = vrot.slane %v2683_v10, 4  ;;  %v5381_v19 = vld [vmem:[#allocation2 + $0x9c] sm:$0xff]   ;;  %v827_v24 = vld [vmem:[#allocation2 + $0x8] sm:$0x1]  ;;  %v292_v27 = vsel %vm5519_vm4, 0, %v291_v4  ;;  %v534_v33 = vshrl.u32 %v334_v8, 16 }
  0x2e   : > { %v2621_v20 = vld [vmem:[#allocation2 + $0x9c] sm:$0xe]  ;;  %v828_v30 = vsel %vm5510_vm2, 0, %v827_v24  ;;  %293 = vst [vmem:[#allocation2 + $0x98] sm:$0x1] %v292_v27  ;;  %v537_v35 = vshll.u32 %v334_v8, 16  ;;  %2032 = vrot.lane.b32.xlu1 %v5381_v19, %s5469_s21  ;;  %v1092_v42 = vor.u32 %v1091_v25, %v5637_v12 }
  0x2f   : > { %v4885_v22 = vrot.slane %v2621_v20, 9  ;;  %v2687_v29 = vsel %vm5626_vm11, %v2685_v18, %v2686_v13  ;;  %v3082_v36 = vld [vmem:[#allocation2 + $0x18] sm:$0xf]  ;;  %v2623_v38 = vld [vmem:[#allocation2 + $0xa4] sm:$0x1]  ;;  %v2769_v40 = vrot.slane %v2767_v23, 4 }
  0x30   : > { %v4889_v37 = vcombine.low %v2684_v17, %v2687_v29  ;;  %v5382_v34 = vld [vmem:[#allocation2 + $0x18] sm:$0xff]   ;;  %v2590_v41 = vld [vmem:[#allocation2 + $0x20] sm:$0x1]  ;;  %829 = vst [vmem:[#allocation2 + $0x8] sm:$0x1] %v828_v30  ;;  %v2770_v43 = vrot.slane %v2623_v38, 5 }
  0x31   : > { %v2768_v39 = vsel %vm5626_vm11, %v4885_v22, %v2767_v23  ;;  %v2693_v45 = vrot.slane %v2590_v41, 5  ;;  %v536_v46 = vrot.slane %v534_v33, 7  ;;  %v542_v48 = vshrl.u32 %v335_v16, 16  ;;  %v3083_v62 = vld [vmem:[#allocation2 + $0x1c] sm:$0xf] }
  0x32   : > { %2841 = vrot.lane.b32.xlu0 %v4889_v37, %s5470_s22  ;;  %v5660_v50 = vrot.slane %v1092_v42, 4  ;;  %v545_v52 = vshll.u32 %v335_v16, 16  ;;  %v747_v53 = vld [vmem:[#allocation2 + $0x90] sm:$0xf]  ;;  %v3131_v54 = vshrl.u32 %v3082_v36, 16  ;;  %v3134_v55 = vshll.u32 %v3082_v36, 16  ;;  %2010 = vrot.lane.b32.xlu1 %v5382_v34, %s5469_s21 }
  0x33   : > { %v2771_v56 = vsel %vm5626_vm11, %v2769_v40, %v2770_v43  ;;  %v2694_v57 = vsel %vm5626_vm11, %v5622_v60, %v2693_v45  ;;  %v539_v58 = vor.u32 %v537_v35, %v536_v46  ;;  %v540_v59 = vrot.slane %v536_v46, 4  ;;  %v1572_v4 = vld [vmem:[#allocation2] sm:$0xe]  ;;  %v3084_v13 = vld [vmem:[#allocation2 + $0x20] sm:$0x1] }
  0x34   : > { %v4901_v0 = vcombine.low %v2768_v39, %v2771_v56  ;;  %v4890_v2 = vcombine.low %v5647_v21, %v2694_v57  ;;  %v1024_v5 = vld [vmem:[#allocation2] sm:$0xf]  ;;  %v544_v6 = vrot.slane %v542_v48, 7  ;;  %v3133_v7 = vrot.slane %v3131_v54, 4  ;;  %v1575_v35 = vld [vmem:[#allocation2 + $0xc] sm:$0xe] }
  0x35   : > { %v4809_v8 = vrot.slane %v1572_v4, 9  ;;  %v1076_v9 = vshrl.u32 %v1024_v5, 16  ;;  %v1079_v10 = vshll.u32 %v1024_v5, 16  ;;  %v748_v11 = vsel %vm5557_vm8, %v539_v58, %v747_v53  ;;  %v751_v15 = vld [vmem:[#allocation2 + $0x98] sm:$0x1] }
  0x36   : > { %2865 = vrot.lane.b32.xlu0 %v4901_v0, %s5470_s22  ;;  %v547_v60 = vor.u32 %v545_v52, %v544_v6  ;;  %v549_v14 = vrot.slane %v544_v6, 4  ;;  %749 = vst [vmem:[#allocation2 + $0x90] sm:$0xf] %v748_v11  ;;  %v3136_v16 = vrot.slane %v3134_v55, 5  ;;  %v3140_v17 = vshll.u32 %v3083_v62, 16 }
  0x37   : > { %v1574_v18 = vld [vmem:[#allocation2 + $0x8] sm:$0x1]  ;;  %v1674_v19 = vsel %vm5626_vm11, %v4809_v8, %v1673_v51  ;;  %v1078_v21 = vrot.slane %v1076_v9, 4  ;;  %v1081_v22 = vrot.slane %v1079_v10, 5  ;;  %v3144_v33 = vshrl.u32 %v3083_v62, 16 }
  0x38   : > { %v1026_v20 = vld [vmem:[#allocation2 + $0x8] sm:$0x1]  ;;  %v1676_v23 = vrot.slane %v1574_v18, 5  ;;  %v548_v25 = vsel %vm5548_vm7, %v540_v59, %v547_v60  ;;  %v752_v27 = vsel %vm5510_vm2, %v549_v14, %v751_v15  ;;  %v3137_v51 = vor.u32 %v3136_v16, %v3133_v7  ;;  %v1576_v36 = vld [vmem:[#allocation2 + $0x10] sm:$0xf] }
  0x39   : > { %v1095_v24 = vshll.u32 %v1026_v20, 16  ;;  %v1082_v32 = vor.u32 %v1081_v22, %v1078_v21  ;;  %750 = vst.msk [vmem:[#allocation2 + $0x94] sm:$0xf] %vm667_vm6, %v548_v25  ;;  %753 = vst [vmem:[#allocation2 + $0x98] sm:$0x1] %v752_v27  ;;  %v3142_v30 = vrot.slane %v3140_v17, 5 }
  0x3a   : > { %2843 = vrot.lane.b32.xlu0 %v4890_v2, %s5470_s22  ;;  %v1677_v37 = vsel %vm5626_vm11, %v5632_v63, %v1676_v23  ;;  %v3150_v39 = vshll.u32 %v3084_v13, 16  ;;  %v1577_v40 = vld [vmem:[#allocation2 + $0x14] sm:$0x1]  ;;  %v297_v34 = vld [vmem:[#allocation2 + $0xb0] sm:$0x1]  ;;  %v3138_v43 = vrot.slane %v3137_v51, 4 }
  0x3b   : > { %v1097_v38 = vrot.slane %v1095_v24, 5  ;;  %v4825_v41 = vcombine.low %v1674_v19, %v1677_v37  ;;  %v1083_v42 = vrot.slane %v1082_v32, 4  ;;  %v3146_v45 = vrot.slane %v3144_v33, 4  ;;  %v3118_v46 = vld [vmem:[#allocation2 + $0xa8] sm:$0xf] }
  0x3c   : > { %v3152_v52 = vrot.slane %v3150_v39, 5  ;;  %v4810_v53 = vrot.slane %v1575_v35, 9  ;;  %v1680_v54 = vrot.slane %v1576_v36, 5  ;;  %v3119_v55 = vld [vmem:[#allocation2 + $0xac] sm:$0xf]  ;;  %v1683_v58 = vrot.slane %v1577_v40, 5 }
  0x3d   : > { %v1098_v48 = vsel %vm5682_vm14, %v5660_v50, %v1097_v38  ;;  %1831 = vrot.lane.b32.xlu1 %v4825_v41, %s5468_s20  ;;  %v1088_v63 = vsel %vm5682_vm14, %v1083_v42, %v5637_v12  ;;  %v1608_v56 = vld [vmem:[#allocation2 + $0x90] sm:$0xe]  ;;  %v3147_v57 = vor.u32 %v3146_v45, %v3142_v30  ;;  %v298_v59 = vsel %vm5519_vm4, 0, %v297_v34  ;;  %v264_v18 = vld [vmem:[#allocation2 + $0x2c] sm:$0x1] }
  0x3e   : > { %v1060_v62 = vld [vmem:[#allocation2 + $0x90] sm:$0xf]  ;;  %v4793_v0 = vcombine.low %v1088_v63, %v1098_v48  ;;  %v4821_v2 = vrot.slane %v1608_v56, 9  ;;  %v3143_v50 = vsel %vm5682_vm14, %v3138_v43, %v3142_v30  ;;  %v1682_v4 = vrot.slane %v1680_v54, 4  ;;  %299 = vst [vmem:[#allocation2 + $0xb0] sm:$0x1] %v298_v59 }
  0x3f   : > { %v3148_v5 = vrot.slane %v3147_v57, 4  ;;  %v3419_v6 = vshrl.u32 %v3118_v46, 16  ;;  %v3422_v7 = vshll.u32 %v3118_v46, 16  ;;  %v3428_v8 = vshll.u32 %v3119_v55, 16  ;;  %v3085_v34 = vld [vmem:[#allocation2 + $0x24] sm:$0xf] }
  0x40   : > { %1507 = vrot.lane.b32.xlu0 %v4793_v0, %s5470_s22  ;;  %v1609_v12 = vld [vmem:[#allocation2 + $0x94] sm:$0xf]  ;;  %v1610_v9 = vld [vmem:[#allocation2 + $0x98] sm:$0x1]  ;;  %v1681_v10 = vsel %vm5626_vm11, %v4810_v53, %v1680_v54  ;;  %v3432_v11 = vshrl.u32 %v3119_v55, 16  ;;  %v1364_v13 = vshrl.u32 %v1060_v62, 16  ;;  %v1684_v16 = vsel %vm5626_vm11, %v1682_v4, %v1683_v58 }
  0x41   : > { %v1757_v60 = vrot.slane %v1609_v12, 5  ;;  %v1760_v14 = vrot.slane %v1610_v9, 5  ;;  %v3153_v15 = vsel %vm5682_vm14, %v3148_v5, %v3152_v52  ;;  %v1061_v17 = vld [vmem:[#allocation2 + $0x94] sm:$0xf]  ;;  %v3421_v20 = vrot.slane %v3419_v6, 4 }
  0x42   : > { %v4921_v19 = vcombine.low %v3143_v50, %v3153_v15  ;;  %v3424_v21 = vrot.slane %v3422_v7, 5  ;;  %v5709_v22 = vrot.slane %v3428_v8, 5  ;;  %v1062_v23 = vld [vmem:[#allocation2 + $0x98] sm:$0x1]  ;;  %v3434_v27 = vrot.slane %v3432_v11, 4 }
  0x43   : > { %v1758_v24 = vsel %vm5626_vm11, %v4821_v2, %v1757_v60  ;;  %v1759_v25 = vrot.slane %v1757_v60, 4  ;;  %v1366_v32 = vrot.slane %v1364_v13, 4  ;;  %v1367_v30 = vshll.u32 %v1060_v62, 16  ;;  %v3086_v46 = vld [vmem:[#allocation2 + $0x28] sm:$0xf] }
  0x44   : > { %3562 = vrot.lane.b32.xlu0 %v4921_v19, %s5469_s21  ;;  %v3425_v51 = vor.u32 %v3424_v21, %v3421_v20  ;;  %v1373_v33 = vshll.u32 %v1061_v17, 16  ;;  %v1377_v35 = vshrl.u32 %v1061_v17, 16  ;;  %v3435_v38 = vor.u32 %v3434_v27, %v5709_v22  ;;  %v1027_v48 = vld [vmem:[#allocation2 + $0xc] sm:$0xf]  ;;  %v1028_v62 = vld [vmem:[#allocation2 + $0x10] sm:$0xf] }
  0x45   : > { %v1761_v36 = vsel %vm5626_vm11, %v1759_v25, %v1760_v14  ;;  %v765_v37 = vld [vmem:[#allocation2 + $0xb0] sm:$0x1]  ;;  %v1383_v39 = vshll.u32 %v1062_v23, 16  ;;  %v265_v40 = vsel %vm5519_vm4, 0, %v264_v18  ;;  %v4826_v42 = vcombine.low %v1681_v10, %v1684_v16  ;;  %v1029_v5 = vld [vmem:[#allocation2 + $0x14] sm:$0x1] }
  0x46   : > { %v4837_v41 = vcombine.low %v1758_v24, %v1761_v36  ;;  %v766_v43 = vsel %vm5510_vm2, %v583_v44, %v765_v37  ;;  %v1369_v45 = vrot.slane %v1367_v30, 5  ;;  %266 = vst [vmem:[#allocation2 + $0x2c] sm:$0x1] %v265_v40  ;;  %v5723_v52 = vrot.slane %v3425_v51, 4  ;;  %v2624_v10 = vld [vmem:[#allocation2 + $0xa8] sm:$0xe] }
  0x47   : > { %767 = vst [vmem:[#allocation2 + $0xb0] sm:$0x1] %v766_v43  ;;  %v5725_v53 = vrot.slane %v3435_v38, 4  ;;  %v1375_v54 = vrot.slane %v1373_v33, 5  ;;  %v1379_v55 = vrot.slane %v1377_v35, 4  ;;  %v1385_v56 = vrot.slane %v1383_v39, 5 }
  0x48   : > { %1855 = vrot.lane.b32.xlu1 %v4837_v41, %s5468_s20  ;;  %v1370_v63 = vor.u32 %v1369_v45, %v1366_v32  ;;  %v3155_v57 = vshrl.u32 %v3085_v34, 16  ;;  %v3158_v28 = vshll.u32 %v3085_v34, 16  ;;  %v3164_v59 = vshll.u32 %v3086_v46, 16  ;;  %v2625_v15 = vld [vmem:[#allocation2 + $0xac] sm:$0xf] }
  0x49   : > { %v1380_v58 = vor.u32 %v1379_v55, %v1375_v54  ;;  %v3168_v44 = vshrl.u32 %v3086_v46, 16  ;;  %v1100_v0 = vshrl.u32 %v1027_v48, 16  ;;  %v1103_v6 = vshll.u32 %v1027_v48, 16  ;;  %v1063_v21 = vld [vmem:[#allocation2 + $0x9c] sm:$0xf] }
  0x4a   : > { %v1371_v2 = vrot.slane %v1370_v63, 4  ;;  %v3157_v50 = vrot.slane %v3155_v57, 4  ;;  %v3160_v4 = vrot.slane %v3158_v28, 5  ;;  %v5728_v8 = vrot.slane %v3164_v59, 5  ;;  %v1064_v51 = vld [vmem:[#allocation2 + $0xa0] sm:$0xf] }
  0x4b   : > { %v1381_v7 = vrot.slane %v1380_v58, 4  ;;  %v3170_v12 = vrot.slane %v3168_v44, 4  ;;  %v1102_v9 = vrot.slane %v1100_v0, 4  ;;  %v1105_v60 = vrot.slane %v1103_v6, 5  ;;  %v1065_v45 = vld [vmem:[#allocation2 + $0xa4] sm:$0x1] }
  0x4c   : > { %1833 = vrot.lane.b32.xlu1 %v4826_v42, %s5468_s20  ;;  %v1376_v11 = vsel %vm5682_vm14, %v1371_v2, %v1375_v54  ;;  %v3161_v13 = vor.u32 %v3160_v4, %v3157_v50  ;;  %v1109_v14 = vshll.u32 %v1028_v62, 16  ;;  %v1113_v19 = vshrl.u32 %v1028_v62, 16  ;;  %v244_v57 = vld [vmem:[#allocation2 + $0xb4] sm:$0x1]  ;;  %v340_v62 = vld [vmem:[%s5535_s19 + $0x70] sm:$0xf] }
  0x4d   : > { %v1386_v16 = vsel %vm5682_vm14, %v1381_v7, %v1385_v56  ;;  %v688_v17 = vld [vmem:[#allocation2 + $0x2c] sm:$0x1]  ;;  %v3171_v18 = vor.u32 %v3170_v12, %v5728_v8  ;;  %v1119_v20 = vshll.u32 %v1029_v5, 16  ;;  %v1106_v32 = vor.u32 %v1105_v60, %v1102_v9  ;;  %v341_v0 = vld [vmem:[%s5535_s19 + $0x74] sm:$0xf] }
  0x4e   : > { %v3120_v23 = vld [vmem:[#allocation2 + $0xb0] sm:$0x1]  ;;  %v4805_v24 = vcombine.low %v1376_v11, %v1386_v16  ;;  %v689_v25 = vsel %vm5510_vm2, %v396_v47, %v688_v17  ;;  %v5740_v27 = vrot.slane %v3161_v13, 4  ;;  %v3431_v30 = vsel %vm5682_vm14, %v5723_v52, %v5709_v22  ;;  %v5396_v22 = vld [vmem:[%s7050_s1 + $0x40] sm:$0xff]   ;;  %v1611_v5 = vld [vmem:[#allocation2 + $0x9c] sm:$0xe] }
  0x4f   : > { %v3438_v33 = vshll.u32 %v3120_v23, 16  ;;  %690 = vst [vmem:[#allocation2 + $0x2c] sm:$0x1] %v689_v25  ;;  %v1111_v35 = vrot.slane %v1109_v14, 5  ;;  %v1115_v36 = vrot.slane %v1113_v19, 4  ;;  %v5751_v47 = vrot.slane %v3171_v18, 4  ;;  %5167 = vmatprep.subr.bf16.mxu0 %v5396_v22  ;;  %5333 = vmatprep.subr.bf16.mxu1 %v5396_v22 }
  0x50   : > { %v2626_v37 = vld [vmem:[#allocation2 + $0xb0] sm:$0x1]  ;;  %1531 = vrot.lane.b32.xlu1 %v4805_v24, %s5470_s22  ;;  %v3167_v49 = vsel %vm5682_vm14, %v5740_v27, %v5728_v8  ;;  %v1107_v38 = vrot.slane %v1106_v32, 4  ;;  %v4886_v39 = vrot.slane %v2624_v10, 9  ;;  %v1121_v41 = vrot.slane %v1119_v20, 5  ;;  %v5397_v13 = vld [vmem:[%s7050_s1] sm:$0xff]  }
  0x51   : > { %v3440_v40 = vrot.slane %v3438_v33, 5  ;;  %v1116_v34 = vor.u32 %v1115_v36, %v1111_v35  ;;  %v2774_v42 = vrot.slane %v2625_v15, 5  ;;  %v2777_v43 = vrot.slane %v2626_v37, 5  ;;  %v1612_v11 = vld [vmem:[#allocation2 + $0xa0] sm:$0xf]  ;;  %5168 = vmatpush3.bf16.msra.mxu0 %v5397_v13  ;;  %5341 = vmatpush3.bf16.msra.mxu1 %v5397_v13 }
  0x52   : > { %v1388_v46 = vshrl.u32 %v1063_v21, 16  ;;  %v1391_v48 = vshll.u32 %v1063_v21, 16  ;;  %v1397_v52 = vshll.u32 %v1064_v51, 16  ;;  %v1112_v55 = vsel %vm5682_vm14, %v1107_v38, %v1111_v35  ;;  %v1613_v17 = vld [vmem:[#allocation2 + $0xa4] sm:$0x1]  ;;  %v5400_v38 = vld [vmem:[%s7050_s1 + $0x8] sm:$0xff]  }
  0x53   : > { %v3441_v54 = vsel %vm5682_vm14, %v5725_v53, %v3440_v40  ;;  %v1117_v63 = vrot.slane %v1116_v34, 4  ;;  %v2776_v56 = vrot.slane %v2774_v42, 4  ;;  %v5763_v58 = vsel %vm5626_vm11, %v4886_v39, %v2774_v42  ;;  %v300_v37 = vld [vmem:[#allocation2 + $0xbc] sm:$0x1]  ;;  %v5795_v42 = vld [vmem:[#allocation2 + $0x28] sm:$0xf] }
  0x54   : > { %v4933_v28 = vcombine.low %v3431_v30, %v3441_v54  ;;  %v1390_v59 = vrot.slane %v1388_v46, 4  ;;  %v1393_v44 = vrot.slane %v1391_v48, 5  ;;  %v1399_v50 = vrot.slane %v1397_v52, 5  ;;  %v1030_v46 = vld [vmem:[#allocation2 + $0x18] sm:$0xf] }
  0x55   : > { %v1122_v2 = vsel %vm5682_vm14, %v1117_v63, %v1121_v41  ;;  %v1401_v53 = vshrl.u32 %v1064_v51, 16  ;;  %v1407_v4 = vshll.u32 %v1065_v45, 16  ;;  %v5772_v12 = vsel %vm5626_vm11, %v2776_v56, %v2777_v43  ;;  %v5399_v51 = vld [vmem:[%s7050_s1 + $0x48] sm:$0xff]   ;;  %v5793_v41 = vld [vmem:[#allocation2 + $0x24] sm:$0xe] }
  0x56   : > { %3586 = vrot.lane.b32.xlu0 %v4933_v28, %s5469_s21  ;;  %v3087_v6 = vld [vmem:[#allocation2 + $0x2c] sm:$0x1]  ;;  %v4794_v7 = vcombine.low %v1112_v55, %v1122_v2  ;;  %v1394_v9 = vor.u32 %v1393_v44, %v1390_v59  ;;  %v245_v10 = vsel %vm5510_vm2, 0, %v244_v57  ;;  %v585_v16 = vshrl.u32 %v340_v62, 16  ;;  %5169 = vmatprep.subr.bf16.mxu0 %v5399_v51  ;;  %v1031_v48 = vld [vmem:[#allocation2 + $0x1c] sm:$0xf] }
  0x57   : > { %v3174_v60 = vshll.u32 %v3087_v6, 16  ;;  %v1403_v14 = vrot.slane %v1401_v53, 4  ;;  %v1409_v15 = vrot.slane %v1407_v4, 5  ;;  %246 = vst [vmem:[#allocation2 + $0xb4] sm:$0x1] %v245_v10  ;;  %v588_v19 = vshll.u32 %v340_v62, 16  ;;  %5334 = vmatprep.subr.bf16.mxu1 %v5399_v51  ;;  %5170 = vmatpush3.bf16.msra.mxu0 %v5400_v38 }
  0x58   : > { %1509 = vrot.lane.b32.xlu1 %v4794_v7, %s5470_s22  ;;  %v1395_v18 = vrot.slane %v1394_v9, 4  ;;  %v593_v20 = vshrl.u32 %v341_v0, 16  ;;  %v596_v21 = vshll.u32 %v341_v0, 16  ;;  %v587_v25 = vrot.slane %v585_v16, 7  ;;  %v1032_v27 = vld [vmem:[#allocation2 + $0x20] sm:$0x1]  ;;  %5342 = vmatpush3.bf16.msra.mxu1 %v5400_v38 }
  0x59   : > { %v3176_v23 = vrot.slane %v3174_v60, 5  ;;  %v1404_v24 = vor.u32 %v1403_v14, %v1399_v50  ;;  %v4822_v32 = vrot.slane %v1611_v5, 9  ;;  %v1764_v35 = vrot.slane %v1612_v11, 5  ;;  %v318_v44 = vld [vmem:[%s5535_s19 + $0x18] sm:$0xf] }
  0x5a   : > { %v1400_v30 = vsel %vm5682_vm14, %v1395_v18, %v1399_v50  ;;  %v5785_v33 = vrot.slane %v593_v20, 7  ;;  %v1767_v36 = vrot.slane %v1613_v17, 5  ;;  %v590_v40 = vor.u32 %v588_v19, %v587_v25  ;;  %v5824_v2 = vld [vmem:[#allocation2 + $0x2c] sm:$0x1]  ;;  %v319_v53 = vld [vmem:[%s5535_s19 + $0x1c] sm:$0xf] }
  0x5b   : > { %v3177_v39 = vsel %vm5682_vm14, %v5751_v47, %v3176_v23  ;;  %v1405_v22 = vrot.slane %v1404_v24, 4  ;;  %v591_v34 = vrot.slane %v587_v25, 4  ;;  %v5401_v47 = vld [vmem:[%s7050_s1 + $0x50] sm:$0xff]   ;;  %v1765_v54 = vsel %vm5626_vm11, %v4822_v32, %v1764_v35  ;;  %v1579_v60 = vld [vmem:[#allocation2 + $0x1c] sm:$0xf]  ;;  %v5384_v24 = vld [vmem:[#allocation2 + $0xa8] sm:$0xff]  }
  0x5c   : > { %v4922_v43 = vcombine.low %v3167_v49, %v3177_v39  ;;  %v598_v45 = vor.u32 %v596_v21, %v5785_v33  ;;  %v1766_v55 = vrot.slane %v1764_v35, 4  ;;  %v301_v8 = vsel %vm5519_vm4, 0, %v300_v37  ;;  %v211_v49 = vld [vmem:[#allocation2 + $0x30] sm:$0x1]  ;;  %5171 = vmatprep.subr.bf16.mxu0 %v5401_v47  ;;  %5335 = vmatprep.subr.bf16.mxu1 %v5401_v47  ;;  %v5404_v39 = vld [vmem:[%s7050_s1 + $0x58] sm:$0xff]  }
  0x5d   : > { %v1410_v52 = vsel %vm5682_vm14, %v1405_v22, %v1409_v15  ;;  %v4902_v63 = vcombine.low %v5763_v58, %v5772_v12  ;;  %302 = vst [vmem:[#allocation2 + $0xbc] sm:$0x1] %v301_v8  ;;  %v2697_v59 = vrot.slane %v5795_v42, 5  ;;  %v1124_v58 = vshrl.u32 %v1030_v46, 16  ;;  %v1578_v12 = vld [vmem:[#allocation2 + $0x18] sm:$0xe] }
  0x5e   : > { %3564 = vrot.lane.b32.xlu0 %v4922_v43, %s5469_s21  ;;  %v4806_v56 = vcombine.low %v1400_v30, %v1410_v52  ;;  %v599_v57 = vsel %vm5548_vm7, %v591_v34, %v598_v45  ;;  %v768_v28 = vld [vmem:[#allocation2 + $0xb4] sm:$0xf]  ;;  %v1768_v0 = vsel %vm5626_vm11, %v1766_v55, %v1767_v36  ;;  %v1127_v50 = vshll.u32 %v1030_v46, 16 }
  0x5f   : > { %v769_v62 = vsel %vm5557_vm8, %v590_v40, %v768_v28  ;;  %771 = vst.msk [vmem:[#allocation2 + $0xb8] sm:$0xf] %vm667_vm6, %v599_v57  ;;  %v600_v4 = vrot.slane %v5785_v33, 4  ;;  %v4838_v5 = vcombine.low %v1765_v54, %v1768_v0  ;;  %v4875_v6 = vrot.slane %v5793_v41, 9  ;;  %v5403_v18 = vld [vmem:[%s7050_s1 + $0x10] sm:$0xff]   ;;  %v5405_v41 = vld [vmem:[%s7050_s1 + $0x18] sm:$0xff]  }
  0x60   : > { %1533 = vrot.lane.b32.xlu1 %v4806_v56, %s5470_s22  ;;  %770 = vst [vmem:[#allocation2 + $0xb4] sm:$0xf] %v769_v62  ;;  %v1133_v7 = vshll.u32 %v1031_v48, 16  ;;  %v1126_v9 = vrot.slane %v1124_v58, 4  ;;  %v1129_v10 = vrot.slane %v1127_v50, 5  ;;  %v1137_v11 = vshrl.u32 %v1031_v48, 16  ;;  %5172 = vmatpush3.bf16.msra.mxu0 %v5403_v18 }
  0x61   : > { %v1143_v13 = vshll.u32 %v1032_v27, 16  ;;  %v2700_v14 = vrot.slane %v5824_v2, 5  ;;  %v212_v16 = vsel %vm5510_vm2, 0, %v211_v49  ;;  %v398_v17 = vshrl.u32 %v318_v44, 16  ;;  %5343 = vmatpush3.bf16.msra.mxu1 %v5403_v18  ;;  %5173 = vmatprep.subr.bf16.mxu0 %v5404_v39  ;;  %v1580_v49 = vld [vmem:[#allocation2 + $0x20] sm:$0x1] }
  0x62   : > { %2867 = vrot.lane.b32.xlu0 %v4902_v63, %s5470_s22  ;;  %v1135_v15 = vrot.slane %v1133_v7, 5  ;;  %v5839_v19 = vrot.slane %v2697_v59, 4  ;;  %v1130_v20 = vor.u32 %v1129_v10, %v1126_v9  ;;  %v1139_v21 = vrot.slane %v1137_v11, 4  ;;  %213 = vst [vmem:[#allocation2 + $0x30] sm:$0x1] %v212_v16  ;;  %5336 = vmatprep.subr.bf16.mxu1 %v5404_v39  ;;  %v5407_v2 = vld [vmem:[%s7050_s1 + $0x60] sm:$0xff]  }
  0x63   : > { %v1145_v23 = vrot.slane %v1143_v13, 5  ;;  %v400_v25 = vrot.slane %v398_v17, 7  ;;  %v401_v32 = vshll.u32 %v318_v44, 16  ;;  %v406_v51 = vshrl.u32 %v319_v53, 16  ;;  %v267_v44 = vld [vmem:[#allocation2 + $0x38] sm:$0x1] }
  0x64   : > { %1857 = vrot.lane.b32.xlu1 %v4838_v5, %s5468_s20  ;;  %v409_v30 = vshll.u32 %v319_v53, 16  ;;  %v772_v33 = vld [vmem:[#allocation2 + $0xbc] sm:$0x1]  ;;  %v1131_v35 = vrot.slane %v1130_v20, 4  ;;  %v1140_v36 = vor.u32 %v1139_v21, %v1135_v15  ;;  %v4811_v37 = vrot.slane %v1578_v12, 9  ;;  %5174 = vmatpush3.bf16.msra.mxu0 %v5405_v41 }
  0x65   : > { %v1687_v38 = vrot.slane %v1579_v60, 5  ;;  %v773_v22 = vsel %vm5510_vm2, %v600_v4, %v772_v33  ;;  %v404_v34 = vrot.slane %v400_v25, 4  ;;  %v5847_v43 = vrot.slane %v406_v51, 7  ;;  %v1066_v62 = vld [vmem:[#allocation2 + $0xa8] sm:$0xf]  ;;  %5175 = vmatprep.subr.bf16.mxu0 %v5407_v2  ;;  %5344 = vmatpush3.bf16.msra.mxu1 %v5405_v41 }
  0x66   : > { %v3122_v40 = vld [vmem:[#allocation2 + $0xb8] sm:$0xf]  ;;  %774 = vst [vmem:[#allocation2 + $0xbc] sm:$0x1] %v773_v22  ;;  %v1136_v47 = vsel %vm5682_vm14, %v1131_v35, %v1135_v15  ;;  %v403_v52 = vor.u32 %v401_v32, %v400_v25  ;;  %v1141_v27 = vrot.slane %v1140_v36, 4  ;;  %v1690_v9 = vrot.slane %v1580_v49, 5  ;;  %5337 = vmatprep.subr.bf16.mxu1 %v5407_v2 }
  0x67   : > { %v5383_v45 = vld [vmem:[#allocation2 + $0xb4] sm:$0xff]   ;;  %v3452_v48 = vshll.u32 %v3122_v40, 16  ;;  %v3456_v8 = vshrl.u32 %v3122_v40, 16  ;;  %v411_v56 = vor.u32 %v409_v30, %v5847_v43  ;;  %v1688_v57 = vsel %vm5626_vm11, %v4811_v37, %v1687_v38  ;;  %v1067_v16 = vld [vmem:[#allocation2 + $0xac] sm:$0xf] }
  0x68   : > { %v3121_v46 = vld [vmem:[#allocation2 + $0xb4] sm:$0xf]  ;;  %2034 = vrot.lane.b32.xlu1 %v5384_v24, %s5469_s21  ;;  %3044 = vrot.lane.b32.xlu0 %v5383_v45, %s5468_s20  ;;  %v1689_v28 = vrot.slane %v1687_v38, 4  ;;  %v1146_v53 = vsel %vm5682_vm14, %v1141_v27, %v1145_v23  ;;  %v268_v13 = vsel %vm5519_vm4, 0, %v267_v44  ;;  %v5868_v60 = vld [vmem:[#allocation2 + $0xb8] sm:$0xf]  ;;  %v5879_v24 = vsel %vm5626_vm11, %v4875_v6, %v2697_v59 }
  0x69   : > { %v3443_v54 = vshrl.u32 %v3121_v46, 16  ;;  %v3446_v55 = vshll.u32 %v3121_v46, 16  ;;  %v5853_v63 = vrot.slane %v3452_v48, 5  ;;  %v3458_v50 = vrot.slane %v3456_v8, 4  ;;  %v691_v4 = vld [vmem:[#allocation2 + $0x30] sm:$0xf] }
  0x6a   : > { %v4795_v5 = vcombine.low %v1136_v47, %v1146_v53  ;;  %v412_v7 = vsel %vm5548_vm7, %v404_v34, %v411_v56  ;;  %v692_v12 = vsel %vm5557_vm8, %v403_v52, %v691_v4  ;;  %v1691_v15 = vsel %vm5626_vm11, %v1689_v28, %v1690_v9  ;;  %269 = vst [vmem:[#allocation2 + $0x38] sm:$0x1] %v268_v13  ;;  %v1068_v17 = vld [vmem:[#allocation2 + $0xb0] sm:$0x1]  ;;  %v5881_v32 = vld [vmem:[#allocation2 + $0xb4] sm:$0xe] }
  0x6b   : > { %v3445_v0 = vrot.slane %v3443_v54, 4  ;;  %v3448_v58 = vrot.slane %v3446_v55, 5  ;;  %v3459_v11 = vor.u32 %v3458_v50, %v5853_v63  ;;  %693 = vst [vmem:[#allocation2 + $0x30] sm:$0xf] %v692_v12  ;;  %694 = vst.msk [vmem:[#allocation2 + $0x34] sm:$0xf] %vm667_vm6, %v412_v7  ;;  %v4827_v25 = vcombine.low %v1688_v57, %v1691_v15 }
  0x6c   : > { %1511 = vrot.lane.b32.xlu1 %v4795_v5, %s5470_s22  ;;  %v1412_v18 = vshrl.u32 %v1066_v62, 16  ;;  %v1415_v20 = vshll.u32 %v1066_v62, 16  ;;  %v5888_v33 = vsel %vm5626_vm11, %v5839_v19, %v2700_v14  ;;  %v2781_v42 = vrot.slane %v5868_v60, 5  ;;  %v247_v35 = vld [vmem:[#allocation2 + $0xc0] sm:$0x1]  ;;  %v5386_v38 = vld [vmem:[#allocation2 + $0x24] sm:$0xff]  }
  0x6d   : > { %v3449_v10 = vor.u32 %v3448_v58, %v3445_v0  ;;  %v3123_v21 = vld [vmem:[#allocation2 + $0xbc] sm:$0x1]  ;;  %v3460_v51 = vrot.slane %v3459_v11, 4  ;;  %v413_v59 = vrot.slane %v5847_v43, 4  ;;  %v1421_v37 = vshll.u32 %v1067_v16, 16  ;;  %v5408_v7 = vld [vmem:[%s7050_s1 + $0x20] sm:$0xff]  }
  0x6e   : > { %v3462_v30 = vshll.u32 %v3123_v21, 16  ;;  %v1414_v6 = vrot.slane %v1412_v18, 4  ;;  %v1417_v36 = vrot.slane %v1415_v20, 5  ;;  %v4887_v39 = vrot.slane %v5881_v32, 9  ;;  %v342_v46 = vld [vmem:[%s5535_s19 + $0x78] sm:$0xf]  ;;  %5176 = vmatpush3.bf16.msra.mxu0 %v5408_v7  ;;  %5345 = vmatpush3.bf16.msra.mxu1 %v5408_v7 }
  0x6f   : > { %v3450_v23 = vrot.slane %v3449_v10, 4  ;;  %v1425_v22 = vshrl.u32 %v1067_v16, 16  ;;  %v1423_v34 = vrot.slane %v1421_v37, 5  ;;  %v1431_v43 = vshll.u32 %v1068_v17, 16  ;;  %v1614_v62 = vld [vmem:[#allocation2 + $0xa8] sm:$0xe] }
  0x70   : > { %v3464_v19 = vrot.slane %v3462_v30, 5  ;;  %1835 = vrot.lane.b32.xlu1 %v4827_v25, %s5468_s20  ;;  %v1418_v40 = vor.u32 %v1417_v36, %v1414_v6  ;;  %v248_v45 = vsel %vm5510_vm2, 0, %v247_v35  ;;  %v5910_v47 = vrot.slane %v2781_v42, 4  ;;  %v1615_v0 = vld [vmem:[#allocation2 + $0xac] sm:$0xf] }
  0x71   : > { %v3455_v14 = vsel %vm5682_vm14, %v3450_v23, %v5853_v63  ;;  %v1427_v52 = vrot.slane %v1425_v22, 4  ;;  %249 = vst [vmem:[#allocation2 + $0xc0] sm:$0x1] %v248_v45  ;;  %v4891_v55 = vcombine.low %v5879_v24, %v5888_v33  ;;  %v695_v8 = vld [vmem:[#allocation2 + $0x38] sm:$0x1]  ;;  %v1433_v5 = vrot.slane %v1431_v43, 5 }
  0x72   : > { %v3465_v48 = vsel %vm5682_vm14, %v3460_v51, %v3464_v19  ;;  %v3088_v27 = vld [vmem:[#allocation2 + $0x30] sm:$0xf]  ;;  %v3089_v49 = vld [vmem:[#allocation2 + $0x34] sm:$0xf]  ;;  %v5915_v63 = vld [vmem:[%s5535_s19 + $0x7c] sm:$0xf]  ;;  %v696_v56 = vsel %vm5510_vm2, %v413_v59, %v695_v8 }
  0x73   : > { %v4934_v54 = vcombine.low %v3455_v14, %v3465_v48  ;;  %v3179_v57 = vshrl.u32 %v3088_v27, 16  ;;  %v3182_v28 = vshll.u32 %v3088_v27, 16  ;;  %v3188_v44 = vshll.u32 %v3089_v49, 16  ;;  %697 = vst [vmem:[#allocation2 + $0x38] sm:$0x1] %v696_v56  ;;  %v5410_v51 = vld [vmem:[%s7050_s1 + $0x68] sm:$0xff]  }
  0x74   : > { %2012 = vrot.lane.b32.xlu1 %v5386_v38, %s5469_s21  ;;  %v3192_v58 = vshrl.u32 %v3089_v49, 16  ;;  %v5921_v50 = vld [vmem:[#allocation2 + $0xbc] sm:$0x1]  ;;  %v1419_v53 = vrot.slane %v1418_v40, 4  ;;  %v1428_v4 = vor.u32 %v1427_v52, %v1423_v34  ;;  %v602_v11 = vshrl.u32 %v342_v46, 16  ;;  %v5385_v30 = vld [vmem:[#allocation2 + $0x30] sm:$0xff]   ;;  %5177 = vmatprep.subr.bf16.mxu0 %v5410_v51 }
  0x75   : > { %3588 = vrot.lane.b32.xlu0 %v4934_v54, %s5469_s21  ;;  %v3181_v12 = vrot.slane %v3179_v57, 4  ;;  %v3184_v9 = vrot.slane %v3182_v28, 5  ;;  %v5926_v10 = vrot.slane %v3188_v44, 5  ;;  %v605_v17 = vshll.u32 %v342_v46, 16  ;;  %v1616_v18 = vld [vmem:[#allocation2 + $0xb0] sm:$0x1]  ;;  %5338 = vmatprep.subr.bf16.mxu1 %v5410_v51 }
  0x76   : > { %v3194_v13 = vrot.slane %v3192_v58, 4  ;;  %v1424_v15 = vsel %vm5682_vm14, %v1419_v53, %v1423_v34  ;;  %v1429_v16 = vrot.slane %v1428_v4, 4  ;;  %v303_v20 = vld [vmem:[#allocation2 + $0xc8] sm:$0x1]  ;;  %v604_v23 = vrot.slane %v602_v11, 7  ;;  %v5413_v56 = vld [vmem:[%s7050_s1 + $0x70] sm:$0xff]  }
  0x77   : > { %v3185_v21 = vor.u32 %v3184_v9, %v3181_v12  ;;  %v610_v24 = vshrl.u32 %v5915_v63, 16  ;;  %v613_v25 = vshll.u32 %v5915_v63, 16  ;;  %v4823_v59 = vrot.slane %v1614_v62, 9  ;;  %v1033_v19 = vld [vmem:[#allocation2 + $0x24] sm:$0xf]  ;;  %v5412_v43 = vld [vmem:[%s7050_s1 + $0x28] sm:$0xff]  }
  0x78   : > { %v3195_v33 = vor.u32 %v3194_v13, %v5926_v10  ;;  %v1434_v35 = vsel %vm5682_vm14, %v1429_v16, %v1433_v5  ;;  %v775_v41 = vld [vmem:[#allocation2 + $0xc0] sm:$0xf]  ;;  %v1771_v6 = vrot.slane %v1615_v0, 5  ;;  %v2784_v37 = vrot.slane %v5921_v50, 5  ;;  %v5942_v34 = vld [vmem:[#allocation2 + $0x34] sm:$0xf]  ;;  %5178 = vmatpush3.bf16.msra.mxu0 %v5412_v43  ;;  %5346 = vmatpush3.bf16.msra.mxu1 %v5412_v43 }
  0x79   : > { %2845 = vrot.lane.b32.xlu0 %v4891_v55, %s5470_s22  ;;  %v3186_v36 = vrot.slane %v3185_v21, 4  ;;  %v4807_v2 = vcombine.low %v1424_v15, %v1434_v35  ;;  %v607_v14 = vor.u32 %v605_v17, %v604_v23  ;;  %v608_v38 = vrot.slane %v604_v23, 4  ;;  %v1034_v63 = vld [vmem:[#allocation2 + $0x28] sm:$0xf]  ;;  %v2594_v57 = vld [vmem:[#allocation2 + $0x30] sm:$0xe]  ;;  %5179 = vmatprep.subr.bf16.mxu0 %v5413_v56 }
  0x7a   : > { %v5940_v22 = vrot.slane %v610_v24, 7  ;;  %v1773_v40 = vrot.slane %v1771_v6, 4  ;;  %v3090_v45 = vld [vmem:[#allocation2 + $0x38] sm:$0x1]  ;;  %v1772_v48 = vsel %vm5626_vm11, %v4823_v59, %v1771_v6  ;;  %v1774_v52 = vrot.slane %v1616_v18, 5  ;;  %5339 = vmatprep.subr.bf16.mxu1 %v5413_v56 }
  0x7b   : > { %1535 = vrot.lane.b32.xlu1 %v4807_v2, %s5470_s22  ;;  %v776_v46 = vsel %vm5557_vm8, %v607_v14, %v775_v41  ;;  %v304_v54 = vsel %vm5519_vm4, 0, %v303_v20  ;;  %v3196_v55 = vrot.slane %v3195_v33, 4  ;;  %v3198_v8 = vshll.u32 %v3090_v45, 16  ;;  %v1035_v0 = vld [vmem:[#allocation2 + $0x2c] sm:$0x1] }
  0x7c   : > { %v5961_v27 = vsel %vm5626_vm11, %v4887_v39, %v2781_v42  ;;  %v615_v49 = vor.u32 %v613_v25, %v5940_v22  ;;  %777 = vst [vmem:[#allocation2 + $0xc0] sm:$0xf] %v776_v46  ;;  %305 = vst [vmem:[#allocation2 + $0xc8] sm:$0x1] %v304_v54  ;;  %v3191_v60 = vsel %vm5682_vm14, %v3186_v36, %v5926_v10  ;;  %v2704_v42 = vrot.slane %v5942_v34, 5  ;;  %v5388_v10 = vld [vmem:[#allocation2 + $0xb4] sm:$0xff]  }
  0x7d   : > { %3022 = vrot.lane.b32.xlu0 %v5385_v30, %s5468_s20  ;;  %v1775_v32 = vsel %vm5626_vm11, %v1773_v40, %v1774_v52  ;;  %v1148_v39 = vshrl.u32 %v1033_v19, 16  ;;  %v3200_v28 = vrot.slane %v3198_v8, 5  ;;  %v1151_v58 = vshll.u32 %v1033_v19, 16  ;;  %v214_v50 = vld [vmem:[#allocation2 + $0x3c] sm:$0x1] }
  0x7e   : > { %v616_v44 = vsel %vm5548_vm7, %v608_v38, %v615_v49  ;;  %v4839_v62 = vcombine.low %v1772_v48, %v1775_v32  ;;  %v2785_v53 = vsel %vm5626_vm11, %v5910_v47, %v2784_v37  ;;  %v617_v4 = vrot.slane %v5940_v22, 4  ;;  %v5980_v5 = vld [vmem:[#allocation2 + $0x38] sm:$0x1]  ;;  %v320_v20 = vld [vmem:[%s5535_s19 + $0x20] sm:$0xf]  ;;  %v5414_v22 = vld [vmem:[%s7050_s1 + $0x30] sm:$0xff]  }
  0x7f   : > { %778 = vst.msk [vmem:[#allocation2 + $0xc4] sm:$0xf] %vm667_vm6, %v616_v44  ;;  %v1150_v7 = vrot.slane %v1148_v39, 4  ;;  %v1157_v12 = vshll.u32 %v1034_v63, 16  ;;  %v3201_v9 = vsel %vm5682_vm14, %v3196_v55, %v3200_v28  ;;  %v4876_v11 = vrot.slane %v2594_v57, 9  ;;  %5180 = vmatpush3.bf16.msra.mxu0 %v5414_v22  ;;  %5347 = vmatpush3.bf16.msra.mxu1 %v5414_v22 }
  0x80   : > { %1859 = vrot.lane.b32.xlu1 %v4839_v62, %s5468_s20  ;;  %v1153_v13 = vrot.slane %v1151_v58, 5  ;;  %v1161_v15 = vshrl.u32 %v1034_v63, 16  ;;  %v4923_v47 = vcombine.low %v3191_v60, %v3201_v9  ;;  %v1167_v17 = vshll.u32 %v1035_v0, 16  ;;  %v321_v51 = vld [vmem:[%s5535_s19 + $0x24] sm:$0xf]  ;;  %v5417_v9 = vld [vmem:[%s7050_s1 + $0x78] sm:$0xff]  }
  0x81   : > { %v1159_v16 = vrot.slane %v1157_v12, 5  ;;  %v215_v18 = vsel %vm5510_vm2, 0, %v214_v50  ;;  %v5988_v21 = vrot.slane %v2704_v42, 4  ;;  %v2707_v23 = vrot.slane %v5980_v5, 5  ;;  %v1581_v37 = vld [vmem:[#allocation2 + $0x24] sm:$0xe]  ;;  %5181 = vmatprep.subr.bf16.mxu0 %v5417_v9  ;;  %5340 = vmatprep.subr.bf16.mxu1 %v5417_v9 }
  0x82   : > { %v1154_v24 = vor.u32 %v1153_v13, %v1150_v7  ;;  %v1163_v25 = vrot.slane %v1161_v15, 4  ;;  %216 = vst [vmem:[#allocation2 + $0x3c] sm:$0x1] %v215_v18  ;;  %3566 = vrot.lane.b32.xlu0 %v4923_v47, %s5469_s21  ;;  %v4903_v30 = vcombine.low %v5961_v27, %v2785_v53  ;;  %v1169_v14 = vrot.slane %v1167_v17, 5  ;;  %v1582_v48 = vld [vmem:[#allocation2 + $0x28] sm:$0xf] }
  0x83   : > { %v779_v33 = vld [vmem:[#allocation2 + $0xc8] sm:$0x1]  ;;  %v3124_v35 = vld [vmem:[#allocation2 + $0xc0] sm:$0xf]  ;;  %v415_v19 = vshrl.u32 %v320_v20, 16  ;;  %v423_v38 = vshrl.u32 %v321_v51, 16  ;;  %v6002_v43 = vsel %vm5626_vm11, %v4876_v11, %v2704_v42 }
  0x84   : > { %v780_v41 = vsel %vm5510_vm2, %v617_v4, %v779_v33  ;;  %v3467_v59 = vshrl.u32 %v3124_v35, 16  ;;  %v3470_v6 = vshll.u32 %v3124_v35, 16  ;;  %2036 = vrot.lane.b32.xlu1 %v5388_v10, %s5469_s21  ;;  %v1155_v36 = vrot.slane %v1154_v24, 4  ;;  %v1583_v49 = vld [vmem:[#allocation2 + $0x2c] sm:$0x1]  ;;  %v5390_v5 = vld [vmem:[#allocation2 + $0x30] sm:$0xff]  }
  0x85   : > { %781 = vst [vmem:[#allocation2 + $0xc8] sm:$0x1] %v780_v41  ;;  %v1164_v2 = vor.u32 %v1163_v25, %v1159_v16  ;;  %v418_v46 = vshll.u32 %v320_v20, 16  ;;  %v417_v63 = vrot.slane %v415_v19, 7  ;;  %v6007_v56 = vrot.slane %v423_v38, 7 }
  0x86   : > { %v3125_v40 = vld [vmem:[#allocation2 + $0xc4] sm:$0xf]  ;;  %v3469_v34 = vrot.slane %v3467_v59, 4  ;;  %v1160_v45 = vsel %vm5682_vm14, %v1155_v36, %v1159_v16  ;;  %2869 = vrot.lane.b32.xlu0 %v4903_v30, %s5470_s22  ;;  %v3472_v54 = vrot.slane %v3470_v6, 5  ;;  %v426_v60 = vshll.u32 %v321_v51, 16  ;;  %v5418_v16 = vld [vmem:[%s7050_s1 + $0x38] sm:$0xff]  }
  0x87   : > { %v5387_v52 = vld [vmem:[#allocation2 + $0xc0] sm:$0xff]   ;;  %v3476_v55 = vshll.u32 %v3125_v40, 16  ;;  %v3480_v8 = vshrl.u32 %v3125_v40, 16  ;;  %v1165_v27 = vrot.slane %v1164_v2, 4  ;;  %v4812_v32 = vrot.slane %v1581_v37, 9  ;;  %5182 = vmatpush3.bf16.msra.mxu0 %v5418_v16  ;;  %5348 = vmatpush3.bf16.msra.mxu1 %v5418_v16 }
  0x88   : > { %v3473_v57 = vor.u32 %v3472_v54, %v3469_v34  ;;  %v270_v62 = vld [vmem:[#allocation2 + $0x44] sm:$0x1]  ;;  %v420_v58 = vor.u32 %v418_v46, %v417_v63  ;;  %v421_v50 = vrot.slane %v417_v63, 4  ;;  %v428_v53 = vor.u32 %v426_v60, %v6007_v56  ;;  %v6012_v4 = vld [vmem:[#allocation2 + $0xc0] sm:$0xe] }
  0x89   : > { %v3478_v42 = vrot.slane %v3476_v55, 5  ;;  %v3482_v39 = vrot.slane %v3480_v8, 4  ;;  %v1170_v28 = vsel %vm5682_vm14, %v1165_v27, %v1169_v14  ;;  %v698_v44 = vld [vmem:[#allocation2 + $0x3c] sm:$0xf]  ;;  %v1069_v7 = vld [vmem:[#allocation2 + $0xb4] sm:$0xf] }
  0x8a   : > { %v4796_v0 = vcombine.low %v1160_v45, %v1170_v28  ;;  %v1070_v12 = vld [vmem:[#allocation2 + $0xb8] sm:$0xf]  ;;  %3046 = vrot.lane.b32.xlu0 %v5387_v52, %s5468_s20  ;;  %v3474_v10 = vrot.slane %v3473_v57, 4  ;;  %v430_v13 = vrot.slane %v6007_v56, 4  ;;  %v1694_v15 = vrot.slane %v1582_v48, 5 }
  0x8b   : > { %v3483_v11 = vor.u32 %v3482_v39, %v3478_v42  ;;  %v2631_v47 = vld [vmem:[#allocation2 + $0xc4] sm:$0xf]  ;;  %v429_v18 = vsel %vm5548_vm7, %v421_v50, %v428_v53  ;;  %v699_v20 = vsel %vm5557_vm8, %v420_v58, %v698_v44  ;;  %v1697_v24 = vrot.slane %v1583_v49, 5  ;;  %v1071_v2 = vld [vmem:[#allocation2 + $0xbc] sm:$0x1] }
  0x8c   : > { %v3126_v17 = vld [vmem:[#allocation2 + $0xc8] sm:$0x1]  ;;  %1513 = vrot.lane.b32.xlu1 %v4796_v0, %s5470_s22  ;;  %v271_v25 = vsel %vm5519_vm4, 0, %v270_v62  ;;  %v3479_v30 = vsel %vm5682_vm14, %v3474_v10, %v3478_v42  ;;  %700 = vst [vmem:[#allocation2 + $0x3c] sm:$0xf] %v699_v20  ;;  %v1695_v41 = vsel %vm5626_vm11, %v4812_v32, %v1694_v15  ;;  %v1696_v59 = vrot.slane %v1694_v15, 4 }
  0x8d   : > { %v2632_v51 = vld [vmem:[#allocation2 + $0xc8] sm:$0x1]  ;;  %v3484_v33 = vrot.slane %v3483_v11, 4  ;;  %v3486_v35 = vshll.u32 %v3126_v17, 16  ;;  %701 = vst.msk [vmem:[#allocation2 + $0x40] sm:$0xf] %vm667_vm6, %v429_v18  ;;  %v2708_v45 = vsel %vm5626_vm11, %v5988_v21, %v2707_v23 }
  0x8e   : > { %272 = vst [vmem:[#allocation2 + $0x44] sm:$0x1] %v271_v25  ;;  %v4888_v6 = vrot.slane %v6012_v4, 9  ;;  %v2788_v36 = vrot.slane %v2631_v47, 5  ;;  %v2791_v37 = vrot.slane %v2632_v51, 5  ;;  %v1436_v38 = vshrl.u32 %v1069_v7, 16 }
  0x8f   : > { %v250_v14 = vld [vmem:[#allocation2 + $0xcc] sm:$0x1]  ;;  %v3488_v19 = vrot.slane %v3486_v35, 5  ;;  %v1439_v22 = vshll.u32 %v1069_v7, 16  ;;  %v1445_v40 = vshll.u32 %v1070_v12, 16  ;;  %v1698_v46 = vsel %vm5626_vm11, %v1696_v59, %v1697_v24 }
  0x90   : > { %v1617_v34 = vld [vmem:[#allocation2 + $0xb4] sm:$0xe]  ;;  %v2790_v48 = vrot.slane %v2788_v36, 4  ;;  %v1449_v52 = vshrl.u32 %v1070_v12, 16  ;;  %v4828_v55 = vcombine.low %v1695_v41, %v1698_v46  ;;  %v1438_v8 = vrot.slane %v1436_v38, 4 }
  0x91   : > { %v3489_v54 = vsel %vm5682_vm14, %v3484_v33, %v3488_v19  ;;  %v1441_v27 = vrot.slane %v1439_v22, 5  ;;  %v1447_v63 = vrot.slane %v1445_v40, 5  ;;  %v1455_v32 = vshll.u32 %v1071_v2, 16  ;;  %v1618_v23 = vld [vmem:[#allocation2 + $0xb8] sm:$0xf] }
  0x92   : > { %v4935_v49 = vcombine.low %v3479_v30, %v3489_v54  ;;  %v1451_v56 = vrot.slane %v1449_v52, 4  ;;  %1837 = vrot.lane.b32.xlu1 %v4828_v55, %s5468_s20  ;;  %v251_v21 = vsel %vm5510_vm2, 0, %v250_v14  ;;  %v4892_v57 = vcombine.low %v6002_v43, %v2708_v45  ;;  %v1619_v39 = vld [vmem:[#allocation2 + $0xbc] sm:$0x1]  ;;  %v306_v12 = vld [vmem:[#allocation2 + $0xd4] sm:$0x1] }
  0x93   : > { %v1442_v60 = vor.u32 %v1441_v27, %v1438_v8  ;;  %252 = vst [vmem:[#allocation2 + $0xcc] sm:$0x1] %v251_v21  ;;  %v4824_v28 = vrot.slane %v1617_v34, 9  ;;  %v3091_v62 = vld [vmem:[#allocation2 + $0x3c] sm:$0xf]  ;;  %v6051_v58 = vsel %vm5626_vm11, %v4888_v6, %v2788_v36  ;;  %v6055_v50 = vsel %vm5626_vm11, %v2790_v48, %v2791_v37 }
  0x94   : > { %3590 = vrot.lane.b32.xlu0 %v4935_v49, %s5469_s21  ;;  %v1452_v42 = vor.u32 %v1451_v56, %v1447_v63  ;;  %v3092_v0 = vld [vmem:[#allocation2 + $0x40] sm:$0xf]  ;;  %v3203_v4 = vshrl.u32 %v3091_v62, 16  ;;  %v3206_v43 = vshll.u32 %v3091_v62, 16  ;;  %v3128_v9 = vld [vmem:[#allocation2 + $0xd0] sm:$0xf]  ;;  %v4904_v49 = vcombine.low %v6051_v58, %v6055_v50  ;;  %v6088_v62 = vpop.permute.xlu0 %3042 }
  0x95   : > { %v702_v44 = vld [vmem:[#allocation2 + $0x44] sm:$0x1]  ;;  %v3212_v7 = vshll.u32 %v3092_v0, 16  ;;  %v5389_v10 = vld [vmem:[#allocation2 + $0x3c] sm:$0xff]   ;;  %v3216_v11 = vshrl.u32 %v3092_v0, 16  ;;  %v1443_v15 = vrot.slane %v1442_v60, 4  ;;  %v6069_v36 = vpop.permute.xlu1 %3018 }
  0x96   : > { %v703_v53 = vsel %vm5510_vm2, %v430_v13, %v702_v44  ;;  %2014 = vrot.lane.b32.xlu1 %v5390_v5, %s5469_s21  ;;  %v1453_v47 = vrot.slane %v1452_v42, 4  ;;  %v1457_v16 = vrot.slane %v1455_v32, 5  ;;  %v3205_v17 = vrot.slane %v3203_v4, 4  ;;  %v1036_v6 = vld [vmem:[#allocation2 + $0x30] sm:$0xf]  ;;  %v5392_v42 = vld [vmem:[#allocation2 + $0xc0] sm:$0xff]  }
  0x97   : > { %704 = vst [vmem:[#allocation2 + $0x44] sm:$0x1] %v703_v53  ;;  %v3208_v18 = vrot.slane %v3206_v43, 5  ;;  %v6061_v20 = vrot.slane %v3212_v7, 5  ;;  %v1778_v13 = vrot.slane %v1618_v23, 5  ;;  %v3218_v24 = vrot.slane %v3216_v11, 4 }
  0x98   : > { %2847 = vrot.lane.b32.xlu0 %v4892_v57, %s5470_s22  ;;  %v1448_v25 = vsel %vm5682_vm14, %v1443_v15, %v1447_v63  ;;  %v1458_v51 = vsel %vm5682_vm14, %v1453_v47, %v1457_v16  ;;  %v1781_v30 = vrot.slane %v1619_v39, 5  ;;  %v307_v14 = vsel %vm5519_vm4, 0, %v306_v12  ;;  %v2598_v34 = vld [vmem:[#allocation2 + $0x40] sm:$0xf]  ;;  %v1037_v45 = vld [vmem:[#allocation2 + $0x34] sm:$0xf] }
  0x99   : > { %v3209_v33 = vor.u32 %v3208_v18, %v3205_v17  ;;  %v4808_v35 = vcombine.low %v1448_v25, %v1458_v51  ;;  %v1779_v41 = vsel %vm5626_vm11, %v4824_v28, %v1778_v13  ;;  %v1780_v59 = vrot.slane %v1778_v13, 4  ;;  %308 = vst [vmem:[#allocation2 + $0xd4] sm:$0x1] %v307_v14  ;;  %v2597_v55 = vld [vmem:[#allocation2 + $0x3c] sm:$0xe] }
  0x9a   : > { %v3219_v37 = vor.u32 %v3218_v24, %v6061_v20  ;;  %v872_v2 = vld [vmem:[#allocation2 + $0xcc] sm:$0xf]  ;;  %v3500_v19 = vshll.u32 %v3128_v9, 16  ;;  %v3504_v38 = vshrl.u32 %v3128_v9, 16  ;;  %v1038_v8 = vld [vmem:[#allocation2 + $0x38] sm:$0x1] }
  0x9b   : > { %1537 = vrot.lane.b32.xlu1 %v4808_v35, %s5470_s22  ;;  %v873_v22 = vsel %vm5557_vm8, 0, %v872_v2  ;;  %v1782_v40 = vsel %vm5626_vm11, %v1780_v59, %v1781_v30  ;;  %v3210_v46 = vrot.slane %v3209_v33, 4  ;;  %v1172_v63 = vshrl.u32 %v1036_v6, 16  ;;  %v217_v56 = vld [vmem:[#allocation2 + $0x48] sm:$0x1] }
  0x9c   : > { %3024 = vrot.lane.b32.xlu0 %v5389_v10, %s5468_s20  ;;  %874 = vst [vmem:[#allocation2 + $0xcc] sm:$0xf] %v873_v22  ;;  %v4840_v48 = vcombine.low %v1779_v41, %v1782_v40  ;;  %v6080_v52 = vrot.slane %v3500_v19, 5  ;;  %v3506_v54 = vrot.slane %v3504_v38, 4  ;;  %v3220_v5 = vrot.slane %v3219_v37, 4  ;;  %v6090_v0 = vpop.permute.xlu1 %2008 }
  0x9d   : > { %v2711_v21 = vrot.slane %v2598_v34, 5  ;;  %v1175_v23 = vshll.u32 %v1036_v6, 16  ;;  %v4877_v39 = vrot.slane %v2597_v55, 9  ;;  %v1174_v28 = vrot.slane %v1172_v63, 4  ;;  %v322_v12 = vld [vmem:[%s5535_s19 + $0x28] sm:$0xf]  ;;  %v6112_v34 = vpop.permute.xlu0 %3020 }
  0x9e   : > { %v3093_v27 = vld [vmem:[#allocation2 + $0x44] sm:$0x1]  ;;  %v3507_v57 = vor.u32 %v3506_v54, %v6080_v52  ;;  %v1181_v44 = vshll.u32 %v1037_v45, 16  ;;  %v3215_v53 = vsel %vm5682_vm14, %v3210_v46, %v6061_v20  ;;  %v1185_v7 = vshrl.u32 %v1037_v45, 16  ;;  %v323_v9 = vld [vmem:[%s5535_s19 + $0x2c] sm:$0xf] }
  0x9f   : > { %v3222_v60 = vshll.u32 %v3093_v27, 16  ;;  %v6084_v32 = vld [vmem:[#allocation2 + $0x44] sm:$0x1]  ;;  %1861 = vrot.lane.b32.xlu1 %v4840_v48, %s5468_s20  ;;  %v1177_v43 = vrot.slane %v1175_v23, 5  ;;  %v1191_v15 = vshll.u32 %v1038_v8, 16  ;;  %v218_v47 = vsel %vm5510_vm2, 0, %v217_v56 }
  0xa0   : > { %v2714_v10 = vrot.slane %v6084_v32, 5  ;;  %v1183_v11 = vrot.slane %v1181_v44, 5  ;;  %v876_v17 = vld [vmem:[#allocation2 + $0xd4] sm:$0x1]  ;;  %v2713_v18 = vrot.slane %v2711_v21, 4  ;;  %v1187_v24 = vrot.slane %v1185_v7, 4  ;;  %v6114_v45 = vpop.permute.xlu1 %2032 }
  0xa1   : > { %v3224_v4 = vrot.slane %v3222_v60, 5  ;;  %v1178_v13 = vor.u32 %v1177_v43, %v1174_v28  ;;  %219 = vst [vmem:[#allocation2 + $0x48] sm:$0x1] %v218_v47  ;;  %v1584_v20 = vld [vmem:[#allocation2 + $0x30] sm:$0xe]  ;;  %v877_v51 = vsel %vm5510_vm2, 0, %v876_v17  ;;  %v6109_v35 = vsel %vm5626_vm11, %v4877_v39, %v2711_v21 }
  0xa2   : > { %v6104_v33 = vrot.slane %v3507_v57, 4  ;;  %878 = vst [vmem:[#allocation2 + $0xd4] sm:$0x1] %v877_v51  ;;  %v1188_v37 = vor.u32 %v1187_v24, %v1183_v11  ;;  %v1585_v2 = vld [vmem:[#allocation2 + $0x34] sm:$0xf]  ;;  %v1193_v14 = vrot.slane %v1191_v15, 5 }
  0xa3   : > { %v3225_v16 = vsel %vm5682_vm14, %v3220_v5, %v3224_v4  ;;  %v3127_v30 = vld [vmem:[#allocation2 + $0xcc] sm:$0xf]  ;;  %2038 = vrot.lane.b32.xlu1 %v5392_v42, %s5469_s21  ;;  %v1179_v6 = vrot.slane %v1178_v13, 4  ;;  %v432_v19 = vshrl.u32 %v322_v12, 16  ;;  %v435_v38 = vshll.u32 %v322_v12, 16 }
  0xa4   : > { %v4924_v25 = vcombine.low %v3215_v53, %v3225_v16  ;;  %v3491_v41 = vshrl.u32 %v3127_v30, 16  ;;  %v3494_v59 = vshll.u32 %v3127_v30, 16  ;;  %v440_v22 = vshrl.u32 %v323_v9, 16  ;;  %v1586_v40 = vld [vmem:[#allocation2 + $0x38] sm:$0x1]  ;;  %v5391_v42 = vld [vmem:[#allocation2 + $0xcc] sm:$0xff]   ;;  %v6143_v13 = vpop.permute.xlu1 %2010 }
  0xa5   : > { %v1184_v54 = vsel %vm5682_vm14, %v1179_v6, %v1183_v11  ;;  %v1189_v55 = vrot.slane %v1188_v37, 4  ;;  %v434_v8 = vrot.slane %v432_v19, 7  ;;  %v443_v63 = vshll.u32 %v323_v9, 16  ;;  %v273_v23 = vld [vmem:[#allocation2 + $0x50] sm:$0x1] }
  0xa6   : > { %3568 = vrot.lane.b32.xlu0 %v4924_v25, %s5469_s21  ;;  %v3493_v46 = vrot.slane %v3491_v41, 4  ;;  %v3496_v48 = vrot.slane %v3494_v59, 5  ;;  %v6118_v27 = vrot.slane %v440_v22, 7  ;;  %v4813_v56 = vrot.slane %v1584_v20, 9  ;;  %v1039_v57 = vld [vmem:[#allocation2 + $0x3c] sm:$0xf] }
  0xa7   : > { %v1194_v60 = vsel %vm5682_vm14, %v1189_v55, %v1193_v14  ;;  %v1701_v32 = vrot.slane %v1585_v2, 5  ;;  %v1704_v21 = vrot.slane %v1586_v40, 5  ;;  %v437_v28 = vor.u32 %v435_v38, %v434_v8  ;;  %v1040_v43 = vld [vmem:[#allocation2 + $0x40] sm:$0xf]  ;;  %v220_v7 = vld [vmem:[#allocation2 + $0x54] sm:$0x1] }
  0xa8   : > { %v3497_v5 = vor.u32 %v3496_v48, %v3493_v46  ;;  %v4797_v39 = vcombine.low %v1184_v54, %v1194_v60  ;;  %v438_v44 = vrot.slane %v434_v8, 4  ;;  %v445_v53 = vor.u32 %v443_v63, %v6118_v27  ;;  %v705_v4 = vld [vmem:[#allocation2 + $0x48] sm:$0xf]  ;;  %v1041_v58 = vld [vmem:[#allocation2 + $0x44] sm:$0x1]  ;;  %v5394_v14 = vld [vmem:[#allocation2 + $0x3c] sm:$0xff]  }
  0xa9   : > { %v6129_v9 = vsel %vm5626_vm11, %v2713_v18, %v2714_v10  ;;  %v1702_v11 = vsel %vm5626_vm11, %v4813_v56, %v1701_v32  ;;  %v1703_v15 = vrot.slane %v1701_v32, 4  ;;  %v324_v50 = vld [vmem:[%s5535_s19 + $0x30] sm:$0xf]  ;;  %v706_v16 = vsel %vm5557_vm8, %v437_v28, %v705_v4  ;;  %v6141_v18 = vpop.permute.xlu0 %2841  ;;  %v325_v30 = vld [vmem:[%s5535_s19 + $0x34] sm:$0xf] }
  0xaa   : > { %2871 = vrot.lane.b32.xlu0 %v4904_v49, %s5470_s22  ;;  %v3498_v12 = vrot.slane %v3497_v5, 4  ;;  %v3129_v49 = vld [vmem:[#allocation2 + $0xd4] sm:$0x1]  ;;  %1515 = vrot.lane.b32.xlu1 %v4797_v39, %s5470_s22  ;;  %v446_v47 = vsel %vm5548_vm7, %v438_v44, %v445_v53  ;;  %v274_v10 = vsel %vm5519_vm4, 0, %v273_v23  ;;  %v1196_v17 = vshrl.u32 %v1039_v57, 16 }
  0xab   : > { %v3510_v20 = vshll.u32 %v3129_v49, 16  ;;  %707 = vst [vmem:[#allocation2 + $0x48] sm:$0xf] %v706_v16  ;;  %708 = vst.msk [vmem:[#allocation2 + $0x4c] sm:$0xf] %vm667_vm6, %v446_v47  ;;  %v1705_v25 = vsel %vm5626_vm11, %v1703_v15, %v1704_v21  ;;  %v1199_v51 = vshll.u32 %v1039_v57, 16 }
  0xac   : > { %v3503_v24 = vsel %vm5682_vm14, %v3498_v12, %v6080_v52  ;;  %275 = vst [vmem:[#allocation2 + $0x50] sm:$0x1] %v274_v10  ;;  %v4829_v41 = vcombine.low %v1702_v11, %v1705_v25  ;;  %v1198_v59 = vrot.slane %v1196_v17, 4  ;;  %v1205_v6 = vshll.u32 %v1040_v43, 16  ;;  %v6157_v54 = vld [vmem:[#allocation2 + $0x3c] sm:$0xe] }
  0xad   : > { %v1209_v37 = vshrl.u32 %v1040_v43, 16  ;;  %v3512_v2 = vrot.slane %v3510_v20, 5  ;;  %v1201_v19 = vrot.slane %v1199_v51, 5  ;;  %v1215_v52 = vshll.u32 %v1041_v58, 16  ;;  %v6162_v5 = vld [vmem:[#allocation2 + $0x40] sm:$0xf]  ;;  %v6164_v23 = vpop.permute.xlu0 %2865 }
  0xae   : > { %3048 = vrot.lane.b32.xlu0 %v5391_v42, %s5468_s20  ;;  %v221_v38 = vsel %vm5510_vm2, 0, %v220_v7  ;;  %v447_v22 = vrot.slane %v6118_v27, 4  ;;  %1839 = vrot.lane.b32.xlu1 %v4829_v41, %s5468_s20  ;;  %v1207_v40 = vrot.slane %v1205_v6, 5  ;;  %v449_v48 = vshrl.u32 %v324_v50, 16  ;;  %v1589_v16 = vld [vmem:[#allocation2 + $0x44] sm:$0x1] }
  0xaf   : > { %v1211_v46 = vrot.slane %v1209_v37, 4  ;;  %222 = vst [vmem:[#allocation2 + $0x54] sm:$0x1] %v221_v38  ;;  %v3513_v55 = vsel %vm5682_vm14, %v6104_v33, %v3512_v2  ;;  %v1202_v8 = vor.u32 %v1201_v19, %v1198_v59  ;;  %v452_v63 = vshll.u32 %v324_v50, 16  ;;  %v6166_v57 = vpop.permute.xlu1 %1831  ;;  %v276_v10 = vld [vmem:[#allocation2 + $0x5c] sm:$0x1] }
  0xb0   : > { %v457_v56 = vshrl.u32 %v325_v30, 16  ;;  %v4936_v60 = vcombine.low %v3503_v24, %v3513_v55  ;;  %v451_v27 = vrot.slane %v449_v48, 7  ;;  %v460_v21 = vshll.u32 %v325_v30, 16  ;;  %v5409_v19 = vld [vmem:[#allocation2] sm:$0xff]   ;;  %v5416_v38 = vld [vmem:[#allocation2 + $0x90] sm:$0xff]  }
  0xb1   : > { %v1212_v32 = vor.u32 %v1211_v46, %v1207_v40  ;;  %v1203_v42 = vrot.slane %v1202_v8, 4  ;;  %v1217_v39 = vrot.slane %v1215_v52, 5  ;;  %v4814_v44 = vrot.slane %v6157_v54, 9  ;;  %v5424_v46 = vld [vmem:[#allocation2 + $0x18] sm:$0xff]   ;;  %1008 = vst.msk [vmem:[#allocation3] sm:$0xff] %vm1007_vm15, %v5409_v19  ;;  %1020 = vst.msk [vmem:[#allocation3 + $0x120] sm:$0xff] %vm1007_vm15, %v5416_v38 }
  0xb2   : > { %v6168_v28 = vrot.slane %v457_v56, 7  ;;  %3592 = vrot.lane.b32.xlu0 %v4936_v60, %s5469_s21  ;;  %v4893_v33 = vcombine.low %v6109_v35, %v6129_v9  ;;  %2016 = vrot.lane.b32.xlu1 %v5394_v14, %s5469_s21  ;;  %v1708_v4 = vrot.slane %v6162_v5, 5  ;;  %v3094_v7 = vld [vmem:[#allocation2 + $0x48] sm:$0xf]  ;;  %v3095_v12 = vld [vmem:[#allocation2 + $0x4c] sm:$0xf]  ;;  %v454_v15 = vor.u32 %v452_v63, %v451_v27  ;;  %v6192_v14 = vpop.permute.xlu0 %2843 }
  0xb3   : > { %v1213_v53 = vrot.slane %v1212_v32, 4  ;;  %v709_v43 = vld [vmem:[#allocation2 + $0x50] sm:$0x1]  ;;  %v1208_v11 = vsel %vm5682_vm14, %v1203_v42, %v1207_v40  ;;  %v3227_v49 = vshrl.u32 %v3094_v7, 16  ;;  %v3230_v47 = vshll.u32 %v3094_v7, 16  ;;  %v5393_v17 = vld [vmem:[#allocation2 + $0x48] sm:$0xff]  }
  0xb4   : > { %v462_v58 = vor.u32 %v460_v21, %v6168_v28  ;;  %v710_v50 = vsel %vm5510_vm2, %v447_v22, %v709_v43  ;;  %v3236_v35 = vshll.u32 %v3095_v12, 16  ;;  %v6181_v9 = vld [vmem:[#allocation2 + $0x48] sm:$0xe]  ;;  %v3240_v24 = vshrl.u32 %v3095_v12, 16  ;;  %v6183_v20 = vld [vmem:[#allocation2 + $0x4c] sm:$0xf] }
  0xb5   : > { %711 = vst [vmem:[#allocation2 + $0x50] sm:$0x1] %v710_v50  ;;  %v4878_v25 = vrot.slane %v6181_v9, 9  ;;  %v1218_v51 = vsel %vm5682_vm14, %v1213_v53, %v1217_v39  ;;  %v455_v30 = vrot.slane %v451_v27, 4  ;;  %v3229_v41 = vrot.slane %v3227_v49, 4  ;;  %v5419_v22 = vld [vmem:[#allocation2 + $0xc] sm:$0xff]  }
  0xb6   : > { %2849 = vrot.lane.b32.xlu0 %v4893_v33, %s5470_s22  ;;  %v3232_v59 = vrot.slane %v3230_v47, 5  ;;  %v6189_v6 = vrot.slane %v3236_v35, 5  ;;  %v2718_v37 = vrot.slane %v6183_v20, 5  ;;  %v712_v2 = vld [vmem:[#allocation2 + $0x54] sm:$0xf]  ;;  %v5421_v40 = vld [vmem:[#allocation2 + $0x9c] sm:$0xff]   ;;  %v4798_v54 = vcombine.low %v1208_v11, %v1218_v51  ;;  %v1508_v9 = vpop.permute.xlu0 %1507 }
  0xb7   : > { %v3242_v48 = vrot.slane %v3240_v24, 4  ;;  %v463_v55 = vsel %vm5548_vm7, %v455_v30, %v462_v58  ;;  %v464_v8 = vrot.slane %v6168_v28, 4  ;;  %v713_v5 = vsel %vm5557_vm8, %v454_v15, %v712_v2  ;;  %v1042_v32 = vld [vmem:[#allocation2 + $0x48] sm:$0xf]  ;;  %v1043_v27 = vld [vmem:[#allocation2 + $0x4c] sm:$0xf] }
  0xb8   : > { %v3233_v63 = vor.u32 %v3232_v59, %v3229_v41  ;;  %v2720_v56 = vrot.slane %v2718_v37, 4  ;;  %715 = vst.msk [vmem:[#allocation2 + $0x58] sm:$0xf] %vm667_vm6, %v463_v55  ;;  %v1709_v60 = vsel %vm5626_vm11, %v4814_v44, %v1708_v4  ;;  %v5427_v21 = vld [vmem:[#allocation2 + $0xa8] sm:$0xff]   ;;  %1517 = vrot.lane.b32.xlu1 %v4798_v54, %s5470_s22  ;;  %714 = vst [vmem:[#allocation2 + $0x54] sm:$0xf] %v713_v5 }
  0xb9   : > { %v3243_v42 = vor.u32 %v3242_v48, %v6189_v6  ;;  %v1710_v39 = vrot.slane %v1708_v4, 4  ;;  %v1711_v33 = vrot.slane %v1589_v16, 5  ;;  %v277_v53 = vsel %vm5519_vm4, 0, %v276_v10  ;;  %1009 = vst.msk [vmem:[#allocation3 + $0x18] sm:$0xff] %vm1007_vm15, %v5419_v22  ;;  %1021 = vst.msk [vmem:[#allocation3 + $0x138] sm:$0xff] %vm1007_vm15, %v5421_v40  ;;  %v5398_v30 = vld [vmem:[#allocation2 + $0x48] sm:$0xff]  }
  0xba   : > { %v6194_v52 = vpop.permute.xlu1 %1855  ;;  %3026 = vrot.lane.b32.xlu0 %v5393_v17, %s5468_s20  ;;  %v3234_v43 = vrot.slane %v3233_v63, 4  ;;  %278 = vst [vmem:[#allocation2 + $0x5c] sm:$0x1] %v277_v53  ;;  %v1220_v7 = vshrl.u32 %v1042_v32, 16  ;;  %v1223_v12 = vshll.u32 %v1042_v32, 16  ;;  %v1229_v44 = vshll.u32 %v1043_v27, 16 }
  0xbb   : > { %v3244_v15 = vrot.slane %v3243_v42, 4  ;;  %v1712_v58 = vsel %vm5626_vm11, %v1710_v39, %v1711_v33  ;;  %v1233_v50 = vshrl.u32 %v1043_v27, 16  ;;  %1010 = vst.msk [vmem:[#allocation3 + $0x30] sm:$0xff] %vm1007_vm15, %v5424_v46  ;;  %1022 = vst.msk [vmem:[#allocation3 + $0x150] sm:$0xff] %vm1007_vm15, %v5427_v21  ;;  %v2074_v20 = vld [vmem:[#allocation2 + $0x10] sm:$0xf]  ;;  %v2719_v51 = vsel %vm5626_vm11, %v4878_v25, %v2718_v37 }
  0xbc   : > { %v3096_v4 = vld [vmem:[#allocation2 + $0x50] sm:$0x1]  ;;  %v4830_v47 = vcombine.low %v1709_v60, %v1712_v58  ;;  %v1222_v17 = vrot.slane %v1220_v7, 4  ;;  %v1225_v24 = vrot.slane %v1223_v12, 5  ;;  %v1231_v41 = vrot.slane %v1229_v44, 5  ;;  %1556 = vst.msk [vmem:[#allocation3] sm:$0xff] %vm1555_vm0, %v1508_v9 }
  0xbd   : > { %v2602_v49 = vld [vmem:[#allocation2 + $0x50] sm:$0x1]  ;;  %v3246_v16 = vshll.u32 %v3096_v4, 16  ;;  %v1235_v59 = vrot.slane %v1233_v50, 4  ;;  %v3239_v19 = vsel %vm5682_vm14, %v3234_v43, %v6189_v6  ;;  %v2131_v55 = vshll.u32 %v2074_v20, 16 }
  0xbe   : > { %v6209_v11 = vpop.permute.xlu1 %1833  ;;  %v1044_v35 = vld [vmem:[#allocation2 + $0x50] sm:$0x1]  ;;  %v2721_v10 = vrot.slane %v2602_v49, 5  ;;  %1841 = vrot.lane.b32.xlu1 %v4830_v47, %s5468_s20  ;;  %v1226_v40 = vor.u32 %v1225_v24, %v1222_v17  ;;  %v2075_v27 = vld [vmem:[#allocation2 + $0x14] sm:$0x1]  ;;  %vm1879_vm1 = vcmask 785920  }
  0xbf   : > { %v3248_v38 = vrot.slane %v3246_v16, 5  ;;  %v3098_v22 = vld [vmem:[#allocation2 + $0x58] sm:$0xf]  ;;  %v1239_v46 = vshll.u32 %v1044_v35, 16  ;;  %v3097_v37 = vld [vmem:[#allocation2 + $0x54] sm:$0xf]  ;;  %v1236_v54 = vor.u32 %v1235_v59, %v1231_v41 }
  0xc0   : > { %v2722_v25 = vsel %vm5626_vm11, %v2720_v56, %v2721_v10  ;;  %v3260_v48 = vshll.u32 %v3098_v22, 16  ;;  %v3251_v6 = vshrl.u32 %v3097_v37, 16  ;;  %v3254_v60 = vshll.u32 %v3097_v37, 16  ;;  %v2603_v56 = vld [vmem:[#allocation2 + $0x54] sm:$0xe]  ;;  %1880 = vst.msk [vmem:[#allocation3] sm:$0xff] %vm1879_vm1, %v6166_v57 }
  0xc1   : > { %v3249_v63 = vsel %vm5682_vm14, %v3244_v15, %v3248_v38  ;;  %v716_v5 = vld [vmem:[#allocation2 + $0x5c] sm:$0x1]  ;;  %v3264_v32 = vshrl.u32 %v3098_v22, 16  ;;  %v2604_v33 = vld [vmem:[#allocation2 + $0x58] sm:$0xf]  ;;  %v1227_v53 = vrot.slane %v1226_v40, 4  ;;  %v4894_v43 = vcombine.low %v2719_v51, %v2722_v25  ;;  %v6247_v51 = vpop.permute.xlu0 %3562 }
  0xc2   : > { %v1532_v2 = vpop.permute.xlu1 %1531  ;;  %v4925_v21 = vcombine.low %v3239_v19, %v3249_v63  ;;  %v717_v42 = vsel %vm5510_vm2, %v464_v8, %v716_v5  ;;  %v6235_v39 = vrot.slane %v3260_v48, 5  ;;  %2018 = vrot.lane.b32.xlu1 %v5398_v30, %s5469_s21  ;;  %v3253_v7 = vrot.slane %v3251_v6, 4  ;;  %v2073_v15 = vld [vmem:[#allocation2 + $0xc] sm:$0xf]  ;;  %v223_v9 = vld [vmem:[#allocation2 + $0x60] sm:$0x1] }
  0xc3   : > { %1568 = vst.msk [vmem:[#allocation3 + $0x120] sm:$0xff] %vm1555_vm0, %v1532_v2  ;;  %718 = vst [vmem:[#allocation2 + $0x5c] sm:$0x1] %v717_v42  ;;  %v3256_v12 = vrot.slane %v3254_v60, 5  ;;  %v3266_v44 = vrot.slane %v3264_v32, 4  ;;  %v2725_v28 = vrot.slane %v2604_v33, 5  ;;  %v1232_v8 = vsel %vm5682_vm14, %v1227_v53, %v1231_v41 }
  0xc4   : > { %3570 = vrot.lane.b32.xlu0 %v4925_v21, %s5469_s21  ;;  %v1237_v58 = vrot.slane %v1236_v54, 4  ;;  %v1241_v50 = vrot.slane %v1239_v46, 5  ;;  %v6242_v47 = vrot.slane %v2131_v55, 5  ;;  %v2135_v35 = vshrl.u32 %v2074_v20, 16  ;;  %v326_v16 = vld [vmem:[%s5535_s19 + $0x38] sm:$0xf] }
  0xc5   : > { %v3257_v4 = vor.u32 %v3256_v12, %v3253_v7  ;;  %v3267_v49 = vor.u32 %v3266_v44, %v6235_v39  ;;  %v4879_v10 = vrot.slane %v2603_v56, 9  ;;  %v2141_v24 = vshll.u32 %v2075_v27, 16  ;;  %v327_v38 = vld [vmem:[%s5535_s19 + $0x3c] sm:$0xf]  ;;  %v6250_v22 = vld [vmem:[#allocation2 + $0x48] sm:$0xe] }
  0xc6   : > { %v1242_v17 = vsel %vm5682_vm14, %v1237_v58, %v1241_v50  ;;  %v2727_v59 = vrot.slane %v2725_v28, 4  ;;  %v2137_v19 = vrot.slane %v2135_v35, 4  ;;  %v5430_v20 = vld [vmem:[#allocation2 + $0x24] sm:$0xff]   ;;  %v5395_v40 = vld [vmem:[#allocation2 + $0x54] sm:$0xff]   ;;  %v2122_v25 = vshrl.u32 %v2073_v15, 16  ;;  %1892 = vst.msk [vmem:[#allocation3 + $0x120] sm:$0xff] %vm1879_vm1, %v6194_v52 }
  0xc7   : > { %v3258_v41 = vrot.slane %v3257_v4, 4  ;;  %v4799_v2 = vcombine.low %v1232_v8, %v1242_v17  ;;  %v3268_v46 = vrot.slane %v3267_v49, 4  ;;  %v2125_v37 = vshll.u32 %v2073_v15, 16  ;;  %1011 = vst.msk [vmem:[#allocation3 + $0x48] sm:$0xff] %vm1007_vm15, %v5430_v20  ;;  %v1591_v56 = vld [vmem:[#allocation2 + $0x4c] sm:$0xf] }
  0xc8   : > { %2851 = vrot.lane.b32.xlu0 %v4894_v43, %s5470_s22  ;;  %v224_v48 = vsel %vm5510_vm2, 0, %v223_v9  ;;  %v2138_v54 = vor.u32 %v2137_v19, %v6242_v47  ;;  %v2143_v55 = vrot.slane %v2141_v24, 5  ;;  %v466_v63 = vshrl.u32 %v326_v16, 16  ;;  %v6266_v33 = vld [vmem:[#allocation2 + $0x9c] sm:$0xf]  ;;  %v6270_v50 = vpop.permute.xlu0 %3586 }
  0xc9   : > { %1519 = vrot.lane.b32.xlu1 %v4799_v2, %s5470_s22  ;;  %225 = vst [vmem:[#allocation2 + $0x60] sm:$0x1] %v224_v48  ;;  %v469_v5 = vshll.u32 %v326_v16, 16  ;;  %v3263_v60 = vsel %vm5682_vm14, %v3258_v41, %v6235_v39  ;;  %v6264_v27 = vsel %vm5626_vm11, %v4879_v10, %v2725_v28  ;;  %v2124_v21 = vrot.slane %v2122_v25, 4  ;;  %v1592_v44 = vld [vmem:[#allocation2 + $0x50] sm:$0x1] }
  0xca   : > { %v1510_v30 = vpop.permute.xlu1 %1509  ;;  %v3099_v6 = vld [vmem:[#allocation2 + $0x5c] sm:$0x1]  ;;  %v2127_v42 = vrot.slane %v2125_v37, 5  ;;  %v2139_v7 = vrot.slane %v2138_v54, 4  ;;  %v468_v12 = vrot.slane %v466_v63, 7  ;;  %v474_v8 = vshrl.u32 %v327_v38, 16 }
  0xcb   : > { %1557 = vst.msk [vmem:[#allocation3 + $0x18] sm:$0xff] %vm1555_vm0, %v1510_v30  ;;  %v2605_v32 = vld [vmem:[#allocation2 + $0x5c] sm:$0x1]  ;;  %v3270_v53 = vshll.u32 %v3099_v6, 16  ;;  %v477_v39 = vshll.u32 %v327_v38, 16  ;;  %v4815_v58 = vrot.slane %v6250_v22, 9 }
  0xcc   : > { %v2728_v43 = vrot.slane %v2605_v32, 5  ;;  %3028 = vrot.lane.b32.xlu0 %v5395_v40, %s5468_s20  ;;  %v2128_v15 = vor.u32 %v2127_v42, %v2124_v21  ;;  %v2144_v49 = vsel %vm5682_vm14, %v2139_v7, %v2143_v55  ;;  %v471_v35 = vor.u32 %v469_v5, %v468_v12  ;;  %v2110_v9 = vld [vmem:[#allocation2 + $0xa0] sm:$0xf]  ;;  %v5432_v16 = vld [vmem:[#allocation2 + $0xb4] sm:$0xff]   ;;  %v2111_v41 = vld [vmem:[#allocation2 + $0xa4] sm:$0x1] }
  0xcd   : > { %v3272_v28 = vrot.slane %v3270_v53, 5  ;;  %v472_v24 = vrot.slane %v468_v12, 4  ;;  %v6277_v30 = vrot.slane %v474_v8, 7  ;;  %v279_v2 = vld [vmem:[#allocation2 + $0x68] sm:$0x1]  ;;  %v5433_v38 = vld [vmem:[#allocation2 + $0x30] sm:$0xff]  }
  0xce   : > { %v2729_v4 = vsel %vm5626_vm11, %v2727_v59, %v2728_v43  ;;  %v2129_v17 = vrot.slane %v2128_v15, 4  ;;  %v1715_v59 = vrot.slane %v1591_v56, 5  ;;  %v1718_v20 = vrot.slane %v1592_v44, 5  ;;  %v2076_v25 = vld [vmem:[#allocation2 + $0x18] sm:$0xf]  ;;  %1023 = vst.msk [vmem:[#allocation3 + $0x168] sm:$0xff] %vm1007_vm15, %v5432_v16 }
  0xcf   : > { %v4895_v10 = vcombine.low %v6264_v27, %v2729_v4  ;;  %v3273_v22 = vsel %vm5682_vm14, %v3268_v46, %v3272_v28  ;;  %v2410_v40 = vshrl.u32 %v6266_v33, 16  ;;  %v479_v54 = vor.u32 %v477_v39, %v6277_v30  ;;  %v2077_v46 = vld [vmem:[#allocation2 + $0x1c] sm:$0xf]  ;;  %1012 = vst.msk [vmem:[#allocation3 + $0x60] sm:$0xff] %vm1007_vm15, %v5433_v38  ;;  %v2078_v27 = vld [vmem:[#allocation2 + $0x20] sm:$0x1] }
  0xd0   : > { %v4926_v37 = vcombine.low %v3263_v60, %v3273_v22  ;;  %v2134_v48 = vsel %vm5682_vm14, %v2129_v17, %v6242_v47  ;;  %v481_v55 = vrot.slane %v6277_v30, 4  ;;  %v719_v63 = vld [vmem:[#allocation2 + $0x60] sm:$0xf]  ;;  %v1716_v32 = vsel %vm5626_vm11, %v4815_v58, %v1715_v59  ;;  %v6298_v53 = vld [vmem:[#allocation2 + $0x54] sm:$0xf]  ;;  %v6300_v43 = vpop.permute.xlu0 %3564  ;;  %1881 = vst.msk [vmem:[#allocation3 + $0x18] sm:$0xff] %vm1879_vm1, %v6209_v11 }
  0xd1   : > { %v4857_v5 = vcombine.low %v2134_v48, %v2144_v49  ;;  %v720_v6 = vsel %vm5557_vm8, %v471_v35, %v719_v63  ;;  %v1717_v60 = vrot.slane %v1715_v59, 4  ;;  %v480_v47 = vsel %vm5548_vm7, %v472_v24, %v479_v54  ;;  %v5406_v4 = vld [vmem:[#allocation2 + $0x54] sm:$0xff]   ;;  %v5436_v38 = vld [vmem:[#allocation2 + $0x3c] sm:$0xff]  }
  0xd2   : > { %v1534_v19 = vpop.permute.xlu1 %1533  ;;  %3572 = vrot.lane.b32.xlu0 %v4926_v37, %s5469_s21  ;;  %721 = vst [vmem:[#allocation2 + $0x60] sm:$0xf] %v720_v6  ;;  %v2412_v21 = vrot.slane %v2410_v40, 4  ;;  %v2413_v42 = vshll.u32 %v6266_v33, 16  ;;  %v2419_v56 = vshll.u32 %v2110_v9, 16  ;;  %v2423_v44 = vshrl.u32 %v2110_v9, 16 }
  0xd3   : > { %1569 = vst.msk [vmem:[#allocation3 + $0x138] sm:$0xff] %vm1555_vm0, %v1534_v19  ;;  %v1719_v12 = vsel %vm5626_vm11, %v1717_v60, %v1718_v20  ;;  %v2429_v15 = vshll.u32 %v2111_v41, 16  ;;  %v280_v8 = vsel %vm5519_vm4, 0, %v279_v2  ;;  %v6313_v33 = vld [vmem:[%s7050_s1 + $0x80] sm:$0xff]   ;;  %v2146_v49 = vshrl.u32 %v2076_v25, 16 }
  0xd4   : > { %2569 = vst.msk [vmem:[#allocation3 + $0x8] sm:$0xff] %vm1007_vm15, %v4857_v5  ;;  %v4831_v39 = vcombine.low %v1716_v32, %v1719_v12  ;;  %v2415_v58 = vrot.slane %v2413_v42, 5  ;;  %v2421_v28 = vrot.slane %v2419_v56, 5  ;;  %281 = vst [vmem:[#allocation2 + $0x68] sm:$0x1] %v280_v8  ;;  %v2425_v35 = vrot.slane %v2423_v44, 4  ;;  %5297 = vmatprep.subr.bf16.mxu1 %v6313_v33 }
  0xd5   : > { %722 = vst.msk [vmem:[#allocation2 + $0x64] sm:$0xf] %vm667_vm6, %v480_v47  ;;  %v2431_v9 = vrot.slane %v2429_v15, 5  ;;  %v2149_v16 = vshll.u32 %v2076_v25, 16  ;;  %v2155_v17 = vshll.u32 %v2077_v46, 16  ;;  %v2148_v41 = vrot.slane %v2146_v49, 4 }
  0xd6   : > { %v6302_v7 = vpop.permute.xlu1 %1857  ;;  %2889 = vst.msk [vmem:[#allocation3 + $0x8] sm:$0xff] %vm1555_vm0, %v6141_v18  ;;  %2853 = vrot.lane.b32.xlu0 %v4895_v10, %s5470_s22  ;;  %1843 = vrot.lane.b32.xlu1 %v4831_v39, %s5468_s20  ;;  %v2416_v24 = vor.u32 %v2415_v58, %v2412_v21  ;;  %v2159_v2 = vshrl.u32 %v2077_v46, 16  ;;  %v2165_v18 = vshll.u32 %v2078_v27, 16  ;;  %v2426_v22 = vor.u32 %v2425_v35, %v2421_v28  ;;  %v6324_v10 = vpop.permute.xlu0 %2867  ;;  %v1046_v42 = vld [vmem:[#allocation2 + $0x58] sm:$0xf] }
  0xd7   : > { %v2151_v59 = vrot.slane %v2149_v16, 5  ;;  %v2157_v20 = vrot.slane %v2155_v17, 5  ;;  %v1244_v40 = vshrl.u32 %v6298_v53, 16  ;;  %v1247_v54 = vshll.u32 %v6298_v53, 16  ;;  %1013 = vst.msk [vmem:[#allocation3 + $0x78] sm:$0xff] %vm1007_vm15, %v5436_v38 }
  0xd8   : > { %v2417_v25 = vrot.slane %v2416_v24, 4  ;;  %v2161_v37 = vrot.slane %v2159_v2, 4  ;;  %v2167_v48 = vrot.slane %v2165_v18, 5  ;;  %v2427_v63 = vrot.slane %v2426_v22, 4  ;;  %3066 = vst.msk [vmem:[#allocation3 + $0x8] sm:$0xff] %vm1879_vm1, %v6069_v36  ;;  %1893 = vst.msk [vmem:[#allocation3 + $0x138] sm:$0xff] %vm1879_vm1, %v6302_v7 }
  0xd9   : > { %v3100_v46 = vld [vmem:[#allocation2 + $0x60] sm:$0xf]  ;;  %v2152_v5 = vor.u32 %v2151_v59, %v2148_v41  ;;  %v1246_v6 = vrot.slane %v1244_v40, 4  ;;  %v1249_v2 = vrot.slane %v1247_v54, 5  ;;  %v1047_v40 = vld [vmem:[#allocation2 + $0x5c] sm:$0x1] }
  0xda   : > { %v6320_v19 = vpop.permute.xlu1 %2034  ;;  %v2422_v60 = vsel %vm5682_vm14, %v2417_v25, %v2421_v28  ;;  %v3275_v47 = vshrl.u32 %v3100_v46, 16  ;;  %2020 = vrot.lane.b32.xlu1 %v5406_v4, %s5469_s21  ;;  %v2162_v21 = vor.u32 %v2161_v37, %v2157_v20  ;;  %v2432_v56 = vsel %vm5682_vm14, %v2427_v63, %v2431_v9  ;;  %v2606_v49 = vld [vmem:[#allocation2 + $0x60] sm:$0xe]  ;;  %v6343_v18 = vpop.permute.xlu0 %3044  ;;  %v226_v37 = vld [vmem:[#allocation2 + $0x6c] sm:$0x1] }
  0xdb   : > { %v723_v53 = vld [vmem:[#allocation2 + $0x68] sm:$0x1]  ;;  %v3278_v12 = vshll.u32 %v3100_v46, 16  ;;  %v4869_v39 = vcombine.low %v2422_v60, %v2432_v56  ;;  %v2153_v4 = vrot.slane %v2152_v5, 4  ;;  %v4880_v41 = vrot.slane %v2606_v49, 9 }
  0xdc   : > { %v5402_v32 = vld [vmem:[#allocation2 + $0x60] sm:$0xff]   ;;  %v724_v58 = vsel %vm5510_vm2, %v481_v55, %v723_v53  ;;  %v3277_v28 = vrot.slane %v3275_v47, 4  ;;  %v2163_v24 = vrot.slane %v2162_v21, 4  ;;  %v1253_v25 = vshll.u32 %v1046_v42, 16  ;;  %v1594_v53 = vld [vmem:[#allocation2 + $0x58] sm:$0xf] }
  0xdd   : > { %v3101_v27 = vld [vmem:[#allocation2 + $0x64] sm:$0xf]  ;;  %3030 = vrot.lane.b32.xlu0 %v5402_v32, %s5468_s20  ;;  %725 = vst [vmem:[#allocation2 + $0x68] sm:$0x1] %v724_v58  ;;  %v3280_v9 = vrot.slane %v3278_v12, 5  ;;  %2581 = vst.msk [vmem:[#allocation3 + $0x128] sm:$0xff] %vm1007_vm15, %v4869_v39  ;;  %v2158_v30 = vsel %vm5682_vm14, %v2153_v4, %v2157_v20  ;;  %v1250_v46 = vor.u32 %v1249_v2, %v1246_v6 }
  0xde   : > { %v3284_v44 = vshll.u32 %v3101_v27, 16  ;;  %v3288_v15 = vshrl.u32 %v3101_v27, 16  ;;  %v1512_v8 = vpop.permute.xlu1 %1511  ;;  %v2607_v35 = vld [vmem:[#allocation2 + $0x64] sm:$0xf]  ;;  %2901 = vst.msk [vmem:[#allocation3 + $0x128] sm:$0xff] %vm1555_vm0, %v6164_v23  ;;  %v2168_v59 = vsel %vm5682_vm14, %v2163_v24, %v2167_v48  ;;  %v6357_v60 = vrot.slane %v1253_v25, 5 }
  0xdf   : > { %1558 = vst.msk [vmem:[#allocation3 + $0x30] sm:$0xff] %vm1555_vm0, %v1512_v8  ;;  %v2732_v55 = vrot.slane %v2607_v35, 5  ;;  %v3281_v38 = vor.u32 %v3280_v9, %v3277_v28  ;;  %v4858_v63 = vcombine.low %v2158_v30, %v2168_v59  ;;  %v328_v5 = vld [vmem:[%s5535_s19 + $0x40] sm:$0xf]  ;;  %v1257_v27 = vshrl.u32 %v1046_v42, 16  ;;  %v5437_v36 = vld [vmem:[#allocation2 + $0x48] sm:$0xff]  }
  0xe0   : > { %v6338_v16 = vrot.slane %v3284_v44, 5  ;;  %v3290_v17 = vrot.slane %v3288_v15, 4  ;;  %v6360_v47 = vld [vmem:[%s5535_s19 + $0x44] sm:$0xf]  ;;  %v1593_v48 = vld [vmem:[#allocation2 + $0x54] sm:$0xe] }
  0xe1   : > { %v6352_v54 = vsel %vm5626_vm11, %v4880_v41, %v2732_v55  ;;  %v6355_v32 = vrot.slane %v3281_v38, 4  ;;  %v2734_v23 = vrot.slane %v2732_v55, 4  ;;  %2570 = vst.msk [vmem:[#allocation3 + $0x20] sm:$0xff] %vm1007_vm15, %v4858_v63  ;;  %v6363_v21 = vrot.slane %v1250_v46, 4  ;;  %1014 = vst.msk [vmem:[#allocation3 + $0x90] sm:$0xff] %vm1007_vm15, %v5437_v36 }
  0xe2   : > { %v3291_v22 = vor.u32 %v3290_v17, %v6338_v16  ;;  %v1836_v20 = vpop.permute.xlu1 %1835  ;;  %v1263_v56 = vshll.u32 %v1047_v40, 16  ;;  %vm2056_vm3 = vcmask 1048320   ;;  %2890 = vst.msk [vmem:[#allocation3 + $0x20] sm:$0xff] %vm1555_vm0, %v6192_v14  ;;  %v1259_v6 = vrot.slane %v1257_v27, 4  ;;  %v282_v9 = vld [vmem:[#allocation2 + $0x74] sm:$0x1] }
  0xe3   : > { %3078 = vst.msk [vmem:[#allocation3 + $0x128] sm:$0xff] %vm1879_vm1, %v6088_v62  ;;  %v227_v42 = vsel %vm5510_vm2, 0, %v226_v37  ;;  %v483_v44 = vshrl.u32 %v328_v5, 16  ;;  %1882 = vst.msk [vmem:[#allocation3 + $0x30] sm:$0xff] %vm1879_vm1, %v1836_v20  ;;  %v3287_v62 = vsel %vm5682_vm14, %v6355_v32, %v6338_v16  ;;  %v1256_v52 = vsel %vm5682_vm14, %v6363_v21, %v6357_v60  ;;  %v1048_v30 = vld [vmem:[#allocation2 + $0x60] sm:$0xf] }
  0xe4   : > { %v3292_v12 = vrot.slane %v3291_v22, 4  ;;  %v3102_v14 = vld [vmem:[#allocation2 + $0x68] sm:$0x1]  ;;  %v1265_v11 = vrot.slane %v1263_v56, 5  ;;  %2057 = vst.msk [vmem:[#allocation3] sm:$0xff] %vm2056_vm3, %v6090_v0  ;;  %v486_v7 = vshll.u32 %v328_v5, 16 }
  0xe5   : > { %v2608_v15 = vld [vmem:[#allocation2 + $0x68] sm:$0x1]  ;;  %3067 = vst.msk [vmem:[#allocation3 + $0x20] sm:$0xff] %vm1879_vm1, %v6112_v34  ;;  %228 = vst [vmem:[#allocation2 + $0x6c] sm:$0x1] %v227_v42  ;;  %v3294_v0 = vshll.u32 %v3102_v14, 16 }
  0xe6   : > { %v2013_v57 = vpop.permute.xlu1 %2012  ;;  %3610 = vst.msk [vmem:[#allocation3 + $0x8] sm:$0xff] %vm2056_vm3, %v6247_v51  ;;  %3622 = vst.msk [vmem:[#allocation3 + $0x128] sm:$0xff] %vm2056_vm3, %v6270_v50  ;;  %v2735_v34 = vrot.slane %v2608_v15, 5  ;;  %v1260_v51 = vor.u32 %v1259_v6, %v6357_v60  ;;  %v485_v39 = vrot.slane %v483_v44, 7  ;;  %v1595_v50 = vld [vmem:[#allocation2 + $0x5c] sm:$0x1] }
  0xe7   : > { %2069 = vst.msk [vmem:[#allocation3 + $0x120] sm:$0xff] %vm2056_vm3, %v6114_v45  ;;  %2058 = vst.msk [vmem:[#allocation3 + $0x18] sm:$0xff] %vm2056_vm3, %v6143_v13  ;;  %v6402_v8 = vpop.permute.xlu0 %3588  ;;  %v491_v45 = vshrl.u32 %v6360_v47, 16  ;;  %v494_v13 = vshll.u32 %v6360_v47, 16  ;;  %v4816_v58 = vrot.slane %v1593_v48, 9  ;;  %v1722_v28 = vrot.slane %v1594_v53, 5 }
  0xe8   : > { %2070 = vst.msk [vmem:[#allocation3 + $0x138] sm:$0xff] %vm2056_vm3, %v6320_v19  ;;  %2059 = vst.msk [vmem:[#allocation3 + $0x30] sm:$0xff] %vm2056_vm3, %v2013_v57  ;;  %v3296_v19 = vrot.slane %v3294_v0, 5  ;;  %v6415_v4 = vsel %vm5626_vm11, %v2734_v23, %v2735_v34  ;;  %v1261_v49 = vrot.slane %v1260_v51, 4  ;;  %v488_v35 = vor.u32 %v486_v7, %v485_v39  ;;  %v1049_v41 = vld [vmem:[#allocation2 + $0x64] sm:$0xf] }
  0xe9   : > { %3611 = vst.msk [vmem:[#allocation3 + $0x20] sm:$0xff] %vm2056_vm3, %v6300_v43  ;;  %v4896_v43 = vcombine.low %v6352_v54, %v6415_v4  ;;  %v489_v16 = vrot.slane %v485_v39, 4  ;;  %v6419_v17 = vrot.slane %v491_v45, 7  ;;  %v1723_v24 = vsel %vm5626_vm11, %v4816_v58, %v1722_v28  ;;  %v229_v40 = vld [vmem:[#allocation2 + $0x78] sm:$0x1] }
  0xea   : > { %v3297_v2 = vsel %vm5682_vm14, %v3292_v12, %v3296_v19  ;;  %v1266_v38 = vsel %vm5682_vm14, %v1261_v49, %v1265_v11  ;;  %v1724_v22 = vrot.slane %v1722_v28, 4  ;;  %v1725_v59 = vrot.slane %v1595_v50, 5  ;;  %v6430_v25 = vld [vmem:[%s5535_s19 + $0x48] sm:$0xf]  ;;  %v6435_v32 = vld [vmem:[%s5535_s19 + $0x4c] sm:$0xf] }
  0xeb   : > { %v6423_v55 = vpop.permute.xlu0 %2845  ;;  %v4927_v37 = vcombine.low %v3287_v62, %v3297_v2  ;;  %v4800_v20 = vcombine.low %v1256_v52, %v1266_v38  ;;  %v496_v63 = vor.u32 %v494_v13, %v6419_v17  ;;  %v498_v46 = vrot.slane %v6419_v17, 4  ;;  %v1050_v5 = vld [vmem:[#allocation2 + $0x68] sm:$0x1]  ;;  %v1596_v56 = vld [vmem:[#allocation2 + $0x60] sm:$0xe]  ;;  %v3914_v0 = vld [vmem:[#allocation3] sm:$0xff] }
  0xec   : > { %v726_v23 = vld [vmem:[#allocation2 + $0x6c] sm:$0xf]  ;;  %v1726_v60 = vsel %vm5626_vm11, %v1724_v22, %v1725_v59  ;;  %v283_v27 = vsel %vm5519_vm4, 0, %v282_v9  ;;  %v1268_v47 = vshrl.u32 %v1048_v30, 16  ;;  %v1271_v48 = vshll.u32 %v1048_v30, 16  ;;  %v5415_v9 = vld [vmem:[#allocation2 + $0x60] sm:$0xff]  }
  0xed   : > { %v3915_v21 = vld [vmem:[#allocation3 + $0x8] sm:$0xff]  ;;  %v1536_v53 = vpop.permute.xlu1 %1535  ;;  %v5435_v12 = vld [vmem:[%s7050_s1 + $0x88] sm:$0xff]   ;;  %3574 = vrot.lane.b32.xlu0 %v4927_v37, %s5469_s21  ;;  %1521 = vrot.lane.b32.xlu1 %v4800_v20, %s5470_s22  ;;  %v497_v6 = vsel %vm5548_vm7, %v489_v16, %v496_v63  ;;  %v727_v42 = vsel %vm5557_vm8, %v488_v35, %v726_v23  ;;  %v4832_v44 = vcombine.low %v1723_v24, %v1726_v60  ;;  %v1277_v57 = vshll.u32 %v1049_v41, 16 }
  0xee   : > { %284 = vst [vmem:[#allocation2 + $0x74] sm:$0x1] %v283_v27  ;;  %v1597_v36 = vld [vmem:[#allocation2 + $0x64] sm:$0xf]  ;;  %v3950_v62 = vld [vmem:[#allocation3 + $0x120] sm:$0xff]  ;;  %1570 = vst.msk [vmem:[#allocation3 + $0x150] sm:$0xff] %vm1555_vm0, %v1536_v53  ;;  %4193 = vmatprep.mubr.bf16.mxu0 %v3915_v21 }
  0xef   : > { %v3951_v14 = vld [vmem:[#allocation3 + $0x128] sm:$0xff]  ;;  %728 = vst [vmem:[#allocation2 + $0x6c] sm:$0xf] %v727_v42  ;;  %729 = vst.msk [vmem:[#allocation2 + $0x70] sm:$0xf] %vm667_vm6, %v497_v6  ;;  %v1270_v15 = vrot.slane %v1268_v47, 4  ;;  %v6452_v51 = vpop.permute.xlu0 %3022  ;;  %4194 = vmatmul.mubr.bf16.vlgmr.msra.gmra.mrb[0].mxu0 %v3914_v0 }
  0xf0   : > { %v1273_v52 = vrot.slane %v1271_v48, 5  ;;  %v1281_v11 = vshrl.u32 %v1049_v41, 16  ;;  %v1287_v7 = vshll.u32 %v1050_v5, 16  ;;  %4289 = vmatprep.mubr.bf16.mxu1 %v3951_v14  ;;  %v3918_v34 = vld [vmem:[#allocation3 + $0x20] sm:$0xff]  ;;  %v6454_v39 = vrot.slane %v1277_v57, 5  ;;  %v3917_v63 = vld [vmem:[#allocation3 + $0x18] sm:$0xff] }
  0xf1   : > { %v230_v45 = vsel %vm5510_vm2, 0, %v229_v40  ;;  %v500_v13 = vshrl.u32 %v6430_v25, 16  ;;  %v503_v50 = vshll.u32 %v6430_v25, 16  ;;  %v1598_v58 = vld [vmem:[#allocation2 + $0x68] sm:$0x1]  ;;  %4290 = vmatmul.mubr.bf16.vlgmr.msra.gmra.mrb[0].mxu1 %v3950_v62  ;;  %v508_v35 = vshrl.u32 %v6435_v32, 16  ;;  %4201 = vmatprep.mubr.bf16.mxu0 %v3918_v34 }
  0xf2   : > { %v1274_v28 = vor.u32 %v1273_v52, %v1270_v15  ;;  %v1283_v19 = vrot.slane %v1281_v11, 4  ;;  %v1289_v49 = vrot.slane %v1287_v7, 5  ;;  %231 = vst [vmem:[#allocation2 + $0x78] sm:$0x1] %v230_v45  ;;  %5298 = vmatpush3.bf16.msra.mxu1 %v6313_v33  ;;  %2855 = vrot.lane.b32.xlu0 %v4896_v43, %s5470_s22  ;;  %v511_v24 = vshll.u32 %v6435_v32, 16  ;;  %v1860_v2 = vpop.permute.xlu1 %1859 }
  0xf3   : > { %1845 = vrot.lane.b32.xlu1 %v4832_v44, %s5468_s20  ;;  %v502_v16 = vrot.slane %v500_v13, 7  ;;  %v4817_v30 = vrot.slane %v1596_v56, 9  ;;  %v1729_v41 = vrot.slane %v1597_v36, 5  ;;  %v6469_v59 = vrot.slane %v508_v35, 7  ;;  %v2112_v40 = vld [vmem:[#allocation2 + $0xa8] sm:$0xf]  ;;  %5299 = vmatprep.subr.bf16.mxu1 %v5435_v12 }
  0xf4   : > { %v1275_v38 = vrot.slane %v1274_v28, 4  ;;  %v1284_v22 = vor.u32 %v1283_v19, %v6454_v39  ;;  %v1732_v33 = vrot.slane %v1598_v58, 5  ;;  %1894 = vst.msk [vmem:[#allocation3 + $0x150] sm:$0xff] %vm1879_vm1, %v1860_v2  ;;  %v6475_v5 = vpop.permute.xlu0 %3566  ;;  %v2434_v47 = vshrl.u32 %v2112_v40, 16  ;;  %v2113_v6 = vld [vmem:[#allocation2 + $0xac] sm:$0xf] }
  0xf5   : > { %v506_v54 = vrot.slane %v502_v16, 4  ;;  %v1731_v4 = vrot.slane %v1729_v41, 4  ;;  %v730_v43 = vld [vmem:[#allocation2 + $0x74] sm:$0x1]  ;;  %v513_v37 = vor.u32 %v511_v24, %v6469_v59  ;;  %v1730_v20 = vsel %vm5626_vm11, %v4817_v30, %v1729_v41  ;;  %v2114_v62 = vld [vmem:[#allocation2 + $0xb0] sm:$0x1] }
  0xf6   : > { %v1285_v25 = vrot.slane %v1284_v22, 4  ;;  %5300 = vmatpush3.bf16.msra.mxu1 %v5435_v12  ;;  %v5411_v32 = vld [vmem:[#allocation2 + $0x6c] sm:$0xff]   ;;  %v731_v23 = vsel %vm5510_vm2, %v498_v46, %v730_v43  ;;  %v1280_v60 = vsel %vm5682_vm14, %v1275_v38, %v6454_v39  ;;  %v2037_v48 = vpop.permute.xlu1 %2036  ;;  %v505_v12 = vor.u32 %v503_v50, %v502_v16  ;;  %v285_v0 = vld [vmem:[#allocation2 + $0x80] sm:$0x1] }
  0xf7   : > { %2022 = vrot.lane.b32.xlu1 %v5415_v9, %s5469_s21  ;;  %v1733_v27 = vsel %vm5626_vm11, %v1731_v4, %v1732_v33  ;;  %732 = vst [vmem:[#allocation2 + $0x74] sm:$0x1] %v731_v23  ;;  %v3103_v21 = vld [vmem:[#allocation2 + $0x6c] sm:$0xf]  ;;  %v3104_v56 = vld [vmem:[#allocation2 + $0x70] sm:$0xf]  ;;  %v514_v46 = vsel %vm5548_vm7, %v506_v54, %v513_v37  ;;  %3032 = vrot.lane.b32.xlu0 %v5411_v32, %s5468_s20 }
  0xf8   : > { %v2609_v53 = vld [vmem:[#allocation2 + $0x6c] sm:$0xe]  ;;  %v1290_v17 = vsel %vm5682_vm14, %v1285_v25, %v1289_v49  ;;  %2071 = vst.msk [vmem:[#allocation3 + $0x150] sm:$0xff] %vm2056_vm3, %v2037_v48  ;;  %v3299_v42 = vshrl.u32 %v3103_v21, 16  ;;  %v3302_v44 = vshll.u32 %v3103_v21, 16  ;;  %v3308_v57 = vshll.u32 %v3104_v56, 16  ;;  %4202 = vmatmul.mubr.bf16.gmra.mrb[4].mxu0 %v3917_v63  ;;  %v6494_v50 = vpop.permute.xlu0 %2869 }
  0xf9   : > { %v3312_v36 = vshrl.u32 %v3104_v56, 16  ;;  %v2610_v14 = vld [vmem:[#allocation2 + $0x70] sm:$0xf]  ;;  %736 = vst.msk [vmem:[#allocation2 + $0x7c] sm:$0xf] %vm667_vm6, %v514_v46  ;;  %v4801_v52 = vcombine.low %v1280_v60, %v1290_v17  ;;  %v4833_v7 = vcombine.low %v1730_v20, %v1733_v27  ;;  %v4881_v58 = vrot.slane %v2609_v53, 9 }
  0xfa   : > { %v2739_v15 = vrot.slane %v2610_v14, 5  ;;  %v733_v11 = vld [vmem:[#allocation2 + $0x78] sm:$0xf]  ;;  %v3301_v34 = vrot.slane %v3299_v42, 4  ;;  %v3304_v39 = vrot.slane %v3302_v44, 5  ;;  %v3310_v45 = vrot.slane %v3308_v57, 5 }
  0xfb   : > { %v3314_v13 = vrot.slane %v3312_v36, 4  ;;  %1523 = vrot.lane.b32.xlu1 %v4801_v52, %s5470_s22  ;;  %v734_v28 = vsel %vm5557_vm8, %v505_v12, %v733_v11  ;;  %v2436_v19 = vrot.slane %v2434_v47, 4  ;;  %v2437_v49 = vshll.u32 %v2112_v40, 16  ;;  %v5422_v63 = vld [vmem:[#allocation2 + $0x6c] sm:$0xff]   ;;  %v5438_v12 = vld [vmem:[#allocation2 + $0x54] sm:$0xff]  }
  0xfc   : > { %v3305_v35 = vor.u32 %v3304_v39, %v3301_v34  ;;  %735 = vst [vmem:[#allocation2 + $0x78] sm:$0xf] %v734_v28  ;;  %v2443_v16 = vshll.u32 %v2113_v6, 16  ;;  %v2447_v24 = vshrl.u32 %v2113_v6, 16  ;;  %v2741_v30 = vrot.slane %v2739_v15, 4  ;;  %v6508_v48 = vpop.permute.xlu0 %3046  ;;  %1015 = vst.msk [vmem:[#allocation3 + $0xa8] sm:$0xff] %vm1007_vm15, %v5438_v12 }
  0xfd   : > { %v3315_v9 = vor.u32 %v3314_v13, %v3310_v45  ;;  %v2439_v41 = vrot.slane %v2437_v49, 5  ;;  %v2453_v2 = vshll.u32 %v2114_v62, 16  ;;  %v286_v38 = vsel %vm5519_vm4, 0, %v285_v0  ;;  %v1051_v47 = vld [vmem:[#allocation2 + $0x6c] sm:$0xf] }
  0xfe   : > { %v3105_v22 = vld [vmem:[#allocation2 + $0x74] sm:$0x1]  ;;  %v3306_v33 = vrot.slane %v3305_v35, 4  ;;  %287 = vst [vmem:[#allocation2 + $0x80] sm:$0x1] %v286_v38  ;;  %v1514_v43 = vpop.permute.xlu1 %1513  ;;  %v2445_v20 = vrot.slane %v2443_v16, 5  ;;  %v6505_v32 = vsel %vm5626_vm11, %v4881_v58, %v2739_v15 }
  0xff   : > { %v3316_v54 = vrot.slane %v3315_v9, 4  ;;  %v2611_v4 = vld [vmem:[#allocation2 + $0x74] sm:$0x1]  ;;  %v3318_v25 = vshll.u32 %v3105_v22, 16  ;;  %1847 = vrot.lane.b32.xlu1 %v4833_v7, %s5468_s20  ;;  %v2440_v40 = vor.u32 %v2439_v41, %v2436_v19  ;;  %1559 = vst.msk [vmem:[#allocation3 + $0x48] sm:$0xff] %vm1555_vm0, %v1514_v43  ;;  %v515_v23 = vrot.slane %v6469_v59, 4 }
 0x100   : > { %v2742_v37 = vrot.slane %v2611_v4, 5  ;;  %v2449_v60 = vrot.slane %v2447_v24, 4  ;;  %v3107_v27 = vld [vmem:[#allocation2 + $0x7c] sm:$0xf]  ;;  %v3311_v21 = vsel %vm5682_vm14, %v3306_v33, %v3310_v45  ;;  %v2455_v42 = vrot.slane %v2453_v2, 5  ;;  %v5439_v43 = vld [vmem:[#allocation2 + $0x60] sm:$0xff]  }
 0x101   : > { %v3320_v56 = vrot.slane %v3318_v25, 5  ;;  %v2441_v53 = vrot.slane %v2440_v40, 4  ;;  %v3332_v17 = vshll.u32 %v3107_v27, 16  ;;  %v3336_v44 = vshrl.u32 %v3107_v27, 16  ;;  %v6514_v59 = vld [vmem:[#allocation2 + $0x7c] sm:$0xf] }
 0x102   : > { %v2743_v46 = vsel %vm5626_vm11, %v2741_v30, %v2742_v37  ;;  %v2450_v6 = vor.u32 %v2449_v60, %v2445_v20  ;;  %v1292_v15 = vshrl.u32 %v1051_v47, 16  ;;  %v1052_v34 = vld [vmem:[#allocation2 + $0x70] sm:$0xf]  ;;  %v232_v39 = vld [vmem:[#allocation2 + $0x84] sm:$0x1]  ;;  %v2746_v19 = vrot.slane %v6514_v59, 5 }
 0x103   : > { %v3321_v57 = vsel %vm5682_vm14, %v3316_v54, %v3320_v56  ;;  %v2446_v36 = vsel %vm5682_vm14, %v2441_v53, %v2445_v20  ;;  %v3106_v14 = vld [vmem:[#allocation2 + $0x78] sm:$0xf]  ;;  %v6520_v62 = vrot.slane %v3332_v17, 5  ;;  %2024 = vrot.lane.b32.xlu1 %v5422_v63, %s5469_s21  ;;  %v6525_v45 = vld [vmem:[%s5535_s19 + $0x50] sm:$0xf]  ;;  %v4897_v13 = vcombine.low %v6505_v32, %v2743_v46  ;;  %1016 = vst.msk [vmem:[#allocation3 + $0xc0] sm:$0xff] %vm1007_vm15, %v5439_v43 }
 0x104   : > { %v4928_v52 = vcombine.low %v3311_v21, %v3321_v57  ;;  %v2451_v11 = vrot.slane %v2450_v6, 4  ;;  %v3323_v7 = vshrl.u32 %v3106_v14, 16  ;;  %v3326_v0 = vshll.u32 %v3106_v14, 16  ;;  %v1053_v49 = vld [vmem:[#allocation2 + $0x74] sm:$0x1]  ;;  %v1838_v35 = vpop.permute.xlu1 %1837  ;;  %v5420_v25 = vld [vmem:[#allocation2 + $0x78] sm:$0xff]  }
 0x105   : > { %v737_v58 = vld [vmem:[#allocation2 + $0x80] sm:$0x1]  ;;  %v3338_v28 = vrot.slane %v3336_v44, 4  ;;  %v2612_v41 = vld [vmem:[#allocation2 + $0x78] sm:$0xe]  ;;  %1883 = vst.msk [vmem:[#allocation3 + $0x48] sm:$0xff] %vm1879_vm1, %v1838_v35 }
 0x106   : > { %3576 = vrot.lane.b32.xlu0 %v4928_v52, %s5469_s21  ;;  %v2456_v9 = vsel %vm5682_vm14, %v2451_v11, %v2455_v42  ;;  %v738_v16 = vsel %vm5510_vm2, %v515_v23, %v737_v58  ;;  %v3325_v24 = vrot.slane %v3323_v7, 4  ;;  %v3328_v30 = vrot.slane %v3326_v0, 5  ;;  %v333_v2 = vld [vmem:[%s5535_s19 + $0x54] sm:$0xf]  ;;  %v6535_v38 = vpop.permute.xlu0 %3590  ;;  %v1599_v32 = vld [vmem:[#allocation2 + $0x6c] sm:$0xe] }
 0x107   : > { %v4870_v22 = vcombine.low %v2446_v36, %v2456_v9  ;;  %739 = vst [vmem:[#allocation2 + $0x80] sm:$0x1] %v738_v16  ;;  %v3339_v33 = vor.u32 %v3338_v28, %v6520_v62  ;;  %v1294_v54 = vrot.slane %v1292_v15, 4  ;;  %v1295_v4 = vshll.u32 %v1051_v47, 16  ;;  %v1600_v59 = vld [vmem:[#allocation2 + $0x70] sm:$0xf] }
 0x108   : > { %v3329_v37 = vor.u32 %v3328_v30, %v3325_v24  ;;  %v1301_v40 = vshll.u32 %v1052_v34, 16  ;;  %v1305_v20 = vshrl.u32 %v1052_v34, 16  ;;  %v1311_v63 = vshll.u32 %v1053_v49, 16  ;;  %v2015_v56 = vpop.permute.xlu1 %2014  ;;  %v2079_v0 = vld [vmem:[#allocation2 + $0x24] sm:$0xf]  ;;  %v5440_v34 = vld [vmem:[#allocation2 + $0x6c] sm:$0xff]  }
 0x109   : > { %2582 = vst.msk [vmem:[#allocation3 + $0x140] sm:$0xff] %vm1007_vm15, %v4870_v22  ;;  %v4882_v23 = vrot.slane %v2612_v41, 9  ;;  %v1297_v60 = vrot.slane %v1295_v4, 5  ;;  %v233_v27 = vsel %vm5510_vm2, 0, %v232_v39  ;;  %v517_v21 = vshrl.u32 %v6525_v45, 16  ;;  %1017 = vst.msk [vmem:[#allocation3 + $0xd8] sm:$0xff] %vm1007_vm15, %v5440_v34 }
 0x10a   : > { %2857 = vrot.lane.b32.xlu0 %v4897_v13, %s5470_s22  ;;  %2902 = vst.msk [vmem:[#allocation3 + $0x140] sm:$0xff] %vm1555_vm0, %v6324_v10  ;;  %v6547_v47 = vrot.slane %v3339_v33, 4  ;;  %v2748_v53 = vrot.slane %v2746_v19, 4  ;;  %v1303_v17 = vrot.slane %v1301_v40, 5  ;;  %v1307_v12 = vrot.slane %v1305_v20, 4  ;;  %v6555_v15 = vpop.permute.xlu0 %2847 }
 0x10b   : > { %234 = vst [vmem:[#allocation2 + $0x84] sm:$0x1] %v233_v27  ;;  %2060 = vst.msk [vmem:[#allocation3 + $0x48] sm:$0xff] %vm2056_vm3, %v2015_v56  ;;  %v1298_v46 = vor.u32 %v1297_v60, %v1294_v54  ;;  %v519_v6 = vrot.slane %v517_v21, 7  ;;  %v520_v42 = vshll.u32 %v6525_v45, 16  ;;  %v525_v44 = vshrl.u32 %v333_v2, 16 }
 0x10c   : > { %3079 = vst.msk [vmem:[#allocation3 + $0x140] sm:$0xff] %vm1879_vm1, %v6343_v18  ;;  %v3330_v57 = vrot.slane %v3329_v37, 4  ;;  %v1308_v36 = vor.u32 %v1307_v12, %v1303_v17  ;;  %v1313_v10 = vrot.slane %v1311_v63, 5  ;;  %v528_v14 = vshll.u32 %v333_v2, 16  ;;  %v1601_v30 = vld [vmem:[#allocation2 + $0x74] sm:$0x1] }
 0x10d   : > { %3623 = vst.msk [vmem:[#allocation3 + $0x140] sm:$0xff] %vm2056_vm3, %v6402_v8  ;;  %v1299_v52 = vrot.slane %v1298_v46, 4  ;;  %v523_v11 = vrot.slane %v519_v6, 4  ;;  %v6557_v7 = vrot.slane %v525_v44, 7  ;;  %v4818_v18 = vrot.slane %v1599_v32, 9  ;;  %v1538_v49 = vpop.permute.xlu1 %1537  ;;  %v3953_v60 = vld [vmem:[#allocation3 + $0x138] sm:$0xff] }
 0x10e   : > { %3034 = vrot.lane.b32.xlu0 %v5420_v25, %s5468_s20  ;;  %v3108_v39 = vld [vmem:[#allocation2 + $0x80] sm:$0x1]  ;;  %v6562_v13 = vsel %vm5626_vm11, %v4882_v23, %v2746_v19  ;;  %v1309_v58 = vrot.slane %v1308_v36, 4  ;;  %v522_v8 = vor.u32 %v520_v42, %v519_v6  ;;  %v1736_v28 = vrot.slane %v1600_v59, 5  ;;  %v2080_v41 = vld [vmem:[#allocation2 + $0x28] sm:$0xf]  ;;  %v6584_v27 = vpop.permute.xlu0 %3024 }
 0x10f   : > { %v2614_v45 = vld [vmem:[#allocation2 + $0x80] sm:$0x1]  ;;  %v3342_v35 = vshll.u32 %v3108_v39, 16  ;;  %v1304_v16 = vsel %vm5682_vm14, %v1299_v52, %v1303_v17  ;;  %v530_v24 = vor.u32 %v528_v14, %v6557_v7  ;;  %1571 = vst.msk [vmem:[#allocation3 + $0x168] sm:$0xff] %vm1555_vm0, %v1538_v49  ;;  %v3335_v19 = vsel %vm5682_vm14, %v3330_v57, %v6520_v62  ;;  %v2081_v54 = vld [vmem:[#allocation2 + $0x2c] sm:$0x1] }
 0x110   : > { %v2749_v9 = vrot.slane %v2614_v45, 5  ;;  %v1314_v2 = vsel %vm5682_vm14, %v1309_v58, %v1313_v10  ;;  %v532_v22 = vrot.slane %v6557_v7, 4  ;;  %v1738_v33 = vrot.slane %v1736_v28, 4  ;;  %v288_v23 = vld [vmem:[#allocation2 + $0x8c] sm:$0x1] }
 0x111   : > { %v3344_v4 = vrot.slane %v3342_v35, 5  ;;  %v4802_v43 = vcombine.low %v1304_v16, %v1314_v2  ;;  %v531_v25 = vsel %vm5548_vm7, %v523_v11, %v530_v24  ;;  %v1737_v40 = vsel %vm5626_vm11, %v4818_v18, %v1736_v28  ;;  %v1862_v26 = vpop.permute.xlu1 %1861  ;;  %v1054_v12 = vld [vmem:[#allocation2 + $0x78] sm:$0xf]  ;;  %v1055_v59 = vld [vmem:[#allocation2 + $0x7c] sm:$0xf] }
 0x112   : > { %v740_v37 = vld [vmem:[#allocation2 + $0x84] sm:$0xf]  ;;  %v2750_v20 = vsel %vm5626_vm11, %v2748_v53, %v2749_v9  ;;  %743 = vst.msk [vmem:[#allocation2 + $0x88] sm:$0xf] %vm667_vm6, %v531_v25  ;;  %v1739_v63 = vrot.slane %v1601_v30, 5  ;;  %v2170_v32 = vshrl.u32 %v2079_v0, 16 }
 0x113   : > { %v741_v62 = vsel %vm5557_vm8, %v522_v8, %v740_v37  ;;  %v3345_v21 = vsel %vm5682_vm14, %v6547_v47, %v3344_v4  ;;  %1525 = vrot.lane.b32.xlu1 %v4802_v43, %s5470_s22  ;;  %v2173_v56 = vshll.u32 %v2079_v0, 16  ;;  %v2179_v53 = vshll.u32 %v2080_v41, 16  ;;  %1895 = vst.msk [vmem:[#allocation3 + $0x168] sm:$0xff] %vm1879_vm1, %v1862_v26  ;;  %v1056_v14 = vld [vmem:[#allocation2 + $0x80] sm:$0x1]  ;;  %v5425_v8 = vld [vmem:[#allocation2 + $0x78] sm:$0xff]  }
 0x114   : > { %742 = vst [vmem:[#allocation2 + $0x84] sm:$0xf] %v741_v62  ;;  %v2183_v31 = vshrl.u32 %v2080_v41, 16  ;;  %v3954_v17 = vld [vmem:[#allocation3 + $0x140] sm:$0xff]  ;;  %v4929_v46 = vcombine.low %v3335_v19, %v3345_v21  ;;  %v1740_v6 = vsel %vm5626_vm11, %v1738_v33, %v1739_v63  ;;  %v2172_v42 = vrot.slane %v2170_v32, 4 }
 0x115   : > { %v2189_v44 = vshll.u32 %v2081_v54, 16  ;;  %4297 = vmatprep.mubr.bf16.mxu1 %v3954_v17  ;;  %v4834_v57 = vcombine.low %v1737_v40, %v1740_v6  ;;  %v2175_v47 = vrot.slane %v2173_v56, 5  ;;  %v2181_v36 = vrot.slane %v2179_v53, 5  ;;  %v2039_v34 = vpop.permute.xlu1 %2038  ;;  %v1602_v54 = vld [vmem:[#allocation2 + $0x78] sm:$0xe] }
 0x116   : > { %v2185_v10 = vrot.slane %v2183_v31, 4  ;;  %4298 = vmatmul.mubr.bf16.gmra.mrb[4].mxu1 %v3953_v60  ;;  %3578 = vrot.lane.b32.xlu0 %v4929_v46, %s5469_s21  ;;  %v4898_v52 = vcombine.low %v6562_v13, %v2750_v20  ;;  %v289_v11 = vsel %vm5519_vm4, 0, %v288_v23  ;;  %v1316_v18 = vshrl.u32 %v1054_v12, 16  ;;  %2072 = vst.msk [vmem:[#allocation3 + $0x168] sm:$0xff] %vm2056_vm3, %v2039_v34  ;;  %v1603_v62 = vld [vmem:[#allocation2 + $0x7c] sm:$0xf] }
 0x117   : > { %v1319_v0 = vshll.u32 %v1054_v12, 16  ;;  %1849 = vrot.lane.b32.xlu1 %v4834_v57, %s5468_s20  ;;  %v2176_v39 = vor.u32 %v2175_v47, %v2172_v42  ;;  %v2191_v58 = vrot.slane %v2189_v44, 5  ;;  %290 = vst [vmem:[#allocation2 + $0x8c] sm:$0x1] %v289_v11  ;;  %v1325_v28 = vshll.u32 %v1055_v59, 16 }
 0x118   : > { %v2186_v45 = vor.u32 %v2185_v10, %v2181_v36  ;;  %v1318_v49 = vrot.slane %v1316_v18, 4  ;;  %v1329_v9 = vshrl.u32 %v1055_v59, 16  ;;  %v1335_v13 = vshll.u32 %v1056_v14, 16  ;;  %v6599_v16 = vpop.permute.xlu0 %3568  ;;  %v1604_v60 = vld [vmem:[#allocation2 + $0x80] sm:$0x1] }
 0x119   : > { %v1321_v35 = vrot.slane %v1319_v0, 5  ;;  %v2177_v3 = vrot.slane %v2176_v39, 4  ;;  %v3110_v30 = vld [vmem:[#allocation2 + $0x88] sm:$0xf]  ;;  %v2115_v26 = vld [vmem:[#allocation2 + $0xb4] sm:$0xf] }
 0x11a   : > { %v2187_v24 = vrot.slane %v2186_v45, 4  ;;  %2859 = vrot.lane.b32.xlu0 %v4898_v52, %s5470_s22  ;;  %v3356_v2 = vshll.u32 %v3110_v30, 16  ;;  %v2616_v20 = vld [vmem:[#allocation2 + $0x88] sm:$0xf]  ;;  %v3360_v32 = vshrl.u32 %v3110_v30, 16  ;;  %v1327_v6 = vrot.slane %v1325_v28, 5 }
 0x11b   : > { %v5423_v41 = vld [vmem:[#allocation2 + $0x84] sm:$0xff]   ;;  %v1322_v33 = vor.u32 %v1321_v35, %v1318_v49  ;;  %v2182_v4 = vsel %vm5682_vm14, %v2177_v3, %v2181_v36  ;;  %2026 = vrot.lane.b32.xlu1 %v5425_v8, %s5469_s21  ;;  %v2753_v31 = vrot.slane %v2616_v20, 5  ;;  %v1331_v42 = vrot.slane %v1329_v9, 4  ;;  %v2116_v7 = vld [vmem:[#allocation2 + $0xb8] sm:$0xf] }
 0x11c   : > { %v3109_v19 = vld [vmem:[#allocation2 + $0x84] sm:$0xf]  ;;  %v2192_v43 = vsel %vm5682_vm14, %v2187_v24, %v2191_v58  ;;  %v6607_v53 = vrot.slane %v3356_v2, 5  ;;  %v3362_v12 = vrot.slane %v3360_v32, 4  ;;  %v6611_v44 = vpop.permute.xlu0 %2871  ;;  %v1516_v59 = vpop.permute.xlu1 %1515  ;;  %v1337_v36 = vrot.slane %v1335_v13, 5 }
 0x11d   : > { %v3347_v25 = vshrl.u32 %v3109_v19, 16  ;;  %v3350_v37 = vshll.u32 %v3109_v19, 16  ;;  %v2615_v40 = vld [vmem:[#allocation2 + $0x84] sm:$0xe]  ;;  %v4859_v63 = vcombine.low %v2182_v4, %v2192_v43  ;;  %v1323_v46 = vrot.slane %v1322_v33, 4  ;;  %1560 = vst.msk [vmem:[#allocation3 + $0x60] sm:$0xff] %vm1555_vm0, %v1516_v59 }
 0x11e   : > { %v4883_v23 = vrot.slane %v2615_v40, 9  ;;  %3036 = vrot.lane.b32.xlu0 %v5423_v41, %s5468_s20  ;;  %v744_v17 = vld [vmem:[#allocation2 + $0x8c] sm:$0x1]  ;;  %v4819_v10 = vrot.slane %v1602_v54, 9  ;;  %v2755_v52 = vrot.slane %v2753_v31, 4  ;;  %v1743_v11 = vrot.slane %v1603_v62, 5 }
 0x11f   : > { %v3349_v21 = vrot.slane %v3347_v25, 4  ;;  %v3352_v56 = vrot.slane %v3350_v37, 5  ;;  %2571 = vst.msk [vmem:[#allocation3 + $0x38] sm:$0xff] %vm1007_vm15, %v4859_v63  ;;  %v745_v57 = vsel %vm5510_vm2, %v532_v22, %v744_v17  ;;  %v2117_v18 = vld [vmem:[#allocation2 + $0xbc] sm:$0x1]  ;;  %v3363_v1 = vor.u32 %v3362_v12, %v6607_v53  ;;  %v3920_v25 = vld [vmem:[#allocation3 + $0x30] sm:$0xff] }
 0x120   : > { %2891 = vst.msk [vmem:[#allocation3 + $0x38] sm:$0xff] %vm1555_vm0, %v6423_v55  ;;  %746 = vst [vmem:[#allocation2 + $0x8c] sm:$0x1] %v745_v57  ;;  %v6624_v14 = vsel %vm5626_vm11, %v4883_v23, %v2753_v31  ;;  %v1332_v55 = vor.u32 %v1331_v42, %v1327_v6  ;;  %v1746_v22 = vrot.slane %v1604_v60, 5  ;;  %v2458_v0 = vshrl.u32 %v2115_v26, 16  ;;  %v1840_v28 = vpop.permute.xlu1 %1839  ;;  %v6640_v19 = vpop.permute.xlu0 %3048  ;;  %v5441_v37 = vld [vmem:[#allocation2 + $0x78] sm:$0xff]  }
 0x121   : > { %v3353_v47 = vor.u32 %v3352_v56, %v3349_v21  ;;  %3068 = vst.msk [vmem:[#allocation3 + $0x38] sm:$0xff] %vm1879_vm1, %v6452_v51  ;;  %v2461_v34 = vshll.u32 %v2115_v26, 16  ;;  %v3112_v39 = vld [vmem:[#allocation2 + $0x90] sm:$0xf]  ;;  %v1328_v51 = vsel %vm5682_vm14, %v1323_v46, %v1327_v6  ;;  %v1745_v8 = vrot.slane %v1743_v11, 4  ;;  %1884 = vst.msk [vmem:[#allocation3 + $0x60] sm:$0xff] %vm1879_vm1, %v1840_v28 }
 0x122   : > { %3612 = vst.msk [vmem:[#allocation3 + $0x38] sm:$0xff] %vm2056_vm3, %v6475_v5  ;;  %v1333_v58 = vrot.slane %v1332_v55, 4  ;;  %v1744_v49 = vsel %vm5626_vm11, %v4819_v10, %v1743_v11  ;;  %v2460_v35 = vrot.slane %v2458_v0, 4  ;;  %v2467_v13 = vshll.u32 %v2116_v7, 16  ;;  %v3113_v41 = vld [vmem:[#allocation2 + $0x94] sm:$0xf] }
 0x123   : > { %v6629_v45 = vrot.slane %v3353_v47, 4  ;;  %v2463_v9 = vrot.slane %v2461_v34, 5  ;;  %v1747_v3 = vsel %vm5626_vm11, %v1745_v8, %v1746_v22  ;;  %v2471_v24 = vshrl.u32 %v2116_v7, 16  ;;  %v3114_v43 = vld [vmem:[#allocation2 + $0x98] sm:$0x1]  ;;  %1018 = vst.msk [vmem:[#allocation3 + $0xf0] sm:$0xff] %vm1007_vm15, %v5441_v37 }
 0x124   : > { %v1338_v5 = vsel %vm5682_vm14, %v1333_v58, %v1337_v36  ;;  %v2477_v30 = vshll.u32 %v2117_v18, 16  ;;  %v3364_v2 = vrot.slane %v3363_v1, 4  ;;  %v2469_v4 = vrot.slane %v2467_v13, 5  ;;  %v2017_v32 = vpop.permute.xlu1 %2016  ;;  %v2618_v59 = vld [vmem:[#allocation2 + $0x90] sm:$0xe]  ;;  %v5428_v1 = vld [vmem:[#allocation2 + $0x84] sm:$0xff]   ;;  %v6653_v0 = vpop.permute.xlu0 %3592 }
 0x125   : > { %v4803_v33 = vcombine.low %v1328_v51, %v1338_v5  ;;  %v2464_v54 = vor.u32 %v2463_v9, %v2460_v35  ;;  %v2473_v40 = vrot.slane %v2471_v24, 4  ;;  %v3371_v62 = vshrl.u32 %v3112_v39, 16  ;;  %2061 = vst.msk [vmem:[#allocation3 + $0x60] sm:$0xff] %vm2056_vm3, %v2017_v32  ;;  %v2619_v10 = vld [vmem:[#allocation2 + $0x94] sm:$0xf] }
 0x126   : > { %v2479_v20 = vrot.slane %v2477_v30, 5  ;;  %v3374_v63 = vshll.u32 %v3112_v39, 16  ;;  %v3359_v60 = vsel %vm5682_vm14, %v6629_v45, %v6607_v53  ;;  %v4835_v21 = vcombine.low %v1744_v49, %v1747_v3  ;;  %v2620_v22 = vld [vmem:[#allocation2 + $0x98] sm:$0x1]  ;;  %v1057_v58 = vld [vmem:[#allocation2 + $0x84] sm:$0xf] }
 0x127   : > { %v3111_v23 = vld [vmem:[#allocation2 + $0x8c] sm:$0x1]  ;;  %1527 = vrot.lane.b32.xlu1 %v4803_v33, %s5470_s22  ;;  %v2465_v56 = vrot.slane %v2464_v54, 4  ;;  %v3380_v31 = vshll.u32 %v3113_v41, 16  ;;  %v2474_v46 = vor.u32 %v2473_v40, %v2469_v4  ;;  %v3373_v6 = vrot.slane %v3371_v62, 4 }
 0x128   : > { %v2617_v26 = vld [vmem:[#allocation2 + $0x8c] sm:$0x1]  ;;  %v3366_v17 = vshll.u32 %v3111_v23, 16  ;;  %v3376_v53 = vrot.slane %v3374_v63, 5  ;;  %v3384_v36 = vshrl.u32 %v3113_v41, 16  ;;  %v3390_v18 = vshll.u32 %v3114_v43, 16 }
 0x129   : > { %v2756_v12 = vrot.slane %v2617_v26, 5  ;;  %v3921_v42 = vld [vmem:[#allocation3 + $0x38] sm:$0xff]  ;;  %v2470_v57 = vsel %vm5682_vm14, %v2465_v56, %v2469_v4  ;;  %v3382_v47 = vrot.slane %v3380_v31, 5  ;;  %v2475_v7 = vrot.slane %v2474_v46, 4  ;;  %v1058_v8 = vld [vmem:[#allocation2 + $0x88] sm:$0xf] }
 0x12a   : > { %4209 = vmatprep.mubr.bf16.mxu0 %v3921_v42  ;;  %v3368_v55 = vrot.slane %v3366_v17, 5  ;;  %v3377_v39 = vor.u32 %v3376_v53, %v3373_v6  ;;  %v3386_v45 = vrot.slane %v3384_v36, 4  ;;  %v4884_v51 = vrot.slane %v2618_v59, 9  ;;  %v1605_v24 = vld [vmem:[#allocation2 + $0x84] sm:$0xe]  ;;  %v1518_v30 = vpop.permute.xlu1 %1517 }
 0x12b   : > { %v2757_v11 = vsel %vm5626_vm11, %v2755_v52, %v2756_v12  ;;  %4210 = vmatmul.mubr.bf16.gmra.mrb[8].mxu0 %v3920_v25  ;;  %1851 = vrot.lane.b32.xlu1 %v4835_v21, %s5468_s20  ;;  %v2480_v52 = vsel %vm5682_vm14, %v2475_v7, %v2479_v20  ;;  %v3392_v49 = vrot.slane %v3390_v18, 5  ;;  %v2760_v35 = vrot.slane %v2619_v10, 5  ;;  %v1607_v43 = vld [vmem:[#allocation2 + $0x8c] sm:$0x1]  ;;  %v2082_v25 = vld [vmem:[#allocation2 + $0x30] sm:$0xf]  ;;  %v6677_v21 = vpop.permute.xlu0 %2849 }
 0x12c   : > { %v4899_v34 = vcombine.low %v6624_v14, %v2757_v11  ;;  %v3369_v28 = vsel %vm5682_vm14, %v3364_v2, %v3368_v55  ;;  %v4871_v13 = vcombine.low %v2470_v57, %v2480_v52  ;;  %v3378_v5 = vrot.slane %v3377_v39, 4  ;;  %v1059_v14 = vld [vmem:[#allocation2 + $0x8c] sm:$0x1]  ;;  %v1606_v2 = vld [vmem:[#allocation2 + $0x88] sm:$0xf]  ;;  %1561 = vst.msk [vmem:[#allocation3 + $0x78] sm:$0xff] %vm1555_vm0, %v1518_v30 }
 0x12d   : > { %v4930_v9 = vcombine.low %v3359_v60, %v3369_v28  ;;  %v3387_v3 = vor.u32 %v3386_v45, %v3382_v47  ;;  %v6663_v41 = vsel %vm5626_vm11, %v4884_v51, %v2760_v35  ;;  %v2762_v33 = vrot.slane %v2760_v35, 4  ;;  %v2083_v63 = vld [vmem:[#allocation2 + $0x34] sm:$0xf]  ;;  %v5442_v56 = vld [vmem:[#allocation2 + $0x84] sm:$0xff]   ;;  %v2084_v57 = vld [vmem:[#allocation2 + $0x38] sm:$0x1] }
 0x12e   : > { %v2763_v54 = vrot.slane %v2620_v22, 5  ;;  %v1340_v4 = vshrl.u32 %v1057_v58, 16  ;;  %2583 = vst.msk [vmem:[#allocation3 + $0x158] sm:$0xff] %vm1007_vm15, %v4871_v13  ;;  %v3383_v37 = vsel %vm5682_vm14, %v3378_v5, %v3382_v47  ;;  %v1343_v20 = vshll.u32 %v1057_v58, 16  ;;  %1019 = vst.msk [vmem:[#allocation3 + $0x108] sm:$0xff] %vm1007_vm15, %v5442_v56  ;;  %v5426_v47 = vld [vmem:[#allocation2 + $0x90] sm:$0xff]  }
 0x12f   : > { %3580 = vrot.lane.b32.xlu0 %v4930_v9, %s5469_s21  ;;  %v3388_v40 = vrot.slane %v3387_v3, 4  ;;  %2028 = vrot.lane.b32.xlu1 %v5428_v1, %s5469_s21  ;;  %v1349_v62 = vshll.u32 %v1058_v8, 16  ;;  %2903 = vst.msk [vmem:[#allocation3 + $0x158] sm:$0xff] %vm1555_vm0, %v6494_v50  ;;  %v1353_v60 = vshrl.u32 %v1058_v8, 16  ;;  %v1359_v26 = vshll.u32 %v1059_v14, 16  ;;  %v6692_v52 = vpop.permute.xlu0 %3026 }
 0x130   : > { %v6675_v32 = vsel %vm5626_vm11, %v2762_v33, %v2763_v54  ;;  %v1342_v23 = vrot.slane %v1340_v4, 4  ;;  %3080 = vst.msk [vmem:[#allocation3 + $0x158] sm:$0xff] %vm1879_vm1, %v6508_v48  ;;  %v1345_v50 = vrot.slane %v1343_v20, 5  ;;  %v4820_v59 = vrot.slane %v1605_v24, 9  ;;  %v1842_v53 = vpop.permute.xlu1 %1841  ;;  %v3115_v22 = vld [vmem:[#allocation2 + $0x9c] sm:$0xf] }
 0x131   : > { %v3393_v31 = vsel %vm5682_vm14, %v3388_v40, %v3392_v49  ;;  %v4900_v17 = vcombine.low %v6663_v41, %v6675_v32  ;;  %v1351_v12 = vrot.slane %v1349_v62, 5  ;;  %v1355_v6 = vrot.slane %v1353_v60, 4  ;;  %3624 = vst.msk [vmem:[#allocation3 + $0x158] sm:$0xff] %vm2056_vm3, %v6535_v38  ;;  %v3116_v5 = vld [vmem:[#allocation2 + $0xa0] sm:$0xf]  ;;  %v3956_v20 = vld [vmem:[#allocation3 + $0x150] sm:$0xff] }
 0x132   : > { %v4931_v46 = vcombine.low %v3383_v37, %v3393_v31  ;;  %v1361_v42 = vrot.slane %v1359_v26, 5  ;;  %v1346_v48 = vor.u32 %v1345_v50, %v1342_v23  ;;  %v1750_v36 = vrot.slane %v1606_v2, 5  ;;  %1885 = vst.msk [vmem:[#allocation3 + $0x78] sm:$0xff] %vm1879_vm1, %v1842_v53  ;;  %v3117_v3 = vld [vmem:[#allocation2 + $0xa4] sm:$0x1] }
 0x133   : > { %2861 = vrot.lane.b32.xlu0 %v4899_v34, %s5470_s22  ;;  %v1753_v10 = vrot.slane %v1607_v43, 5  ;;  %v2194_v55 = vshrl.u32 %v2082_v25, 16  ;;  %v1356_v11 = vor.u32 %v1355_v6, %v1351_v12  ;;  %v2197_v7 = vshll.u32 %v2082_v25, 16  ;;  %v2118_v4 = vld [vmem:[#allocation2 + $0xc0] sm:$0xf] }
 0x134   : > { %v2203_v18 = vshll.u32 %v2083_v63, 16  ;;  %v2207_v1 = vshrl.u32 %v2083_v63, 16  ;;  %v1347_v38 = vrot.slane %v1346_v48, 4  ;;  %v1751_v39 = vsel %vm5626_vm11, %v4820_v59, %v1750_v36  ;;  %v2019_v49 = vpop.permute.xlu1 %2018  ;;  %v2119_v31 = vld [vmem:[#allocation2 + $0xc4] sm:$0xf] }
 0x135   : > { %v1752_v45 = vrot.slane %v1750_v36, 4  ;;  %v2196_v51 = vrot.slane %v2194_v55, 4  ;;  %v1357_v58 = vrot.slane %v1356_v11, 4  ;;  %v2199_v34 = vrot.slane %v2197_v7, 5  ;;  %2062 = vst.msk [vmem:[#allocation3 + $0x78] sm:$0xff] %vm2056_vm3, %v2019_v49  ;;  %v5429_v7 = vld [vmem:[#allocation2 + $0x9c] sm:$0xff]  }
 0x136   : > { %v2205_v8 = vrot.slane %v2203_v18, 5  ;;  %v2209_v28 = vrot.slane %v2207_v1, 4  ;;  %v1352_v35 = vsel %vm5682_vm14, %v1347_v38, %v1351_v12  ;;  %v2213_v13 = vshll.u32 %v2084_v57, 16  ;;  %v2120_v53 = vld [vmem:[#allocation2 + $0xc8] sm:$0x1]  ;;  %v6708_v48 = vpop.permute.xlu0 %3570  ;;  %v5431_v1 = vld [vmem:[#allocation2 + $0x90] sm:$0xff]  }
 0x137   : > { %3038 = vrot.lane.b32.xlu0 %v5426_v47, %s5468_s20  ;;  %v1754_v9 = vsel %vm5626_vm11, %v1752_v45, %v1753_v10  ;;  %v3395_v14 = vshrl.u32 %v3115_v22, 16  ;;  %v1362_v24 = vsel %vm5682_vm14, %v1357_v58, %v1361_v42  ;;  %v2200_v33 = vor.u32 %v2199_v34, %v2196_v51  ;;  %v2085_v47 = vld [vmem:[#allocation2 + $0x3c] sm:$0xf]  ;;  %v2086_v58 = vld [vmem:[#allocation2 + $0x40] sm:$0xf] }
 0x138   : > { %v4836_v30 = vcombine.low %v1751_v39, %v1754_v9  ;;  %v2210_v54 = vor.u32 %v2209_v28, %v2205_v8  ;;  %v4804_v2 = vcombine.low %v1352_v35, %v1362_v24  ;;  %v2215_v43 = vrot.slane %v2213_v13, 5  ;;  %v3957_v40 = vld [vmem:[#allocation3 + $0x158] sm:$0xff]  ;;  %v2087_v13 = vld [vmem:[#allocation2 + $0x44] sm:$0x1] }
 0x139   : > { %v3397_v25 = vrot.slane %v3395_v14, 4  ;;  %v3398_v37 = vshll.u32 %v3115_v22, 16  ;;  %v2201_v62 = vrot.slane %v2200_v33, 4  ;;  %v3404_v23 = vshll.u32 %v3116_v5, 16  ;;  %4305 = vmatprep.mubr.bf16.mxu1 %v3957_v40  ;;  %v2089_v33 = vld [vmem:[#allocation2 + $0x4c] sm:$0xf] }
 0x13a   : > { %v2211_v63 = vrot.slane %v2210_v54, 4  ;;  %v3408_v60 = vshrl.u32 %v3116_v5, 16  ;;  %1529 = vrot.lane.b32.xlu1 %v4804_v2, %s5470_s22  ;;  %v3414_v56 = vshll.u32 %v3117_v3, 16  ;;  %v2482_v50 = vshrl.u32 %v2118_v4, 16  ;;  %4306 = vmatmul.mubr.bf16.gmra.mrb[8].mxu1 %v3956_v20  ;;  %v2088_v3 = vld [vmem:[#allocation2 + $0x48] sm:$0xf]  ;;  %v6727_v54 = vpop.permute.xlu0 %2851 }
 0x13b   : > { %3582 = vrot.lane.b32.xlu0 %v4931_v46, %s5469_s21  ;;  %v3400_v26 = vrot.slane %v3398_v37, 5  ;;  %v2485_v12 = vshll.u32 %v2118_v4, 16  ;;  %v2206_v6 = vsel %vm5682_vm14, %v2201_v62, %v2205_v8  ;;  %v3406_v59 = vrot.slane %v3404_v23, 5  ;;  %v1520_v11 = vpop.permute.xlu1 %1519  ;;  %v3626_v62 = vld [vmem:[#allocation2 + $0x18] sm:$0xe] }
 0x13c   : > { %v2216_v42 = vsel %vm5682_vm14, %v2211_v63, %v2215_v43  ;;  %v3410_v57 = vrot.slane %v3408_v60, 4  ;;  %v3416_v10 = vrot.slane %v3414_v56, 5  ;;  %v2484_v55 = vrot.slane %v2482_v50, 4  ;;  %1562 = vst.msk [vmem:[#allocation3 + $0x90] sm:$0xff] %vm1555_vm0, %v1520_v11  ;;  %v3627_v56 = vld [vmem:[#allocation2 + $0x1c] sm:$0xf] }
 0x13d   : > { %v4860_v46 = vcombine.low %v2206_v6, %v2216_v42  ;;  %v3401_v36 = vor.u32 %v3400_v26, %v3397_v25  ;;  %v2487_v22 = vrot.slane %v2485_v12, 5  ;;  %v2491_v38 = vshll.u32 %v2119_v31, 16  ;;  %v2090_v25 = vld [vmem:[#allocation2 + $0x50] sm:$0x1]  ;;  %v3628_v42 = vld [vmem:[#allocation2 + $0x20] sm:$0x1] }
 0x13e   : > { %v3411_v18 = vor.u32 %v3410_v57, %v3406_v59  ;;  %v2495_v39 = vshrl.u32 %v2119_v31, 16  ;;  %1853 = vrot.lane.b32.xlu1 %v4836_v30, %s5468_s20  ;;  %v2501_v51 = vshll.u32 %v2120_v53, 16  ;;  %v2218_v34 = vshrl.u32 %v2085_v47, 16  ;;  %v3923_v57 = vld [vmem:[#allocation3 + $0x48] sm:$0xff] }
 0x13f   : > { %2863 = vrot.lane.b32.xlu0 %v4900_v17, %s5470_s22  ;;  %2572 = vst.msk [vmem:[#allocation3 + $0x50] sm:$0xff] %vm1007_vm15, %v4860_v46  ;;  %v3402_v45 = vrot.slane %v3401_v36, 4  ;;  %v2221_v8 = vshll.u32 %v2085_v47, 16  ;;  %v2488_v49 = vor.u32 %v2487_v22, %v2484_v55  ;;  %v2493_v35 = vrot.slane %v2491_v38, 5  ;;  %v3629_v36 = vld [vmem:[#allocation2 + $0x24] sm:$0xe]  ;;  %v6738_v22 = vpop.permute.xlu0 %3028 }
 0x140   : > { %2892 = vst.msk [vmem:[#allocation3 + $0x50] sm:$0xff] %vm1555_vm0, %v6555_v15  ;;  %v3412_v28 = vrot.slane %v3411_v18, 4  ;;  %v2497_v9 = vrot.slane %v2495_v39, 4  ;;  %v2503_v32 = vrot.slane %v2501_v51, 5  ;;  %v2220_v17 = vrot.slane %v2218_v34, 4 }
 0x141   : > { %v3407_v41 = vsel %vm5682_vm14, %v3402_v45, %v3406_v59  ;;  %3069 = vst.msk [vmem:[#allocation3 + $0x50] sm:$0xff] %vm1879_vm1, %v6584_v27  ;;  %v2223_v5 = vrot.slane %v2221_v8, 5  ;;  %v2489_v15 = vrot.slane %v2488_v49, 4  ;;  %v2227_v30 = vshll.u32 %v2086_v58, 16  ;;  %v3632_v34 = vld [vmem:[#allocation2 + $0x30] sm:$0xe] }
 0x142   : > { %v3417_v14 = vsel %vm5682_vm14, %v3412_v28, %v3416_v10  ;;  %3613 = vst.msk [vmem:[#allocation3 + $0x50] sm:$0xff] %vm2056_vm3, %v6599_v16  ;;  %v2498_v24 = vor.u32 %v2497_v9, %v2493_v35  ;;  %2030 = vrot.lane.b32.xlu1 %v5431_v1, %s5469_s21  ;;  %v2231_v2 = vshrl.u32 %v2086_v58, 16  ;;  %v2237_v43 = vshll.u32 %v2087_v13, 16  ;;  %v3630_v10 = vld [vmem:[#allocation2 + $0x28] sm:$0xf] }
 0x143   : > { %3040 = vrot.lane.b32.xlu0 %v5429_v7, %s5468_s20  ;;  %v4932_v4 = vcombine.low %v3407_v41, %v3417_v14  ;;  %v2224_v27 = vor.u32 %v2223_v5, %v2220_v17  ;;  %v2494_v37 = vsel %vm5682_vm14, %v2489_v15, %v2493_v35  ;;  %v2229_v16 = vrot.slane %v2227_v30, 5  ;;  %v3631_v1 = vld [vmem:[#allocation2 + $0x2c] sm:$0x1]  ;;  %v3633_v9 = vld [vmem:[#allocation2 + $0x34] sm:$0xf] }
 0x144   : > { %v2499_v40 = vrot.slane %v2498_v24, 4  ;;  %v2242_v20 = vshrl.u32 %v2088_v3, 16  ;;  %v2233_v23 = vrot.slane %v2231_v2, 4  ;;  %v2239_v60 = vrot.slane %v2237_v43, 5  ;;  %v3636_v30 = vld [vmem:[#allocation2 + $0x40] sm:$0xf] }
 0x145   : > { %v2225_v63 = vrot.slane %v2224_v27, 4  ;;  %v2245_v26 = vshll.u32 %v2088_v3, 16  ;;  %v2251_v12 = vshll.u32 %v2089_v33, 16  ;;  %v2255_v6 = vshrl.u32 %v2089_v33, 16  ;;  %v3635_v3 = vld [vmem:[#allocation2 + $0x3c] sm:$0xe] }
 0x146   : > { %v2504_v31 = vsel %vm5682_vm14, %v2499_v40, %v2503_v32  ;;  %v2244_v50 = vrot.slane %v2242_v20, 4  ;;  %v2234_v47 = vor.u32 %v2233_v23, %v2229_v16  ;;  %v2261_v7 = vshll.u32 %v2090_v25, 16  ;;  %v3637_v43 = vld [vmem:[#allocation2 + $0x44] sm:$0x1]  ;;  %v2091_v20 = vld [vmem:[#allocation2 + $0x54] sm:$0xf] }
 0x147   : > { %3584 = vrot.lane.b32.xlu0 %v4932_v4, %s5469_s21  ;;  %v4872_v59 = vcombine.low %v2494_v37, %v2504_v31  ;;  %v2230_v53 = vsel %vm5682_vm14, %v2225_v63, %v2229_v16  ;;  %v2247_v46 = vrot.slane %v2245_v26, 5  ;;  %v2253_v55 = vrot.slane %v2251_v12, 5  ;;  %v3573_v37 = vpop.permute.xlu0 %3572  ;;  %v2093_v31 = vld [vmem:[#allocation2 + $0x5c] sm:$0x1] }
 0x148   : > { %v2257_v11 = vrot.slane %v2255_v6, 4  ;;  %v4937_v18 = vrot.slane %v3626_v62, 9  ;;  %v2235_v39 = vrot.slane %v2234_v47, 4  ;;  %v3724_v51 = vrot.slane %v3627_v56, 5  ;;  %v1844_v13 = vpop.permute.xlu1 %1843  ;;  %v2092_v56 = vld [vmem:[#allocation2 + $0x58] sm:$0xf] }
 0x149   : > { %2584 = vst.msk [vmem:[#allocation3 + $0x170] sm:$0xff] %vm1007_vm15, %v4872_v59  ;;  %v3924_v38 = vld [vmem:[#allocation3 + $0x50] sm:$0xff]  ;;  %v2248_v45 = vor.u32 %v2247_v46, %v2244_v50  ;;  %v3727_v58 = vrot.slane %v3628_v42, 5  ;;  %v2263_v28 = vrot.slane %v2261_v7, 5  ;;  %v4938_v49 = vrot.slane %v3629_v36, 9 }
 0x14a   : > { %2904 = vst.msk [vmem:[#allocation3 + $0x170] sm:$0xff] %vm1555_vm0, %v6611_v44  ;;  %4217 = vmatprep.mubr.bf16.mxu0 %v3924_v38  ;;  %v2258_v8 = vor.u32 %v2257_v11, %v2253_v55  ;;  %v3731_v35 = vrot.slane %v3630_v10, 5  ;;  %v2240_v41 = vsel %vm5682_vm14, %v2235_v39, %v2239_v60  ;;  %v3725_v17 = vsel %vm5626_vm11, %v4937_v18, %v3724_v51  ;;  %v3634_v44 = vld [vmem:[#allocation2 + $0x38] sm:$0x1]  ;;  %v3638_v42 = vld [vmem:[#allocation2 + $0x48] sm:$0xe] }
 0x14b   : > { %3081 = vst.msk [vmem:[#allocation3 + $0x170] sm:$0xff] %vm1879_vm1, %v6640_v19  ;;  %4218 = vmatmul.mubr.bf16.gmra.mrb[12].mxu0 %v3923_v57  ;;  %v2249_v32 = vrot.slane %v2248_v45, 4  ;;  %v3726_v5 = vrot.slane %v3724_v51, 4  ;;  %1886 = vst.msk [vmem:[#allocation3 + $0x90] sm:$0xff] %vm1879_vm1, %v1844_v13  ;;  %v4861_v14 = vcombine.low %v2230_v53, %v2240_v41  ;;  %v3734_v27 = vrot.slane %v3631_v1, 5  ;;  %v3959_v10 = vld [vmem:[#allocation3 + $0x168] sm:$0xff] }
 0x14c   : > { %3625 = vst.msk [vmem:[#allocation3 + $0x170] sm:$0xff] %vm2056_vm3, %v6653_v0  ;;  %v2259_v15 = vrot.slane %v2258_v8, 4  ;;  %v3732_v19 = vsel %vm5626_vm11, %v4938_v49, %v3731_v35  ;;  %v3733_v24 = vrot.slane %v3731_v35, 4  ;;  %v4939_v2 = vrot.slane %v3632_v34, 9  ;;  %v2021_v62 = vpop.permute.xlu1 %2020  ;;  %v3639_v59 = vld [vmem:[#allocation2 + $0x4c] sm:$0xf]  ;;  %v6786_v49 = vpop.permute.xlu0 %2853 }
 0x14d   : > { %v2254_v33 = vsel %vm5682_vm14, %v2249_v32, %v2253_v55  ;;  %v3728_v4 = vsel %vm5626_vm11, %v3726_v5, %v3727_v58  ;;  %2573 = vst.msk [vmem:[#allocation3 + $0x68] sm:$0xff] %vm1007_vm15, %v4861_v14  ;;  %v3738_v40 = vrot.slane %v3633_v9, 5  ;;  %v3741_v16 = vrot.slane %v3634_v44, 5  ;;  %v3640_v57 = vld [vmem:[#allocation2 + $0x50] sm:$0x1] }
 0x14e   : > { %v2264_v0 = vsel %vm5682_vm14, %v2259_v15, %v2263_v28  ;;  %v4953_v25 = vcombine.low %v3725_v17, %v3728_v4  ;;  %2893 = vst.msk [vmem:[#allocation3 + $0x68] sm:$0xff] %vm1555_vm0, %v6677_v21  ;;  %v3735_v23 = vsel %vm5626_vm11, %v3733_v24, %v3734_v27  ;;  %v4940_v60 = vrot.slane %v3635_v3, 9  ;;  %v3641_v36 = vld [vmem:[#allocation2 + $0x54] sm:$0xe]  ;;  %v3642_v18 = vld [vmem:[#allocation2 + $0x58] sm:$0xf] }
 0x14f   : > { %v4862_v63 = vcombine.low %v2254_v33, %v2264_v0  ;;  %v3745_v26 = vrot.slane %v3636_v30, 5  ;;  %2063 = vst.msk [vmem:[#allocation3 + $0x90] sm:$0xff] %vm2056_vm3, %v2021_v62  ;;  %v4954_v50 = vcombine.low %v3732_v19, %v3735_v23  ;;  %v3739_v12 = vsel %vm5626_vm11, %v4939_v2, %v3738_v40  ;;  %v2094_v35 = vld [vmem:[#allocation2 + $0x60] sm:$0xf]  ;;  %v2095_v32 = vld [vmem:[#allocation2 + $0x64] sm:$0xf] }
 0x150   : > { %3070 = vst.msk [vmem:[#allocation3 + $0x68] sm:$0xff] %vm1879_vm1, %v6692_v52  ;;  %v3740_v21 = vrot.slane %v3738_v40, 4  ;;  %v3748_v6 = vrot.slane %v3637_v43, 5  ;;  %v2266_v47 = vshrl.u32 %v2091_v20, 16  ;;  %v2269_v46 = vshll.u32 %v2091_v20, 16  ;;  %v3926_v17 = vld [vmem:[#allocation3 + $0x60] sm:$0xff] }
 0x151   : > { %3898 = vst.msk [vmem:[#allocation3 + $0x10] sm:$0xff] %vm1007_vm15, %v4953_v25  ;;  %2574 = vst.msk [vmem:[#allocation3 + $0x80] sm:$0xff] %vm1007_vm15, %v4862_v63  ;;  %v3746_v53 = vsel %vm5626_vm11, %v4940_v60, %v3745_v26  ;;  %v3747_v52 = vrot.slane %v3745_v26, 4  ;;  %v2275_v11 = vshll.u32 %v2092_v56, 16  ;;  %v2285_v7 = vshll.u32 %v2093_v31, 16  ;;  %v3031_v31 = vpop.permute.xlu0 %3030 }
 0x152   : > { %3614 = vst.msk [vmem:[#allocation3 + $0x68] sm:$0xff] %vm2056_vm3, %v6708_v48  ;;  %v3742_v55 = vsel %vm5626_vm11, %v3740_v21, %v3741_v16  ;;  %v2279_v48 = vshrl.u32 %v2092_v56, 16  ;;  %v2268_v45 = vrot.slane %v2266_v47, 4  ;;  %v2271_v51 = vrot.slane %v2269_v46, 5  ;;  %v2096_v33 = vld [vmem:[#allocation2 + $0x68] sm:$0x1] }
 0x153   : > { %2894 = vst.msk [vmem:[#allocation3 + $0x80] sm:$0xff] %vm1555_vm0, %v6727_v54  ;;  %v3960_v1 = vld [vmem:[#allocation3 + $0x170] sm:$0xff]  ;;  %v4955_v38 = vcombine.low %v3739_v12, %v3742_v55  ;;  %v3749_v39 = vsel %vm5626_vm11, %v3747_v52, %v3748_v6  ;;  %v3643_v54 = vld [vmem:[#allocation2 + $0x5c] sm:$0x1]  ;;  %v2277_v34 = vrot.slane %v2275_v11, 5  ;;  %v2287_v28 = vrot.slane %v2285_v7, 5 }
 0x154   : > { %3899 = vst.msk [vmem:[#allocation3 + $0x28] sm:$0xff] %vm1007_vm15, %v4954_v50  ;;  %4313 = vmatprep.mubr.bf16.mxu1 %v3960_v1  ;;  %v4956_v58 = vcombine.low %v3746_v53, %v3749_v39  ;;  %v2281_v8 = vrot.slane %v2279_v48, 4  ;;  %v4941_v9 = vrot.slane %v3638_v42, 9  ;;  %v3752_v13 = vrot.slane %v3639_v59, 5  ;;  %v3644_v27 = vld [vmem:[#allocation2 + $0x60] sm:$0xe] }
 0x155   : > { %3071 = vst.msk [vmem:[#allocation3 + $0x80] sm:$0xff] %vm1879_vm1, %v6738_v22  ;;  %4314 = vmatmul.mubr.bf16.gmra.mrb[12].mxu1 %v3959_v10  ;;  %v2272_v22 = vor.u32 %v2271_v51, %v2268_v45  ;;  %v3755_v41 = vrot.slane %v3640_v57, 5  ;;  %v4942_v44 = vrot.slane %v3641_v36, 9  ;;  %v3759_v3 = vrot.slane %v3642_v18, 5  ;;  %v3645_v40 = vld [vmem:[#allocation2 + $0x64] sm:$0xf] }
 0x156   : > { %3615 = vst.msk [vmem:[#allocation3 + $0x80] sm:$0xff] %vm2056_vm3, %v3573_v37  ;;  %v2282_v5 = vor.u32 %v2281_v8, %v2277_v34  ;;  %v3762_v14 = vrot.slane %v3643_v54, 5  ;;  %v3753_v24 = vsel %vm5626_vm11, %v4941_v9, %v3752_v13  ;;  %v3754_v30 = vrot.slane %v3752_v13, 4  ;;  %v3646_v23 = vld [vmem:[#allocation2 + $0x68] sm:$0x1]  ;;  %v3929_v51 = vld [vmem:[#allocation3 + $0x78] sm:$0xff] }
 0x157   : > { %3900 = vst.msk [vmem:[#allocation3 + $0x40] sm:$0xff] %vm1007_vm15, %v4955_v38  ;;  %3901 = vst.msk [vmem:[#allocation3 + $0x58] sm:$0xff] %vm1007_vm15, %v4956_v58  ;;  %v2273_v19 = vrot.slane %v2272_v22, 4  ;;  %v2290_v4 = vshrl.u32 %v2094_v35, 16  ;;  %v3760_v0 = vsel %vm5626_vm11, %v4942_v44, %v3759_v3  ;;  %v3761_v25 = vrot.slane %v3759_v3, 4 }
 0x158   : > { %v3916_v15 = vld [vmem:[#allocation3 + $0x10] sm:$0xff]  ;;  %v2283_v43 = vrot.slane %v2282_v5, 4  ;;  %v2293_v37 = vshll.u32 %v2094_v35, 16  ;;  %v3756_v20 = vsel %vm5626_vm11, %v3754_v30, %v3755_v41  ;;  %v2299_v63 = vshll.u32 %v2095_v32, 16  ;;  %v3648_v6 = vld [vmem:[#allocation2 + $0x70] sm:$0xf] }
 0x159   : > { %5301 = vmatprep.mubr.msk.bf16.mxu1 %vm1007_vm15, %v3916_v15  ;;  %v3927_v2 = vld [vmem:[#allocation3 + $0x68] sm:$0xff]  ;;  %v2278_v16 = vsel %vm5682_vm14, %v2273_v19, %v2277_v34  ;;  %v2292_v62 = vrot.slane %v2290_v4, 4  ;;  %v3647_v60 = vld [vmem:[#allocation2 + $0x6c] sm:$0xe]  ;;  %v4957_v50 = vcombine.low %v3753_v24, %v3756_v20  ;;  %v3763_v12 = vsel %vm5626_vm11, %v3761_v25, %v3762_v14  ;;  %v3649_v42 = vld [vmem:[#allocation2 + $0x74] sm:$0x1] }
 0x15a   : > { %4225 = vmatprep.mubr.bf16.mxu0 %v3927_v2  ;;  %v2288_v56 = vsel %vm5682_vm14, %v2283_v43, %v2287_v28  ;;  %v2295_v21 = vrot.slane %v2293_v37, 5  ;;  %v4958_v53 = vcombine.low %v3760_v0, %v3763_v12  ;;  %v6803_v52 = vrot.slane %v2299_v63, 5  ;;  %v3650_v46 = vld [vmem:[#allocation2 + $0x78] sm:$0xe]  ;;  %v3651_v7 = vld [vmem:[#allocation2 + $0x7c] sm:$0xf] }
 0x15b   : > { %v3919_v26 = vld [vmem:[#allocation3 + $0x28] sm:$0xff]  ;;  %4226 = vmatmul.mubr.bf16.gmra.mrb[16].mxu0 %v3926_v17  ;;  %v4863_v59 = vcombine.low %v2278_v16, %v2288_v56  ;;  %v2303_v47 = vshrl.u32 %v2095_v32, 16  ;;  %3902 = vst.msk [vmem:[#allocation3 + $0x70] sm:$0xff] %vm1007_vm15, %v4957_v50  ;;  %v2309_v55 = vshll.u32 %v2096_v33, 16  ;;  %v4943_v11 = vrot.slane %v3644_v27, 9 }
 0x15c   : > { %v2296_v10 = vor.u32 %v2295_v21, %v2292_v62  ;;  %v3766_v48 = vrot.slane %v3645_v40, 5  ;;  %3903 = vst.msk [vmem:[#allocation3 + $0x88] sm:$0xff] %vm1007_vm15, %v4958_v53  ;;  %v3769_v1 = vrot.slane %v3646_v23, 5  ;;  %v4944_v38 = vrot.slane %v3647_v60, 9  ;;  %v3652_v45 = vld [vmem:[#allocation2 + $0x80] sm:$0x1] }
 0x15d   : > { %v3930_v57 = vld [vmem:[#allocation3 + $0x80] sm:$0xff]  ;;  %5302 = vmatmul.mubr.msk.bf16.vlgmr.msra.gmra.mrb[16].mxu1 %vm1007_vm15, %v3919_v26  ;;  %2575 = vst.msk [vmem:[#allocation3 + $0x98] sm:$0xff] %vm1007_vm15, %v4863_v59  ;;  %v2305_v18 = vrot.slane %v2303_v47, 4  ;;  %v3773_v39 = vrot.slane %v3648_v6, 5  ;;  %v2311_v58 = vrot.slane %v2309_v55, 5  ;;  %v3776_v13 = vrot.slane %v3649_v42, 5 }
 0x15e   : > { %v3922_v36 = vld [vmem:[#allocation3 + $0x40] sm:$0xff]  ;;  %4233 = vmatprep.mubr.bf16.mxu0 %v3930_v57  ;;  %2895 = vst.msk [vmem:[#allocation3 + $0x98] sm:$0xff] %vm1555_vm0, %v6786_v49  ;;  %v2297_v54 = vrot.slane %v2296_v10, 4  ;;  %v3767_v34 = vsel %vm5626_vm11, %v4943_v11, %v3766_v48  ;;  %v3768_v8 = vrot.slane %v3766_v48, 4  ;;  %v3653_v28 = vld [vmem:[#allocation2 + $0x84] sm:$0xe] }
 0x15f   : > { %5305 = vmatprep.mubr.msk.bf16.mxu1 %vm1007_vm15, %v3922_v36  ;;  %3072 = vst.msk [vmem:[#allocation3 + $0x98] sm:$0xff] %vm1879_vm1, %v3031_v31  ;;  %v2306_v35 = vor.u32 %v2305_v18, %v6803_v52  ;;  %v3774_v22 = vsel %vm5626_vm11, %v4944_v38, %v3773_v39  ;;  %v3775_v9 = vrot.slane %v3773_v39, 4  ;;  %v3654_v41 = vld [vmem:[#allocation2 + $0x88] sm:$0xf]  ;;  %v3655_v32 = vld [vmem:[#allocation2 + $0x8c] sm:$0x1]  ;;  %v3575_v49 = vpop.permute.xlu0 %3574  ;;  %v1522_v44 = vpop.permute.xlu1 %1521 }
 0x160   : > { %v2302_v17 = vsel %vm5682_vm14, %v2297_v54, %v6803_v52  ;;  %v3770_v5 = vsel %vm5626_vm11, %v3768_v8, %v3769_v1  ;;  %v4945_v3 = vrot.slane %v3650_v46, 9  ;;  %v3780_v14 = vrot.slane %v3651_v7, 5  ;;  %v2097_v15 = vld [vmem:[#allocation2 + $0x6c] sm:$0xf]  ;;  %v2098_v19 = vld [vmem:[#allocation2 + $0x70] sm:$0xf] }
 0x161   : > { %3616 = vst.msk [vmem:[#allocation3 + $0x98] sm:$0xff] %vm2056_vm3, %v3575_v49  ;;  %v2307_v24 = vrot.slane %v2306_v35, 4  ;;  %v4959_v30 = vcombine.low %v3767_v34, %v3770_v5  ;;  %v3777_v33 = vsel %vm5626_vm11, %v3775_v9, %v3776_v13  ;;  %v3783_v4 = vrot.slane %v3652_v45, 5  ;;  %v2099_v27 = vld [vmem:[#allocation2 + $0x74] sm:$0x1]  ;;  %v3932_v48 = vld [vmem:[#allocation3 + $0x90] sm:$0xff] }
 0x162   : > { %1563 = vst.msk [vmem:[#allocation3 + $0xa8] sm:$0xff] %vm1555_vm0, %v1522_v44  ;;  %v3925_v2 = vld [vmem:[#allocation3 + $0x58] sm:$0xff]  ;;  %v4960_v43 = vcombine.low %v3774_v22, %v3777_v33  ;;  %v3781_v0 = vsel %vm5626_vm11, %v4945_v3, %v3780_v14  ;;  %v3782_v25 = vrot.slane %v3780_v14, 4  ;;  %v4946_v37 = vrot.slane %v3653_v28, 9  ;;  %v3928_v40 = vld [vmem:[#allocation3 + $0x70] sm:$0xff] }
 0x163   : > { %4234 = vmatmul.mubr.bf16.gmra.mrb[20].mxu0 %v3929_v51  ;;  %v2312_v16 = vsel %vm5682_vm14, %v2307_v24, %v2311_v58  ;;  %3904 = vst.msk [vmem:[#allocation3 + $0xa0] sm:$0xff] %vm1007_vm15, %v4959_v30  ;;  %v3787_v20 = vrot.slane %v3654_v41, 5  ;;  %v3790_v62 = vrot.slane %v3655_v32, 5  ;;  %v2314_v63 = vshrl.u32 %v2097_v15, 16  ;;  %v3656_v23 = vld [vmem:[#allocation2 + $0x90] sm:$0xe] }
 0x164   : > { %v4864_v60 = vcombine.low %v2302_v17, %v2312_v16  ;;  %v2856_v26 = vpop.permute.xlu0 %2855  ;;  %3905 = vst.msk [vmem:[#allocation3 + $0xb8] sm:$0xff] %vm1007_vm15, %v4960_v43  ;;  %v3784_v31 = vsel %vm5626_vm11, %v3782_v25, %v3783_v4  ;;  %v2317_v50 = vshll.u32 %v2097_v15, 16  ;;  %v2323_v12 = vshll.u32 %v2098_v19, 16  ;;  %v3657_v21 = vld [vmem:[#allocation2 + $0x94] sm:$0xf]  ;;  %v3931_v32 = vld [vmem:[#allocation3 + $0x88] sm:$0xff] }
 0x165   : > { %v1846_v56 = vpop.permute.xlu1 %1845  ;;  %v3658_v6 = vld [vmem:[#allocation2 + $0x98] sm:$0x1]  ;;  %5306 = vmatmul.mubr.msk.bf16.gmra.mrb[20].mxu1 %vm1007_vm15, %v3925_v2  ;;  %v4961_v42 = vcombine.low %v3781_v0, %v3784_v31  ;;  %v3788_v59 = vsel %vm5626_vm11, %v4946_v37, %v3787_v20  ;;  %v3789_v57 = vrot.slane %v3787_v20, 4  ;;  %v2316_v53 = vrot.slane %v2314_v63, 4  ;;  %v3659_v52 = vld [vmem:[#allocation2 + $0x9c] sm:$0xe] }
 0x166   : > { %1887 = vst.msk [vmem:[#allocation3 + $0xa8] sm:$0xff] %vm1879_vm1, %v1846_v56  ;;  %v3660_v47 = vld [vmem:[#allocation2 + $0xa0] sm:$0xf]  ;;  %5309 = vmatprep.mubr.msk.bf16.mxu1 %vm1007_vm15, %v3928_v40  ;;  %v2319_v46 = vrot.slane %v2317_v50, 5  ;;  %v6841_v36 = vrot.slane %v2323_v12, 5  ;;  %v2327_v10 = vshrl.u32 %v2098_v19, 16 }
 0x167   : > { %2576 = vst.msk [vmem:[#allocation3 + $0xb0] sm:$0xff] %vm1007_vm15, %v4864_v60  ;;  %v2333_v55 = vshll.u32 %v2099_v27, 16  ;;  %v3661_v11 = vld [vmem:[#allocation2 + $0xa4] sm:$0x1]  ;;  %3906 = vst.msk [vmem:[#allocation3 + $0xd0] sm:$0xff] %vm1007_vm15, %v4961_v42  ;;  %v3791_v7 = vsel %vm5626_vm11, %v3789_v57, %v3790_v62  ;;  %v4947_v18 = vrot.slane %v3656_v23, 9 }
 0x168   : > { %2896 = vst.msk [vmem:[#allocation3 + $0xb0] sm:$0xff] %vm1555_vm0, %v2856_v26  ;;  %v3794_v1 = vrot.slane %v3657_v21, 5  ;;  %v3797_v38 = vrot.slane %v3658_v6, 5  ;;  %v2100_v39 = vld [vmem:[#allocation2 + $0x78] sm:$0xf]  ;;  %v3933_v45 = vld [vmem:[#allocation3 + $0x98] sm:$0xff]  ;;  %v4962_v54 = vcombine.low %v3788_v59, %v3791_v7  ;;  %v2320_v58 = vor.u32 %v2319_v46, %v2316_v53 }
 0x169   : > { %v2023_v51 = vpop.permute.xlu1 %2022  ;;  %v2329_v34 = vrot.slane %v2327_v10, 4  ;;  %v2335_v8 = vrot.slane %v2333_v55, 5  ;;  %v2101_v28 = vld [vmem:[#allocation2 + $0x7c] sm:$0xf]  ;;  %4241 = vmatprep.mubr.bf16.mxu0 %v3933_v45  ;;  %v4948_v9 = vrot.slane %v3659_v52, 9  ;;  %v3801_v13 = vrot.slane %v3660_v47, 5  ;;  %v3033_v49 = vpop.permute.xlu0 %3032 }
 0x16a   : > { %2064 = vst.msk [vmem:[#allocation3 + $0xa8] sm:$0xff] %vm2056_vm3, %v2023_v51  ;;  %v3795_v35 = vsel %vm5626_vm11, %v4947_v18, %v3794_v1  ;;  %v3796_v22 = vrot.slane %v3794_v1, 4  ;;  %v2102_v41 = vld [vmem:[#allocation2 + $0x80] sm:$0x1]  ;;  %v2321_v17 = vrot.slane %v2320_v58, 4  ;;  %v3804_v44 = vrot.slane %v3661_v11, 5 }
 0x16b   : > { %4242 = vmatmul.mubr.bf16.gmra.mrb[24].mxu0 %v3932_v48  ;;  %3907 = vst.msk [vmem:[#allocation3 + $0xe8] sm:$0xff] %vm1007_vm15, %v4962_v54  ;;  %v2330_v5 = vor.u32 %v2329_v34, %v6841_v36  ;;  %v2338_v3 = vshrl.u32 %v2100_v39, 16  ;;  %v3662_v14 = vld [vmem:[#allocation2 + $0xa8] sm:$0xe]  ;;  %v3934_v15 = vld [vmem:[#allocation3 + $0xa0] sm:$0xff]  ;;  %v3802_v24 = vsel %vm5626_vm11, %v4948_v9, %v3801_v13  ;;  %v3803_v30 = vrot.slane %v3801_v13, 4 }
 0x16c   : > { %3073 = vst.msk [vmem:[#allocation3 + $0xb0] sm:$0xff] %vm1879_vm1, %v3033_v49  ;;  %v3798_v19 = vsel %vm5626_vm11, %v3796_v22, %v3797_v38  ;;  %v2341_v33 = vshll.u32 %v2100_v39, 16  ;;  %v3663_v4 = vld [vmem:[#allocation2 + $0xac] sm:$0xf]  ;;  %v3664_v27 = vld [vmem:[#allocation2 + $0xb0] sm:$0x1]  ;;  %v2326_v43 = vsel %vm5682_vm14, %v2321_v17, %v6841_v36 }
 0x16d   : > { %v3665_v2 = vld [vmem:[#allocation2 + $0xb4] sm:$0xe]  ;;  %v2331_v0 = vrot.slane %v2330_v5, 4  ;;  %v4963_v25 = vcombine.low %v3795_v35, %v3798_v19  ;;  %v2340_v37 = vrot.slane %v2338_v3, 4  ;;  %v3666_v40 = vld [vmem:[#allocation2 + $0xb8] sm:$0xf]  ;;  %5310 = vmatmul.mubr.msk.bf16.gmra.mrb[24].mxu1 %vm1007_vm15, %v3931_v32  ;;  %v1524_v16 = vpop.permute.xlu1 %1523  ;;  %v3805_v20 = vsel %vm5626_vm11, %v3803_v30, %v3804_v44 }
 0x16e   : > { %v2343_v62 = vrot.slane %v2341_v33, 5  ;;  %v2347_v63 = vshll.u32 %v2101_v28, 16  ;;  %v2351_v23 = vshrl.u32 %v2101_v28, 16  ;;  %5313 = vmatprep.mubr.msk.bf16.mxu1 %vm1007_vm15, %v3934_v15  ;;  %1564 = vst.msk [vmem:[#allocation3 + $0xc0] sm:$0xff] %vm1555_vm0, %v1524_v16  ;;  %v4964_v26 = vcombine.low %v3802_v24, %v3805_v20  ;;  %v3667_v50 = vld [vmem:[#allocation2 + $0xbc] sm:$0x1] }
 0x16f   : > { %v2336_v60 = vsel %vm5682_vm14, %v2331_v0, %v2335_v8  ;;  %3908 = vst.msk [vmem:[#allocation3 + $0x100] sm:$0xff] %vm1007_vm15, %v4963_v25  ;;  %v2357_v56 = vshll.u32 %v2102_v41, 16  ;;  %v4949_v31 = vrot.slane %v3662_v14, 9  ;;  %v3668_v12 = vld [vmem:[#allocation2 + $0xc0] sm:$0xe]  ;;  %v3808_v47 = vrot.slane %v3663_v4, 5 }
 0x170   : > { %v4865_v21 = vcombine.low %v2326_v43, %v2336_v60  ;;  %v2344_v6 = vor.u32 %v2343_v62, %v2340_v37  ;;  %v2349_v42 = vrot.slane %v2347_v63, 5  ;;  %v2353_v59 = vrot.slane %v2351_v23, 4  ;;  %v3669_v57 = vld [vmem:[#allocation2 + $0xc4] sm:$0xf]  ;;  %v3670_v53 = vld [vmem:[#allocation2 + $0xc8] sm:$0x1] }
 0x171   : > { %3909 = vst.msk [vmem:[#allocation3 + $0x118] sm:$0xff] %vm1007_vm15, %v4964_v26  ;;  %v2359_v52 = vrot.slane %v2357_v56, 5  ;;  %v3811_v46 = vrot.slane %v3664_v27, 5  ;;  %v4950_v36 = vrot.slane %v3665_v2, 9  ;;  %v3671_v10 = vld [vmem:[#allocation2 + $0xcc] sm:$0xe]  ;;  %v1848_v55 = vpop.permute.xlu1 %1847  ;;  %v3809_v38 = vsel %vm5626_vm11, %v4949_v31, %v3808_v47 }
 0x172   : > { %2577 = vst.msk [vmem:[#allocation3 + $0xc8] sm:$0xff] %vm1007_vm15, %v4865_v21  ;;  %v2345_v11 = vrot.slane %v2344_v6, 4  ;;  %v2354_v48 = vor.u32 %v2353_v59, %v2349_v42  ;;  %v3815_v7 = vrot.slane %v3666_v40, 5  ;;  %v3818_v18 = vrot.slane %v3667_v50, 5  ;;  %v3937_v1 = vld [vmem:[#allocation3 + $0xb8] sm:$0xff]  ;;  %v3940_v54 = vld [vmem:[#allocation3 + $0xd0] sm:$0xff] }
 0x173   : > { %1888 = vst.msk [vmem:[#allocation3 + $0xc0] sm:$0xff] %vm1879_vm1, %v1848_v55  ;;  %v3810_v39 = vrot.slane %v3808_v47, 4  ;;  %v4951_v45 = vrot.slane %v3668_v12, 9  ;;  %v3822_v51 = vrot.slane %v3669_v57, 5  ;;  %v3672_v35 = vld [vmem:[#allocation2 + $0xd0] sm:$0xf] }
 0x174   : > { %v2350_v58 = vsel %vm5682_vm14, %v2345_v11, %v2349_v42  ;;  %v2355_v34 = vrot.slane %v2354_v48, 4  ;;  %v3816_v8 = vsel %vm5626_vm11, %v4950_v36, %v3815_v7  ;;  %v3817_v28 = vrot.slane %v3815_v7, 4  ;;  %v3673_v32 = vld [vmem:[#allocation2 + $0xd4] sm:$0x1]  ;;  %v2103_v49 = vld [vmem:[#allocation2 + $0x84] sm:$0xf] }
 0x175   : > { %v3812_v22 = vsel %vm5626_vm11, %v3810_v39, %v3811_v46  ;;  %v3823_v9 = vsel %vm5626_vm11, %v4951_v45, %v3822_v51  ;;  %v3824_v13 = vrot.slane %v3822_v51, 4  ;;  %v3825_v41 = vrot.slane %v3670_v53, 5  ;;  %5314 = vmatmul.mubr.msk.bf16.gmra.mrb[28].mxu1 %vm1007_vm15, %v3937_v1  ;;  %v2025_v17 = vpop.permute.xlu1 %2024  ;;  %v2104_v15 = vld [vmem:[#allocation2 + $0x88] sm:$0xf]  ;;  %v2105_v4 = vld [vmem:[#allocation2 + $0x8c] sm:$0x1] }
 0x176   : > { %v2360_v5 = vsel %vm5682_vm14, %v2355_v34, %v2359_v52  ;;  %v4965_v44 = vcombine.low %v3809_v38, %v3812_v22  ;;  %v3819_v3 = vsel %vm5626_vm11, %v3817_v28, %v3818_v18  ;;  %v4952_v14 = vrot.slane %v3671_v10, 9  ;;  %5317 = vmatprep.mubr.msk.bf16.mxu1 %vm1007_vm15, %v3940_v54  ;;  %2065 = vst.msk [vmem:[#allocation3 + $0xc0] sm:$0xff] %vm2056_vm3, %v2025_v17  ;;  %v2106_v27 = vld [vmem:[#allocation2 + $0x90] sm:$0xf]  ;;  %v2107_v26 = vld [vmem:[#allocation2 + $0x94] sm:$0xf] }
 0x177   : > { %v4866_v19 = vcombine.low %v2350_v58, %v2360_v5  ;;  %v4966_v24 = vcombine.low %v3816_v8, %v3819_v3  ;;  %v3826_v30 = vsel %vm5626_vm11, %v3824_v13, %v3825_v41  ;;  %v3829_v33 = vrot.slane %v3672_v35, 5  ;;  %v3943_v31 = vld [vmem:[#allocation3 + $0xe8] sm:$0xff]  ;;  %v2108_v6 = vld [vmem:[#allocation2 + $0x98] sm:$0x1] }
 0x178   : > { %3910 = vst.msk [vmem:[#allocation3 + $0x130] sm:$0xff] %vm1007_vm15, %v4965_v44  ;;  %v4967_v2 = vcombine.low %v3823_v9, %v3826_v30  ;;  %v3832_v43 = vrot.slane %v3673_v32, 5  ;;  %v2362_v0 = vshrl.u32 %v2103_v49, 16  ;;  %v2365_v25 = vshll.u32 %v2103_v49, 16  ;;  %v3577_v37 = vpop.permute.xlu0 %3576  ;;  %v3946_v59 = vld [vmem:[#allocation3 + $0x100] sm:$0xff]  ;;  %v3935_v39 = vld [vmem:[#allocation3 + $0xa8] sm:$0xff] }
 0x179   : > { %2578 = vst.msk [vmem:[#allocation3 + $0xe0] sm:$0xff] %vm1007_vm15, %v4866_v19  ;;  %3911 = vst.msk [vmem:[#allocation3 + $0x148] sm:$0xff] %vm1007_vm15, %v4966_v24  ;;  %v3830_v40 = vsel %vm5626_vm11, %v4952_v14, %v3829_v33  ;;  %v3831_v16 = vrot.slane %v3829_v33, 4  ;;  %v2371_v20 = vshll.u32 %v2104_v15, 16  ;;  %v2375_v62 = vshrl.u32 %v2104_v15, 16  ;;  %v3949_v22 = vld [vmem:[#allocation3 + $0x118] sm:$0xff] }
 0x17a   : > { %3617 = vst.msk [vmem:[#allocation3 + $0xb0] sm:$0xff] %vm2056_vm3, %v3577_v37  ;;  %v2364_v63 = vrot.slane %v2362_v0, 4  ;;  %v2367_v23 = vrot.slane %v2365_v25, 5  ;;  %v2381_v60 = vshll.u32 %v2105_v4, 16  ;;  %v2386_v56 = vshrl.u32 %v2106_v27, 16 }
 0x17b   : > { %3912 = vst.msk [vmem:[#allocation3 + $0x160] sm:$0xff] %vm1007_vm15, %v4967_v2  ;;  %v3833_v50 = vsel %vm5626_vm11, %v3831_v16, %v3832_v43  ;;  %v2373_v12 = vrot.slane %v2371_v20, 5  ;;  %v2377_v21 = vrot.slane %v2375_v62, 4  ;;  %v2389_v42 = vshll.u32 %v2106_v27, 16 }
 0x17c   : > { %v4968_v57 = vcombine.low %v3830_v40, %v3833_v50  ;;  %v2368_v53 = vor.u32 %v2367_v23, %v2364_v63  ;;  %v2383_v52 = vrot.slane %v2381_v60, 5  ;;  %v2388_v47 = vrot.slane %v2386_v56, 4  ;;  %v2858_v46 = vpop.permute.xlu0 %2857 }
 0x17d   : > { %v2378_v36 = vor.u32 %v2377_v21, %v2373_v12  ;;  %v2391_v10 = vrot.slane %v2389_v42, 5  ;;  %v2395_v55 = vshll.u32 %v2107_v26, 16  ;;  %v2399_v11 = vshrl.u32 %v2107_v26, 16  ;;  %5318 = vmatmul.mubr.msk.bf16.gmra.mrb[32].mxu1 %vm1007_vm15, %v3943_v31  ;;  %2897 = vst.msk [vmem:[#allocation3 + $0xc8] sm:$0xff] %vm1555_vm0, %v2858_v46  ;;  %v3938_v19 = vld [vmem:[#allocation3 + $0xc0] sm:$0xff] }
 0x17e   : > { %3913 = vst.msk [vmem:[#allocation3 + $0x178] sm:$0xff] %vm1007_vm15, %v4968_v57  ;;  %v2369_v61 = vrot.slane %v2368_v53, 4  ;;  %v2405_v48 = vshll.u32 %v2108_v6, 16  ;;  %5321 = vmatprep.mubr.msk.bf16.mxu1 %vm1007_vm15, %v3946_v59 }
 0x17f   : > { %v2379_v7 = vrot.slane %v2378_v36, 4  ;;  %v2392_v18 = vor.u32 %v2391_v10, %v2388_v47  ;;  %v2397_v1 = vrot.slane %v2395_v55, 5  ;;  %v2401_v38 = vrot.slane %v2399_v11, 4  ;;  %v3952_v41 = vld [vmem:[#allocation3 + $0x130] sm:$0xff] }
 0x180   : > { %v2374_v45 = vsel %vm5682_vm14, %v2369_v61, %v2373_v12  ;;  %v3035_v51 = vpop.permute.xlu0 %3034  ;;  %v2407_v28 = vrot.slane %v2405_v48, 5  ;;  %v3955_v3 = vld [vmem:[#allocation3 + $0x148] sm:$0xff] }
 0x181   : > { %v3936_v54 = vld [vmem:[#allocation3 + $0xb0] sm:$0xff]  ;;  %v2384_v58 = vsel %vm5682_vm14, %v2379_v7, %v2383_v52  ;;  %v2393_v34 = vrot.slane %v2392_v18, 4  ;;  %v2402_v8 = vor.u32 %v2401_v38, %v2397_v1  ;;  %3074 = vst.msk [vmem:[#allocation3 + $0xc8] sm:$0xff] %vm1879_vm1, %v3035_v51 }
 0x182   : > { %4249 = vmatprep.mubr.bf16.mxu0 %v3936_v54  ;;  %v4867_v35 = vcombine.low %v2374_v45, %v2384_v58  ;;  %v3958_v14 = vld [vmem:[#allocation3 + $0x160] sm:$0xff] }
 0x183   : > { %4250 = vmatmul.mubr.bf16.gmra.mrb[28].mxu0 %v3935_v39  ;;  %v2398_v9 = vsel %vm5682_vm14, %v2393_v34, %v2397_v1  ;;  %v2403_v13 = vrot.slane %v2402_v8, 4 }
 0x184   : > { %2579 = vst.msk [vmem:[#allocation3 + $0xf8] sm:$0xff] %vm1007_vm15, %v4867_v35 }
 0x185   : > { %v2408_v32 = vsel %vm5682_vm14, %v2403_v13, %v2407_v28  ;;  %5322 = vmatmul.mubr.msk.bf16.gmra.mrb[36].mxu1 %vm1007_vm15, %v3949_v22  ;;  %v1526_v49 = vpop.permute.xlu1 %1525  ;;  %v3961_v33 = vld [vmem:[#allocation3 + $0x178] sm:$0xff] }
 0x186   : > { %v4868_v17 = vcombine.low %v2398_v9, %v2408_v32  ;;  %5325 = vmatprep.mubr.msk.bf16.mxu1 %vm1007_vm15, %v3952_v41  ;;  %1565 = vst.msk [vmem:[#allocation3 + $0xd8] sm:$0xff] %vm1555_vm0, %v1526_v49 }
 0x188   : > { %2580 = vst.msk [vmem:[#allocation3 + $0x110] sm:$0xff] %vm1007_vm15, %v4868_v17  ;;  %v3579_v5 = vpop.permute.xlu0 %3578 }
 0x189   : > { %3618 = vst.msk [vmem:[#allocation3 + $0xc8] sm:$0xff] %vm2056_vm3, %v3579_v5  ;;  %v1850_v44 = vpop.permute.xlu1 %1849 }
 0x18a   : > { %1889 = vst.msk [vmem:[#allocation3 + $0xd8] sm:$0xff] %vm1879_vm1, %v1850_v44 }
 0x18c   : > { %v2860_v29 = vpop.permute.xlu0 %2859 }
 0x18d   : > { %2898 = vst.msk [vmem:[#allocation3 + $0xe0] sm:$0xff] %vm1555_vm0, %v2860_v29  ;;  %5326 = vmatmul.mubr.msk.bf16.gmra.mrb[40].mxu1 %vm1007_vm15, %v3955_v3  ;;  %v2027_v15 = vpop.permute.xlu1 %2026 }
 0x18e   : > { %5329 = vmatprep.mubr.msk.bf16.mxu1 %vm1007_vm15, %v3958_v14  ;;  %2066 = vst.msk [vmem:[#allocation3 + $0xd8] sm:$0xff] %vm2056_vm3, %v2027_v15 }
 0x190   : > { %v3037_v24 = vpop.permute.xlu0 %3036  ;;  %v3939_v30 = vld [vmem:[#allocation3 + $0xc8] sm:$0xff] }
 0x191   : > { %3075 = vst.msk [vmem:[#allocation3 + $0xe0] sm:$0xff] %vm1879_vm1, %v3037_v24  ;;  %4257 = vmatprep.mubr.bf16.mxu0 %v3939_v30 }
 0x192   : > { %4258 = vmatmul.mubr.bf16.gmra.mrb[32].mxu0 %v3938_v19 }
 0x195   : > { %5330 = vmatmul.mubr.msk.bf16.gmra.mrb[44].mxu1 %vm1007_vm15, %v3961_v33  ;;  %v3941_v25 = vld [vmem:[#allocation3 + $0xd8] sm:$0xff] }
 0x199   : > { %v1528_v4 = vpop.permute.xlu1 %1527 }
 0x19a   : > { %1566 = vst.msk [vmem:[#allocation3 + $0xf0] sm:$0xff] %vm1555_vm0, %v1528_v4 }
 0x19d   : > { %v1852_v27 = vpop.permute.xlu1 %1851 }
 0x19e   : > { %1890 = vst.msk [vmem:[#allocation3 + $0xf0] sm:$0xff] %vm1879_vm1, %v1852_v27 }
 0x1a1   : > { %v3581_v2 = vpop.permute.xlu0 %3580  ;;  %v2029_v43 = vpop.permute.xlu1 %2028 }
 0x1a2   : > { %3619 = vst.msk [vmem:[#allocation3 + $0xe0] sm:$0xff] %vm2056_vm3, %v3581_v2  ;;  %2067 = vst.msk [vmem:[#allocation3 + $0xf0] sm:$0xff] %vm2056_vm3, %v2029_v43  ;;  %v6957_v43 = vld [vmem:[%s7051_s2] ss:$0 sm:$0xff] }
 0x1a5   : > { %v2862_v0 = vpop.permute.xlu0 %2861 }
 0x1a6   : > { %2899 = vst.msk [vmem:[#allocation3 + $0xf8] sm:$0xff] %vm1555_vm0, %v2862_v0 }
 0x1a9   : > { %v3039_v37 = vpop.permute.xlu0 %3038  ;;  %v3942_v40 = vld [vmem:[#allocation3 + $0xe0] sm:$0xff]  ;;  %v3944_v23 = vld [vmem:[#allocation3 + $0xf0] sm:$0xff] }
 0x1aa   : > { %3076 = vst.msk [vmem:[#allocation3 + $0xf8] sm:$0xff] %vm1879_vm1, %v3039_v37  ;;  %4265 = vmatprep.mubr.bf16.mxu0 %v3942_v40 }
 0x1ab   : > { %4266 = vmatmul.mubr.bf16.gmra.mrb[36].mxu0 %v3941_v25 }
 0x1ac   : > { %v1530_v20 = vpop.permute.xlu1 %1529 }
 0x1ad   : > { %v3583_v16 = vpop.permute.xlu0 %3582  ;;  %1567 = vst.msk [vmem:[#allocation3 + $0x108] sm:$0xff] %vm1555_vm0, %v1530_v20 }
 0x1ae   : > { %3620 = vst.msk [vmem:[#allocation3 + $0xf8] sm:$0xff] %vm2056_vm3, %v3583_v16 }
 0x1b0   : > { %v1854_v63 = vpop.permute.xlu1 %1853 }
 0x1b1   : > { %v2864_v62 = vpop.permute.xlu0 %2863  ;;  %1891 = vst.msk [vmem:[#allocation3 + $0x108] sm:$0xff] %vm1879_vm1, %v1854_v63 }
 0x1b2   : > { %2900 = vst.msk [vmem:[#allocation3 + $0x110] sm:$0xff] %vm1555_vm0, %v2864_v62 }
 0x1b4   : > { %v2031_v56 = vpop.permute.xlu1 %2030 }
 0x1b5   : > { %v3041_v60 = vpop.permute.xlu0 %3040  ;;  %v3945_v26 = vld [vmem:[#allocation3 + $0xf8] sm:$0xff]  ;;  %2068 = vst.msk [vmem:[#allocation3 + $0x108] sm:$0xff] %vm2056_vm3, %v2031_v56 }
 0x1b6   : > { %3077 = vst.msk [vmem:[#allocation3 + $0x110] sm:$0xff] %vm1879_vm1, %v3041_v60  ;;  %4273 = vmatprep.mubr.bf16.mxu0 %v3945_v26 }
 0x1b7   : > { %4274 = vmatmul.mubr.bf16.gmra.mrb[40].mxu0 %v3944_v23 }
 0x1b9   : > { %v3585_v31 = vpop.permute.xlu0 %3584 }
 0x1ba   : > { %3621 = vst.msk [vmem:[#allocation3 + $0x110] sm:$0xff] %vm2056_vm3, %v3585_v31 }
 0x1bc   : > { %v3947_v50 = vld [vmem:[#allocation3 + $0x108] sm:$0xff] }
 0x1c1   : > { %v3948_v12 = vld [vmem:[#allocation3 + $0x110] sm:$0xff] }
 0x1c2   : > { %4281 = vmatprep.mubr.bf16.mxu0 %v3948_v12  ;;  %v5183_v21 = vpop.f32.mrb[0].mxu0 }
 0x1c3   : > { %4282 = vmatmul.mubr.bf16.gmra.mrb[44].mxu0 %v3947_v50  ;;  %v5184_v42 = vpop.f32.mrb[1].mxu0 }
 0x1c4   : > { %v5255_v6 = vpop.f32.mrb[0].mxu1  ;;  %v5185_v57 = vadd.f32 %v5184_v42, %v5183_v21  ;;  %v5186_v53 = vpop.f32.mrb[2].mxu0 }
 0x1c5   : > { %v5256_v59 = vpop.f32.mrb[1].mxu1  ;;  %v5187_v46 = vpop.f32.mrb[3].mxu0 }
 0x1c6   : > { %v6938_v52 = vadd.f32 %v5256_v59, %v5255_v6  ;;  %v5258_v47 = vpop.f32.mrb[2].mxu1  ;;  %v5188_v10 = vadd.f32 %v5187_v46, %v5186_v53  ;;  %v4196_v62 = vadd.f32 %v5185_v57, %v6957_v43 }
 0x1c7   : > { %v5259_v36 = vpop.f32.mrb[3].mxu1 }
 0x1c8   : > { %v6940_v55 = vadd.f32 %v5259_v36, %v5258_v47  ;;  %v4199_v12 = vadd.f32 %v5188_v10, %v6957_v43 }
 0x1cb   : > { %v5189_v11 = vpop.f32.mrb[4].mxu0 }
 0x1cc   : > { %v5190_v61 = vpop.f32.mrb[5].mxu0 }
 0x1cd   : > { %v5191_v48 = vadd.f32 %v5190_v61, %v5189_v11  ;;  %v5192_v7 = vpop.f32.mrb[6].mxu0 }
 0x1ce   : > { %v5193_v18 = vpop.f32.mrb[7].mxu0 }
 0x1cf   : > { %v5194_v1 = vadd.f32 %v5193_v18, %v5192_v7  ;;  %v4204_v37 = vadd.f32 %v5191_v48, %v6957_v43 }
 0x1d1   : > { %v4207_v26 = vadd.f32 %v5194_v1, %v6957_v43 }
 0x1e9   : > { %v5261_v38 = vpop.f32.mrb[4].mxu1 }
 0x1ea   : > { %v5262_v39 = vpop.f32.mrb[5].mxu1 }
 0x1eb   : > { %v6942_v45 = vadd.f32 %v5262_v39, %v5261_v38  ;;  %v5264_v51 = vpop.f32.mrb[6].mxu1 }
 0x1ec   : > { %v5265_v54 = vpop.f32.mrb[7].mxu1 }
 0x1ed   : > { %v6944_v58 = vadd.f32 %v5265_v54, %v5264_v51 }
 0x1fe   : > { %v5195_v34 = vpop.f32.mrb[8].mxu0 }
 0x1ff   : > { %v5196_v8 = vpop.f32.mrb[9].mxu0 }
 0x200   : > { %v5197_v28 = vadd.f32 %v5196_v8, %v5195_v34  ;;  %v5198_v35 = vpop.f32.mrb[10].mxu0 }
 0x201   : > { %v5199_v22 = vpop.f32.mrb[11].mxu0 }
 0x202   : > { %v5200_v9 = vadd.f32 %v5199_v22, %v5198_v35  ;;  %v4212_v1 = vadd.f32 %v5197_v28, %v6957_v43 }
 0x204   : > { %v4215_v22 = vadd.f32 %v5200_v9, %v6957_v43 }
 0x20d   : > { %v5267_v13 = vpop.f32.mrb[8].mxu1 }
 0x20e   : > { %v5268_v41 = vpop.f32.mrb[9].mxu1 }
 0x20f   : > { %v6946_v32 = vadd.f32 %v5268_v41, %v5267_v13  ;;  %v5270_v49 = vpop.f32.mrb[10].mxu1 }
 0x210   : > { %v5271_v17 = vpop.f32.mrb[11].mxu1 }
 0x211   : > { %v6948_v5 = vadd.f32 %v5271_v17, %v5270_v49 }
 0x21e   : > { %v5201_v44 = vpop.f32.mrb[12].mxu0 }
 0x21f   : > { %v5202_v3 = vpop.f32.mrb[13].mxu0 }
 0x220   : > { %v5203_v14 = vadd.f32 %v5202_v3, %v5201_v44  ;;  %v5204_v29 = vpop.f32.mrb[14].mxu0 }
 0x221   : > { %v5205_v15 = vpop.f32.mrb[15].mxu0 }
 0x222   : > { %v5206_v19 = vadd.f32 %v5205_v15, %v5204_v29  ;;  %v4220_v10 = vadd.f32 %v5203_v14, %v6957_v43 }
 0x224   : > { %v4223_v54 = vadd.f32 %v5206_v19, %v6957_v43 }
 0x228   : > { %v5273_v24 = vpop.f32.mrb[12].mxu1 }
 0x229   : > { %v5274_v30 = vpop.f32.mrb[13].mxu1 }
 0x22a   : > { %v6950_v33 = vadd.f32 %v5274_v30, %v5273_v24  ;;  %v5276_v4 = vpop.f32.mrb[14].mxu1 }
 0x22b   : > { %v5277_v27 = vpop.f32.mrb[15].mxu1 }
 0x22c   : > { %v6952_v2 = vadd.f32 %v5277_v27, %v5276_v4 }
 0x22e   : > { %v5207_v0 = vpop.f32.mrb[16].mxu0 }
 0x22f   : > { %v5208_v25 = vpop.f32.mrb[17].mxu0 }
 0x230   : > { %v5209_v40 = vadd.f32 %v5208_v25, %v5207_v0  ;;  %v5210_v16 = vpop.f32.mrb[18].mxu0  ;;  %v5303_v20 = vpop.f32.mrb[16].mxu1 }
 0x231   : > { %v5211_v63 = vpop.f32.mrb[19].mxu0  ;;  %v4365_v23 = vadd.f32 %v5303_v20, %v4204_v37  ;;  %v4356_v60 = vpop.f32.mrb[17].mxu1 }
 0x232   : > { %v5212_v56 = vadd.f32 %v5211_v63, %v5210_v16  ;;  %v4357_v31 = vadd.f32 %v4356_v60, %v4196_v62  ;;  %v5304_v50 = vpop.f32.mrb[18].mxu1  ;;  %v4228_v0 = vadd.f32 %v5209_v40, %v6957_v43 }
 0x233   : > { %v4368_v21 = vadd.f32 %v5304_v50, %v4207_v26  ;;  %v4359_v6 = vpop.f32.mrb[19].mxu1  ;;  %v4485_v59 = vmax.f32 %v4365_v23, 0.0 }
 0x234   : > { %v4360_v42 = vadd.f32 %v4359_v6, %v4199_v12  ;;  %v4483_v46 = vmax.f32 %v4357_v31, 0.0  ;;  %v4231_v23 = vadd.f32 %v5212_v56, %v6957_v43 }
 0x235   : > { %v4486_v53 = vmax.f32 %v4368_v21, 0.0 }
 0x236   : > { %v5213_v47 = vpop.f32.mrb[20].mxu0  ;;  %v4484_v57 = vmax.f32 %v4360_v42, 0.0 }
 0x237   : > { %v5214_v36 = vpop.f32.mrb[21].mxu0  ;;  %v5080_v11 = vpack.c.bf16 %v4486_v53, %v4485_v59 }
 0x238   : > { %v5215_v61 = vadd.f32 %v5214_v36, %v5213_v47  ;;  %v5216_v48 = vpop.f32.mrb[22].mxu0  ;;  %v5075_v7 = vpack.c.bf16 %v4484_v57, %v4483_v46  ;;  %v5307_v18 = vpop.f32.mrb[20].mxu1 }
 0x239   : > { %v5217_v38 = vpop.f32.mrb[23].mxu0  ;;  %5152 = vst [vmem:[%s6968_s23 + $0x8] sm:$0xff] %v5080_v11   ;;  %v4381_v39 = vadd.f32 %v5307_v18, %v4220_v10  ;;  %v4372_v51 = vpop.f32.mrb[21].mxu1 }
 0x23a   : > { %v5218_v34 = vadd.f32 %v5217_v38, %v5216_v48  ;;  %5076 = vst [vmem:[%s6968_s23] sm:$0xff] %v5075_v7   ;;  %v4373_v8 = vadd.f32 %v4372_v51, %v4212_v1  ;;  %v5308_v35 = vpop.f32.mrb[22].mxu1  ;;  %v4236_v28 = vadd.f32 %v5215_v61, %v6957_v43 }
 0x23b   : > { %v4384_v13 = vadd.f32 %v5308_v35, %v4223_v54  ;;  %v4375_v41 = vpop.f32.mrb[23].mxu1  ;;  %v4489_v17 = vmax.f32 %v4381_v39, 0.0 }
 0x23c   : > { %v4376_v49 = vadd.f32 %v4375_v41, %v4215_v22  ;;  %v4487_v14 = vmax.f32 %v4373_v8, 0.0  ;;  %v4239_v24 = vadd.f32 %v5218_v34, %v6957_v43 }
 0x23d   : > { %v4490_v44 = vmax.f32 %v4384_v13, 0.0 }
 0x23e   : > { %v5219_v3 = vpop.f32.mrb[24].mxu0  ;;  %v4488_v29 = vmax.f32 %v4376_v49, 0.0 }
 0x23f   : > { %v5220_v15 = vpop.f32.mrb[25].mxu0  ;;  %v5090_v19 = vpack.c.bf16 %v4490_v44, %v4489_v17 }
 0x240   : > { %v5221_v30 = vadd.f32 %v5220_v15, %v5219_v3  ;;  %v5222_v4 = vpop.f32.mrb[26].mxu0  ;;  %v5085_v27 = vpack.c.bf16 %v4488_v29, %v4487_v14  ;;  %v5311_v9 = vpop.f32.mrb[24].mxu1  ;;  %v4300_v15 = vadd.f32 %v6942_v45, %v6957_v43 }
 0x241   : > { %v5223_v25 = vpop.f32.mrb[27].mxu0  ;;  %5154 = vst [vmem:[%s6968_s23 + $0x18] sm:$0xff] %v5090_v19   ;;  %v4397_v37 = vadd.f32 %v5311_v9, %v4236_v28  ;;  %v4388_v16 = vpop.f32.mrb[25].mxu1  ;;  %v4303_v9 = vadd.f32 %v6944_v58, %v6957_v43 }
 0x242   : > { %v5224_v20 = vadd.f32 %v5223_v25, %v5222_v4  ;;  %5153 = vst [vmem:[%s6968_s23 + $0x10] sm:$0xff] %v5085_v27   ;;  %v4389_v62 = vadd.f32 %v4388_v16, %v4228_v0  ;;  %v5312_v63 = vpop.f32.mrb[26].mxu1  ;;  %v4244_v40 = vadd.f32 %v5221_v30, %v6957_v43 }
 0x243   : > { %v4400_v60 = vadd.f32 %v5312_v63, %v4239_v24  ;;  %v4391_v26 = vpop.f32.mrb[27].mxu1  ;;  %v4493_v50 = vmax.f32 %v4397_v37, 0.0  ;;  %v4292_v24 = vadd.f32 %v6938_v52, %v6957_v43  ;;  %v4295_v37 = vadd.f32 %v6940_v55, %v6957_v43 }
 0x244   : > { %v4392_v31 = vadd.f32 %v4391_v26, %v4231_v23  ;;  %v4491_v21 = vmax.f32 %v4389_v62, 0.0  ;;  %v4247_v47 = vadd.f32 %v5224_v20, %v6957_v43 }
 0x245   : > { %v4494_v12 = vmax.f32 %v4400_v60, 0.0 }
 0x246   : > { %v4492_v6 = vmax.f32 %v4392_v31, 0.0 }
 0x247   : > { %v5100_v42 = vpack.c.bf16 %v4494_v12, %v4493_v50  ;;  %v4316_v12 = vadd.f32 %v6950_v33, %v6957_v43  ;;  %v4311_v33 = vadd.f32 %v6948_v5, %v6957_v43 }
 0x248   : > { %v5095_v59 = vpack.c.bf16 %v4492_v6, %v4491_v21  ;;  %v5315_v53 = vpop.f32.mrb[28].mxu1 }
 0x249   : > { %5156 = vst [vmem:[%s6968_s23 + $0x28] sm:$0xff] %v5100_v42   ;;  %v4404_v46 = vpop.f32.mrb[29].mxu1 }
 0x24a   : > { %5155 = vst [vmem:[%s6968_s23 + $0x20] sm:$0xff] %v5095_v59   ;;  %v4405_v57 = vadd.f32 %v4404_v46, %v4244_v40  ;;  %v5316_v56 = vpop.f32.mrb[30].mxu1  ;;  %v4308_v40 = vadd.f32 %v6946_v32, %v6957_v43  ;;  %v4319_v46 = vadd.f32 %v6952_v2, %v6957_v43 }
 0x24b   : > { %v4407_v36 = vpop.f32.mrb[31].mxu1 }
 0x24c   : > { %v4408_v11 = vadd.f32 %v4407_v36, %v4247_v47  ;;  %v4495_v10 = vmax.f32 %v4405_v57, 0.0 }
 0x24e   : > { %v4496_v61 = vmax.f32 %v4408_v11, 0.0 }
 0x250   : > { %v5105_v48 = vpack.c.bf16 %v4496_v61, %v4495_v10  ;;  %v6986_v7 = vpop.f32.mrb[32].mxu1 }
 0x251   : > { %v4420_v18 = vpop.f32.mrb[33].mxu1 }
 0x252   : > { %5157 = vst [vmem:[%s6968_s23 + $0x30] sm:$0xff] %v5105_v48   ;;  %v6989_v1 = vpop.f32.mrb[34].mxu1 }
 0x253   : > { %v4423_v38 = vpop.f32.mrb[35].mxu1 }
 0x256   : > { %v5225_v39 = vpop.f32.mrb[28].mxu0 }
 0x257   : > { %v5226_v51 = vpop.f32.mrb[29].mxu0 }
 0x258   : > { %v5227_v54 = vadd.f32 %v5226_v51, %v5225_v39  ;;  %v5228_v34 = vpop.f32.mrb[30].mxu0  ;;  %v6991_v35 = vpop.f32.mrb[36].mxu1 }
 0x259   : > { %v5229_v8 = vpop.f32.mrb[31].mxu0  ;;  %v6994_v41 = vpop.f32.mrb[37].mxu1 }
 0x25a   : > { %v4252_v22 = vadd.f32 %v5227_v54, %v6957_v43  ;;  %v5230_v13 = vadd.f32 %v5229_v8, %v5228_v34  ;;  %v6996_v49 = vpop.f32.mrb[38].mxu1 }
 0x25b   : > { %v6999_v28 = vpop.f32.mrb[39].mxu1 }
 0x25c   : > { %v4413_v17 = vadd.f32 %v5315_v53, %v4252_v22  ;;  %v4255_v44 = vadd.f32 %v5230_v13, %v6957_v43 }
 0x25e   : > { %v4416_v3 = vadd.f32 %v5316_v56, %v4255_v44  ;;  %v4497_v14 = vmax.f32 %v4413_v17, 0.0 }
 0x260   : > { %v4498_v29 = vmax.f32 %v4416_v3, 0.0  ;;  %v5327_v19 = vpop.f32.mrb[40].mxu1 }
 0x261   : > { %v4461_v4 = vadd.f32 %v5327_v19, %v4300_v15  ;;  %v4452_v27 = vpop.f32.mrb[41].mxu1 }
 0x262   : > { %v5110_v30 = vpack.c.bf16 %v4498_v29, %v4497_v14  ;;  %v4453_v0 = vadd.f32 %v4452_v27, %v4292_v24  ;;  %v5328_v25 = vpop.f32.mrb[42].mxu1 }
 0x263   : > { %v4464_v16 = vadd.f32 %v5328_v25, %v4303_v9  ;;  %v4455_v20 = vpop.f32.mrb[43].mxu1  ;;  %v4509_v62 = vmax.f32 %v4461_v4, 0.0 }
 0x264   : > { %5158 = vst [vmem:[%s6968_s23 + $0x38] sm:$0xff] %v5110_v30   ;;  %v4456_v45 = vadd.f32 %v4455_v20, %v4295_v37  ;;  %v4507_v52 = vmax.f32 %v4453_v0, 0.0 }
 0x265   : > { %v4510_v63 = vmax.f32 %v4464_v16, 0.0  ;;  %v5231_v23 = vpop.f32.mrb[32].mxu0 }
 0x266   : > { %v4508_v60 = vmax.f32 %v4456_v45, 0.0  ;;  %v5232_v26 = vpop.f32.mrb[33].mxu0 }
 0x267   : > { %v5140_v31 = vpack.c.bf16 %v4510_v63, %v4509_v62  ;;  %v5233_v50 = vadd.f32 %v5232_v26, %v5231_v23  ;;  %v5234_v58 = vpop.f32.mrb[34].mxu0 }
 0x268   : > { %v5135_v21 = vpack.c.bf16 %v4508_v60, %v4507_v52  ;;  %v5235_v55 = vpop.f32.mrb[35].mxu0  ;;  %v5331_v6 = vpop.f32.mrb[44].mxu1 }
 0x269   : > { %5164 = vst [vmem:[%s6968_s23 + $0x68] sm:$0xff] %v5140_v31   ;;  %v4260_v42 = vadd.f32 %v5233_v50, %v6957_v43  ;;  %v5236_v59 = vadd.f32 %v5235_v55, %v5234_v58  ;;  %v4477_v53 = vadd.f32 %v5331_v6, %v4316_v12  ;;  %v4468_v47 = vpop.f32.mrb[45].mxu1 }
 0x26a   : > { %5163 = vst [vmem:[%s6968_s23 + $0x60] sm:$0xff] %v5135_v21   ;;  %v4469_v57 = vadd.f32 %v4468_v47, %v4308_v40  ;;  %v5332_v56 = vpop.f32.mrb[46].mxu1 }
 0x26b   : > { %v4421_v36 = vadd.f32 %v4420_v18, %v4260_v42  ;;  %v4263_v32 = vadd.f32 %v5236_v59, %v6957_v43  ;;  %v4480_v11 = vadd.f32 %v5332_v56, %v4319_v46  ;;  %v4471_v10 = vpop.f32.mrb[47].mxu1  ;;  %v4513_v39 = vmax.f32 %v4477_v53, 0.0 }
 0x26c   : > { %v4472_v61 = vadd.f32 %v4471_v10, %v4311_v33  ;;  %v4511_v54 = vmax.f32 %v4469_v57, 0.0 }
 0x26d   : > { %v4424_v48 = vadd.f32 %v4423_v38, %v4263_v32  ;;  %v4514_v51 = vmax.f32 %v4480_v11, 0.0  ;;  %v4499_v34 = vmax.f32 %v4421_v36, 0.0 }
 0x26e   : > { %v4512_v2 = vmax.f32 %v4472_v61, 0.0 }
 0x26f   : > { %v4500_v8 = vmax.f32 %v4424_v48, 0.0  ;;  %v5150_v22 = vpack.c.bf16 %v4514_v51, %v4513_v39 }
 0x270   : > { %v5145_v13 = vpack.c.bf16 %v4512_v2, %v4511_v54 }
 0x271   : > { %v5115_v17 = vpack.c.bf16 %v4500_v8, %v4499_v34  ;;  %5166 = vst [vmem:[%s6968_s23 + $0x78] sm:$0xff] %v5150_v22  }
 0x272   : > { %5165 = vst [vmem:[%s6968_s23 + $0x70] sm:$0xff] %v5145_v13  }
 0x273   : > { %5159 = vst [vmem:[%s6968_s23 + $0x40] sm:$0xff] %v5115_v17  }
 0x27e   : > { %v5237_v5 = vpop.f32.mrb[36].mxu0 }
 0x27f   : > { %v5238_v18 = vpop.f32.mrb[37].mxu0 }
 0x280   : > { %v5239_v44 = vadd.f32 %v5238_v18, %v5237_v5  ;;  %v5240_v3 = vpop.f32.mrb[38].mxu0 }
 0x281   : > { %v5241_v14 = vpop.f32.mrb[39].mxu0 }
 0x282   : > { %v4268_v38 = vadd.f32 %v5239_v44, %v6957_v43  ;;  %v5242_v29 = vadd.f32 %v5241_v14, %v5240_v3 }
 0x284   : > { %v4429_v15 = vadd.f32 %v6986_v7, %v4268_v38  ;;  %v4271_v19 = vadd.f32 %v5242_v29, %v6957_v43 }
 0x286   : > { %v4432_v24 = vadd.f32 %v6989_v1, %v4271_v19  ;;  %v4501_v30 = vmax.f32 %v4429_v15, 0.0 }
 0x288   : > { %v4502_v4 = vmax.f32 %v4432_v24, 0.0 }
 0x28a   : > { %v5120_v27 = vpack.c.bf16 %v4502_v4, %v4501_v30  ;;  %v5243_v9 = vpop.f32.mrb[40].mxu0 }
 0x28b   : > { %v5244_v0 = vpop.f32.mrb[41].mxu0 }
 0x28c   : > { %5160 = vst [vmem:[%s6968_s23 + $0x48] sm:$0xff] %v5120_v27   ;;  %v5245_v25 = vadd.f32 %v5244_v0, %v5243_v9  ;;  %v5246_v37 = vpop.f32.mrb[42].mxu0 }
 0x28d   : > { %v5247_v16 = vpop.f32.mrb[43].mxu0 }
 0x28e   : > { %v4276_v20 = vadd.f32 %v5245_v25, %v6957_v43  ;;  %v5248_v45 = vadd.f32 %v5247_v16, %v5246_v37 }
 0x290   : > { %v4437_v62 = vadd.f32 %v6994_v41, %v4276_v20  ;;  %v4279_v7 = vadd.f32 %v5248_v45, %v6957_v43 }
 0x292   : > { %v4440_v63 = vadd.f32 %v6999_v28, %v4279_v7  ;;  %v4503_v1 = vmax.f32 %v4437_v62, 0.0 }
 0x294   : > { %v4504_v23 = vmax.f32 %v4440_v63, 0.0 }
 0x296   : > { %v5125_v52 = vpack.c.bf16 %v4504_v23, %v4503_v1  ;;  %v5249_v60 = vpop.f32.mrb[44].mxu0 }
 0x297   : > { %v5250_v26 = vpop.f32.mrb[45].mxu0 }
 0x298   : > { %5161 = vst [vmem:[%s6968_s23 + $0x50] sm:$0xff] %v5125_v52   ;;  %v5251_v31 = vadd.f32 %v5250_v26, %v5249_v60  ;;  %v5252_v50 = vpop.f32.mrb[46].mxu0 }
 0x299   : > { %v5253_v58 = vpop.f32.mrb[47].mxu0 }
 0x29a   : > { %v4284_v12 = vadd.f32 %v5251_v31, %v6957_v43  ;;  %v5254_v21 = vadd.f32 %v5253_v58, %v5252_v50 }
 0x29c   : > { %v4445_v55 = vadd.f32 %v6991_v35, %v4284_v12  ;;  %v4287_v41 = vadd.f32 %v5254_v21, %v6957_v43 }
 0x29e   : > { %v4448_v6 = vadd.f32 %v6996_v49, %v4287_v41  ;;  %v4505_v28 = vmax.f32 %v4445_v55, 0.0 }
 0x2a0   : > { %v4506_v40 = vmax.f32 %v4448_v6, 0.0 }
 0x2a2   : > { %v5130_v42 = vpack.c.bf16 %v4506_v40, %v4505_v28 }
 0x2a4   : > { %5162 = vst [vmem:[%s6968_s23 + $0x58] sm:$0xff] %v5130_v42  }
 0x2a5 PF: > { %s13_s14 = sadd.s32 1, %s5465_s14   ;;  %s7065_s12 = smov %s5461_s13 }
 0x2a6   : > { %p10_p5 = scmp.ge.s32.totalorder %s13_s14, 4   ;;  %s7066_s13 = smov %s7068_s15 }
 0x2a8   :  { %12 = sbr.rel (!%p10_p5) target bundleno = 2 (0x2), region = 85 }

</bundles_post_ra>
